<compile_context>
chip_gen: v5e
topology: v5e:2x2
jax: 0.10.0
libtpu: 0.0.40
codegen_flags: <defaults>
</compile_context>

<pallas_src>
import jax
import jax.numpy as jnp
import numpy as np
from jax.experimental import pallas as pl
from jax.experimental.pallas import tpu as pltpu

# ----------------------------- problem sizes -------------------------------
B = 2            # batch
S = 16           # sequence length (split_len analogue, small for the test)
C = 32           # num_channels
L = 16           # latent_input_size
V = 16           # vocab size (get_vocab_size() stand-in)
NL = 7           # num_dilated_layers (dilations 1,2,4,...,64)
EPS = 1e-5
NEG_SLOPE = 0.01  # F.leaky_relu default


def _layer_norm(x, w, b):
    mu = jnp.mean(x, axis=-1, keepdims=True)
    xc = x - mu
    var = jnp.mean(xc * xc, axis=-1, keepdims=True)
    return xc * jax.lax.rsqrt(var + EPS) * w + b


def _leaky_relu(x):
    return jnp.where(x >= 0, x, NEG_SLOPE * x)


# ------------------------------- the kernel --------------------------------
def decoder_kernel(tokens_ref, z_ref, emb_ref, lat_w_ref, lat_b_ref,
                   ln_w_ref, ln_b_ref, start_w_ref, start_b_ref,
                   dil_w_ref, dil_b_ref, glu_w_ref, glu_b_ref,
                   logit_w_ref, logit_b_ref, out_ref):
    f32 = jnp.float32
    bf16 = jnp.bfloat16
    seq = tokens_ref.shape[1]
    nch = lat_b_ref.shape[-1]
    vocab = logit_b_ref.shape[-1]

    tok = tokens_ref[0]                                       # [S, 1] int32
    vocab_iota = jax.lax.broadcasted_iota(jnp.int32, (seq, vocab), 1)

    # x = embedding(tokens) + latent_fc(z), embedding done in-kernel as
    # one-hot @ table (exact, bf16 one-hot, f32 accumulation).
    onehot_in = (vocab_iota == tok).astype(bf16)              # [S, V]
    x = jnp.dot(onehot_in, emb_ref[...],
                preferred_element_type=f32)                   # [S, C] f32
    lat = jnp.dot(z_ref[0].astype(bf16), lat_w_ref[...],
                  preferred_element_type=f32) + lat_b_ref[...]  # [1, C]
    x = x + lat

    zeros_pad = jnp.zeros((seq, nch), bf16)   # hoisted (no per-iter broadcast)

    # stack of DilConv1dWithGLU layers (teacher-forcing path, sampling=False)
    # NOTE: static unroll is fine at [16,32] tiles; switch to
    # lax.fori_loop(..., unroll=True) with pl.ds weight indexing if S/C grow.
    for l in range(NL):
        x_inp = x
        # start_ln -> leaky_relu -> start_conv1x1
        h = _layer_norm(x_inp,
                        ln_w_ref[pl.ds(3 * l, 1), :],
                        ln_b_ref[pl.ds(3 * l, 1), :])
        h = _leaky_relu(h)
        h = jnp.dot(h.astype(bf16), start_w_ref[l],
                    preferred_element_type=f32) + start_b_ref[pl.ds(l, 1), :]
        # dilconv_ln -> leaky_relu -> causal dilated conv (k=2, dilation=2**l)
        h = _layer_norm(h,
                        ln_w_ref[pl.ds(3 * l + 1, 1), :],
                        ln_b_ref[pl.ds(3 * l + 1, 1), :])
        h = _leaky_relu(h)
        hb = h.astype(bf16)
        d = 2 ** l
        if d < seq:
            # shifted[t] = h[t - d] (zero for t < d): zero-pad + static slice
            padded = jnp.concatenate([zeros_pad, hb], axis=0)       # [2S, C]
            shifted = padded[seq - d:2 * seq - d, :]                # [S, C]
        else:
            shifted = zeros_pad
        # both conv taps as one K=2C matmul against the pre-stacked [2C, C] W
        h = jnp.dot(jnp.concatenate([shifted, hb], axis=-1), dil_w_ref[l],
                    preferred_element_type=f32) + dil_b_ref[pl.ds(l, 1), :]
        # gate_ln -> leaky_relu -> fused GLU (end_conv1x1 | gated_conv1x1)
        h = _layer_norm(h,
                        ln_w_ref[pl.ds(3 * l + 2, 1), :],
                        ln_b_ref[pl.ds(3 * l + 2, 1), :])
        h = _leaky_relu(h)
        eg = jnp.dot(h.astype(bf16), glu_w_ref[l],
                     preferred_element_type=f32) + glu_b_ref[pl.ds(l, 1), :]
        end = eg[:, :nch]
        gate = eg[:, nch:]
        x = end * jax.nn.sigmoid(gate) + x_inp            # residual connection

    # logits_1x1_layer + log_softmax over vocab
    logits = jnp.dot(x.astype(bf16), logit_w_ref[...],
                     preferred_element_type=f32) + logit_b_ref[...]   # [S, V]
    m = jnp.max(logits, axis=-1, keepdims=True)
    lse = jnp.log(jnp.sum(jnp.exp(logits - m), axis=-1, keepdims=True)) + m
    logp = logits - lse                                               # [S, V]

    # next-token gather: out[t] = logp[t, tokens[t+1]].  Lane-dense: all S
    # rows are written (row S-1 is a wrapped dummy, sliced off in the wrapper).
    tok_next = jnp.concatenate([tok[1:, :], tok[:1, :]], axis=0)      # [S, 1]
    onehot_t = (vocab_iota == tok_next).astype(f32)
    gathered = jnp.sum(logp * onehot_t, axis=-1)                      # [S]
    out_ref[...] = gathered.reshape(1, 1, seq)


# ------------------------------ host wrapper --------------------------------
@jax.jit
def dilconv_decoder_forward(tokens, z, params):
    """tokens: [B, S] int32, z: [B, L] float32 -> log-probs [B, S-1]."""
    tokens3 = tokens[:, :, None].astype(jnp.int32)       # [B, S, 1]
    z3 = z[:, None, :]                                   # [B, 1, L]

    out = pl.pallas_call(
        decoder_kernel,
        out_shape=jax.ShapeDtypeStruct((B, 1, S), jnp.float32),
        grid=(B,),
        in_specs=[
            pl.BlockSpec((1, S, 1), lambda b: (b, 0, 0)),          # tokens
            pl.BlockSpec((1, 1, L), lambda b: (b, 0, 0)),          # z
            pl.BlockSpec((V, C), lambda b: (0, 0)),                # emb table
            pl.BlockSpec((L, C), lambda b: (0, 0)),                # latent_fc W^T
            pl.BlockSpec((1, C), lambda b: (0, 0)),                # latent_fc b
            pl.BlockSpec((3 * NL, C), lambda b: (0, 0)),           # LN weights
            pl.BlockSpec((3 * NL, C), lambda b: (0, 0)),           # LN biases
            pl.BlockSpec((NL, C, C), lambda b: (0, 0, 0)),         # start 1x1 W^T
            pl.BlockSpec((NL, C), lambda b: (0, 0)),               # start 1x1 b
            pl.BlockSpec((NL, 2 * C, C), lambda b: (0, 0, 0)),     # dil conv [W0;W1]
            pl.BlockSpec((NL, C), lambda b: (0, 0)),               # dil conv b
            pl.BlockSpec((NL, C, 2 * C), lambda b: (0, 0, 0)),     # GLU [end|gate] W^T
            pl.BlockSpec((NL, 2 * C), lambda b: (0, 0)),           # GLU b
            pl.BlockSpec((C, V), lambda b: (0, 0)),                # logits W^T
            pl.BlockSpec((1, V), lambda b: (0, 0)),                # logits b
        ],
        out_specs=pl.BlockSpec((1, 1, S), lambda b: (b, 0, 0)),
        compiler_params=pltpu.CompilerParams(
            dimension_semantics=("parallel",)),
    )(tokens3, z3,
      params['emb_table'],
      params['lat_w'], params['lat_b'],
      params['ln_w'], params['ln_b'],
      params['start_w'], params['start_b'],
      params['dil_w'], params['dil_b'],
      params['glu_w'], params['glu_b'],
      params['logit_w'], params['logit_b'])
    return out[:, 0, :S - 1]                              # [B, S-1]


# --------------------------- pure-JAX reference ------------------------------
def reference_forward(tokens, z, p):
    f32 = jnp.float32
    emb = p['emb_table'].astype(f32)[tokens]
    lat = z @ p['lat_w'].astype(f32) + p['lat_b']
    x = emb + lat[:, None, :]
    for l in range(NL):
        x_inp = x
        h = _layer_norm(x_inp, p['ln_w'][3 * l], p['ln_b'][3 * l])
        h = _leaky_relu(h)
        h = jnp.einsum('bsc,cd->bsd', h, p['start_w'][l].astype(f32)) + p['start_b'][l]
        h = _layer_norm(h, p['ln_w'][3 * l + 1], p['ln_b'][3 * l + 1])
        h = _leaky_relu(h)
        d = 2 ** l
        if d < S:
            shifted = jnp.concatenate(
                [jnp.zeros((h.shape[0], d, h.shape[2]), f32), h[:, :S - d, :]],
                axis=1)
        else:
            shifted = jnp.zeros_like(h)
        dw = p['dil_w'][l].astype(f32)
        h = (jnp.einsum('bsc,cd->bsd', shifted, dw[:C])
             + jnp.einsum('bsc,cd->bsd', h, dw[C:])
             + p['dil_b'][l])
        h = _layer_norm(h, p['ln_w'][3 * l + 2], p['ln_b'][3 * l + 2])
        h = _leaky_relu(h)
        gw = p['glu_w'][l].astype(f32)
        end = jnp.einsum('bsc,cd->bsd', h, gw[:, :C]) + p['glu_b'][l, :C]
        gate = jnp.einsum('bsc,cd->bsd', h, gw[:, C:]) + p['glu_b'][l, C:]
        x = end * jax.nn.sigmoid(gate) + x_inp
    logits = jnp.einsum('bsc,cv->bsv', x, p['logit_w'].astype(f32)) + p['logit_b']
    logp = jax.nn.log_softmax(logits, axis=-1)
    tgt = tokens[:, 1:]
    return jnp.take_along_axis(logp[:, :-1, :], tgt[..., None], axis=-1)[..., 0]


# --------------------------------- main -------------------------------------
def make_params(key):
    ks = jax.random.split(key, 13)

    def bf16_w(k, shape, scale=0.1):
        # matmul weights stored in bf16 (MXU-native on v5e/v6e/v7x); the
        # reference up-casts the same quantized values, so kernel and
        # reference only differ by the in-kernel activation bf16 casts.
        return (scale * jax.random.normal(k, shape, jnp.float32)).astype(jnp.bfloat16)

    p = {
        'emb_table': bf16_w(ks[0], (V, C)),
        'lat_w':     bf16_w(ks[1], (L, C)),
        'lat_b':     0.01 * jax.random.normal(ks[2], (1, C), jnp.float32),
        'ln_w':      1.0 + 0.05 * jax.random.normal(ks[3], (3 * NL, C), jnp.float32),
        'ln_b':      0.05 * jax.random.normal(ks[4], (3 * NL, C), jnp.float32),
        'start_w':   bf16_w(ks[5], (NL, C, C)),
        'start_b':   0.01 * jax.random.normal(ks[6], (NL, C), jnp.float32),
        # dilated conv: rows [:C] act on the shifted tap (t - d), rows [C:] on t
        'dil_w':     bf16_w(ks[7], (NL, 2 * C, C)),
        'dil_b':     0.01 * jax.random.normal(ks[8], (NL, C), jnp.float32),
        # fused GLU: columns [:C] = end_conv1x1, columns [C:] = gated_conv1x1
        'glu_w':     bf16_w(ks[9], (NL, C, 2 * C)),
        'glu_b':     0.01 * jax.random.normal(ks[10], (NL, 2 * C), jnp.float32),
        'logit_w':   bf16_w(ks[11], (C, V)),
        'logit_b':   0.01 * jax.random.normal(ks[12], (1, V), jnp.float32),
    }
    return p


if __name__ == "__main__":
    key = jax.random.PRNGKey(0)
    kp, kt, kz = jax.random.split(key, 3)
    params = make_params(kp)
    tokens = jax.random.randint(kt, (B, S), 0, V, dtype=jnp.int32)
    z = jax.random.normal(kz, (B, L), jnp.float32)

    out = dilconv_decoder_forward(tokens, z, params)
    out = jax.block_until_ready(out)

    ref = jax.block_until_ready(reference_forward(tokens, z, params))
    # kernel uses bf16 matmul operands (f32 accumulation) vs. an all-f32
    # reference over the same bf16-quantized weights -> mixed-precision tol.
    np.testing.assert_allclose(np.asarray(out), np.asarray(ref),
                               rtol=2e-2, atol=2e-2)
    # TODO(synk): sampling=True incremental decoding (stateful per-layer buffer)
    # is not implemented; only the teacher-forcing forward() path is covered.
    print("KERNEL_OK")
</pallas_src>

<mosaic_0001>
module attributes {stable_mosaic.version = 11 : i64} {
  func.func @decoder_kernel(%arg0: i32, %arg1: memref<1x16x1xi32, #tpu.memory_space<vmem>>, %arg2: memref<1x1x16xf32, #tpu.memory_space<vmem>>, %arg3: memref<16x32xbf16, #tpu.memory_space<vmem>>, %arg4: memref<16x32xbf16, #tpu.memory_space<vmem>>, %arg5: memref<1x32xf32, #tpu.memory_space<vmem>>, %arg6: memref<21x32xf32, #tpu.memory_space<vmem>>, %arg7: memref<21x32xf32, #tpu.memory_space<vmem>>, %arg8: memref<7x32x32xbf16, #tpu.memory_space<vmem>>, %arg9: memref<7x32xf32, #tpu.memory_space<vmem>>, %arg10: memref<7x64x32xbf16, #tpu.memory_space<vmem>>, %arg11: memref<7x32xf32, #tpu.memory_space<vmem>>, %arg12: memref<7x32x64xbf16, #tpu.memory_space<vmem>>, %arg13: memref<7x64xf32, #tpu.memory_space<vmem>>, %arg14: memref<32x16xbf16, #tpu.memory_space<vmem>>, %arg15: memref<1x16xf32, #tpu.memory_space<vmem>>, %arg16: memref<1x1x16xf32, #tpu.memory_space<vmem>>) attributes {dimension_semantics = [#tpu.dimension_semantics<parallel>], iteration_bounds = array<i64: 2>, scalar_prefetch = 0 : i64, scratch_operands = 0 : i64, tpu.core_type = #tpu.core_type<tc>, window_params = [{transform_indices = @transform_0, window_bounds = array<i64: 1, 16, 1>}, {transform_indices = @transform_1, window_bounds = array<i64: 1, 1, 16>}, {pipeline_mode = #tpu.pipeline_mode<synchronous>, transform_indices = @transform_2, window_bounds = array<i64: 16, 32>}, {pipeline_mode = #tpu.pipeline_mode<synchronous>, transform_indices = @transform_3, window_bounds = array<i64: 16, 32>}, {pipeline_mode = #tpu.pipeline_mode<synchronous>, transform_indices = @transform_4, window_bounds = array<i64: 1, 32>}, {pipeline_mode = #tpu.pipeline_mode<synchronous>, transform_indices = @transform_5, window_bounds = array<i64: 21, 32>}, {pipeline_mode = #tpu.pipeline_mode<synchronous>, transform_indices = @transform_6, window_bounds = array<i64: 21, 32>}, {pipeline_mode = #tpu.pipeline_mode<synchronous>, transform_indices = @transform_7, window_bounds = array<i64: 7, 32, 32>}, {pipeline_mode = #tpu.pipeline_mode<synchronous>, transform_indices = @transform_8, window_bounds = array<i64: 7, 32>}, {pipeline_mode = #tpu.pipeline_mode<synchronous>, transform_indices = @transform_9, window_bounds = array<i64: 7, 64, 32>}, {pipeline_mode = #tpu.pipeline_mode<synchronous>, transform_indices = @transform_10, window_bounds = array<i64: 7, 32>}, {pipeline_mode = #tpu.pipeline_mode<synchronous>, transform_indices = @transform_11, window_bounds = array<i64: 7, 32, 64>}, {pipeline_mode = #tpu.pipeline_mode<synchronous>, transform_indices = @transform_12, window_bounds = array<i64: 7, 64>}, {pipeline_mode = #tpu.pipeline_mode<synchronous>, transform_indices = @transform_13, window_bounds = array<i64: 32, 16>}, {pipeline_mode = #tpu.pipeline_mode<synchronous>, transform_indices = @transform_14, window_bounds = array<i64: 1, 16>}, {transform_indices = @transform_15, window_bounds = array<i64: 1, 1, 16>}]} {
    %c0 = arith.constant 0 : index
    %c0_0 = arith.constant 0 : index
    %c0_1 = arith.constant 0 : index
    %0 = vector.load %arg1[%c0, %c0_0, %c0_1] : memref<1x16x1xi32, #tpu.memory_space<vmem>>, vector<1x16x1xi32>
    %1 = vector.shape_cast %0 : vector<1x16x1xi32> to vector<16x1xi32>
    %2 = tpu.iota {dimensions = array<i32: 1>} : vector<16x16xi32>
    %3 = vector.broadcast %1 : vector<16x1xi32> to vector<16x16xi32>
    %4 = arith.cmpi eq, %2, %3 : vector<16x16xi32>
    %5 = arith.extui %4 : vector<16x16xi1> to vector<16x16xi32>
    %6 = arith.sitofp %5 : vector<16x16xi32> to vector<16x16xf32>
    %7 = arith.truncf %6 : vector<16x16xf32> to vector<16x16xbf16>
    %c0_2 = arith.constant 0 : index
    %c0_3 = arith.constant 0 : index
    %8 = vector.load %arg3[%c0_2, %c0_3] : memref<16x32xbf16, #tpu.memory_space<vmem>>, vector<16x32xbf16>
    %cst = arith.constant dense<0.000000e+00> : vector<16x32xf32>
    %9 = tpu.matmul %7, %8, %cst {dimension_numbers = #tpu.dot_dimension_numbers<[1], [0], [0], [1], [0, 0, 1, 1], [], []>} : vector<16x16xbf16>, vector<16x32xbf16>, vector<16x32xf32> -> vector<16x32xf32>
    %c0_4 = arith.constant 0 : index
    %c0_5 = arith.constant 0 : index
    %c0_6 = arith.constant 0 : index
    %10 = vector.load %arg2[%c0_4, %c0_5, %c0_6] : memref<1x1x16xf32, #tpu.memory_space<vmem>>, vector<1x1x16xf32>
    %11 = vector.shape_cast %10 : vector<1x1x16xf32> to vector<1x16xf32>
    %12 = arith.truncf %11 : vector<1x16xf32> to vector<1x16xbf16>
    %c0_7 = arith.constant 0 : index
    %c0_8 = arith.constant 0 : index
    %13 = vector.load %arg4[%c0_7, %c0_8] : memref<16x32xbf16, #tpu.memory_space<vmem>>, vector<16x32xbf16>
    %cst_9 = arith.constant dense<0.000000e+00> : vector<1x32xf32>
    %14 = tpu.matmul %12, %13, %cst_9 {dimension_numbers = #tpu.dot_dimension_numbers<[1], [0], [0], [1], [0, 0, 1, 1], [], []>} : vector<1x16xbf16>, vector<16x32xbf16>, vector<1x32xf32> -> vector<1x32xf32>
    %c0_10 = arith.constant 0 : index
    %c0_11 = arith.constant 0 : index
    %15 = vector.load %arg5[%c0_10, %c0_11] : memref<1x32xf32, #tpu.memory_space<vmem>>, vector<1x32xf32>
    %16 = arith.addf %14, %15 : vector<1x32xf32>
    %17 = vector.broadcast %16 : vector<1x32xf32> to vector<16x32xf32>
    %18 = arith.addf %9, %17 : vector<16x32xf32>
    %cst_12 = arith.constant 0.000000e+00 : bf16
    %19 = vector.broadcast %cst_12 : bf16 to vector<16x32xbf16>
    %c0_13 = arith.constant 0 : index
    %c0_14 = arith.constant 0 : index
    %20 = vector.load %arg6[%c0_13, %c0_14] : memref<21x32xf32, #tpu.memory_space<vmem>>, vector<1x32xf32>
    %c0_15 = arith.constant 0 : index
    %c0_16 = arith.constant 0 : index
    %21 = vector.load %arg7[%c0_15, %c0_16] : memref<21x32xf32, #tpu.memory_space<vmem>>, vector<1x32xf32>
    %cst_17 = arith.constant dense<0.000000e+00> : vector<16xf32>
    %22 = vector.multi_reduction <add>, %18, %cst_17 [1] : vector<16x32xf32> to vector<16xf32>
    %23 = vector.shape_cast %22 : vector<16xf32> to vector<16x1xf32>
    %cst_18 = arith.constant 3.200000e+01 : f32
    %24 = vector.broadcast %cst_18 : f32 to vector<16x1xf32>
    %25 = arith.divf %23, %24 : vector<16x1xf32>
    %26 = vector.broadcast %25 : vector<16x1xf32> to vector<16x32xf32>
    %27 = arith.subf %18, %26 : vector<16x32xf32>
    %28 = arith.mulf %27, %27 : vector<16x32xf32>
    %cst_19 = arith.constant dense<0.000000e+00> : vector<16xf32>
    %29 = vector.multi_reduction <add>, %28, %cst_19 [1] : vector<16x32xf32> to vector<16xf32>
    %30 = vector.shape_cast %29 : vector<16xf32> to vector<16x1xf32>
    %cst_20 = arith.constant 3.200000e+01 : f32
    %31 = vector.broadcast %cst_20 : f32 to vector<16x1xf32>
    %32 = arith.divf %30, %31 : vector<16x1xf32>
    %cst_21 = arith.constant 9.99999974E-6 : f32
    %33 = vector.broadcast %cst_21 : f32 to vector<16x1xf32>
    %34 = arith.addf %32, %33 : vector<16x1xf32>
    %35 = math.rsqrt %34 : vector<16x1xf32>
    %36 = vector.broadcast %35 : vector<16x1xf32> to vector<16x32xf32>
    %37 = arith.mulf %27, %36 : vector<16x32xf32>
    %38 = vector.broadcast %20 : vector<1x32xf32> to vector<16x32xf32>
    %39 = arith.mulf %37, %38 : vector<16x32xf32>
    %40 = vector.broadcast %21 : vector<1x32xf32> to vector<16x32xf32>
    %41 = arith.addf %39, %40 : vector<16x32xf32>
    %cst_22 = arith.constant 0.000000e+00 : f32
    %42 = vector.broadcast %cst_22 : f32 to vector<16x32xf32>
    %43 = arith.cmpf oge, %41, %42 : vector<16x32xf32>
    %cst_23 = arith.constant 0.00999999977 : f32
    %44 = vector.broadcast %cst_23 : f32 to vector<16x32xf32>
    %45 = arith.mulf %44, %41 : vector<16x32xf32>
    %46 = arith.select %43, %41, %45 : vector<16x32xi1>, vector<16x32xf32>
    %47 = arith.truncf %46 : vector<16x32xf32> to vector<16x32xbf16>
    %c0_24 = arith.constant 0 : index
    %c0_25 = arith.constant 0 : index
    %c0_26 = arith.constant 0 : index
    %48 = vector.load %arg8[%c0_24, %c0_25, %c0_26] : memref<7x32x32xbf16, #tpu.memory_space<vmem>>, vector<1x32x32xbf16>
    %49 = vector.shape_cast %48 : vector<1x32x32xbf16> to vector<32x32xbf16>
    %cst_27 = arith.constant dense<0.000000e+00> : vector<16x32xf32>
    %50 = tpu.matmul %47, %49, %cst_27 {dimension_numbers = #tpu.dot_dimension_numbers<[1], [0], [0], [1], [0, 0, 1, 1], [], []>} : vector<16x32xbf16>, vector<32x32xbf16>, vector<16x32xf32> -> vector<16x32xf32>
    %c0_28 = arith.constant 0 : index
    %c0_29 = arith.constant 0 : index
    %51 = vector.load %arg9[%c0_28, %c0_29] : memref<7x32xf32, #tpu.memory_space<vmem>>, vector<1x32xf32>
    %52 = vector.broadcast %51 : vector<1x32xf32> to vector<16x32xf32>
    %53 = arith.addf %50, %52 : vector<16x32xf32>
    %c1 = arith.constant 1 : index
    %c0_30 = arith.constant 0 : index
    %54 = vector.load %arg6[%c1, %c0_30] : memref<21x32xf32, #tpu.memory_space<vmem>>, vector<1x32xf32>
    %c1_31 = arith.constant 1 : index
    %c0_32 = arith.constant 0 : index
    %55 = vector.load %arg7[%c1_31, %c0_32] : memref<21x32xf32, #tpu.memory_space<vmem>>, vector<1x32xf32>
    %cst_33 = arith.constant dense<0.000000e+00> : vector<16xf32>
    %56 = vector.multi_reduction <add>, %53, %cst_33 [1] : vector<16x32xf32> to vector<16xf32>
    %57 = vector.shape_cast %56 : vector<16xf32> to vector<16x1xf32>
    %cst_34 = arith.constant 3.200000e+01 : f32
    %58 = vector.broadcast %cst_34 : f32 to vector<16x1xf32>
    %59 = arith.divf %57, %58 : vector<16x1xf32>
    %60 = vector.broadcast %59 : vector<16x1xf32> to vector<16x32xf32>
    %61 = arith.subf %53, %60 : vector<16x32xf32>
    %62 = arith.mulf %61, %61 : vector<16x32xf32>
    %cst_35 = arith.constant dense<0.000000e+00> : vector<16xf32>
    %63 = vector.multi_reduction <add>, %62, %cst_35 [1] : vector<16x32xf32> to vector<16xf32>
    %64 = vector.shape_cast %63 : vector<16xf32> to vector<16x1xf32>
    %cst_36 = arith.constant 3.200000e+01 : f32
    %65 = vector.broadcast %cst_36 : f32 to vector<16x1xf32>
    %66 = arith.divf %64, %65 : vector<16x1xf32>
    %cst_37 = arith.constant 9.99999974E-6 : f32
    %67 = vector.broadcast %cst_37 : f32 to vector<16x1xf32>
    %68 = arith.addf %66, %67 : vector<16x1xf32>
    %69 = math.rsqrt %68 : vector<16x1xf32>
    %70 = vector.broadcast %69 : vector<16x1xf32> to vector<16x32xf32>
    %71 = arith.mulf %61, %70 : vector<16x32xf32>
    %72 = vector.broadcast %54 : vector<1x32xf32> to vector<16x32xf32>
    %73 = arith.mulf %71, %72 : vector<16x32xf32>
    %74 = vector.broadcast %55 : vector<1x32xf32> to vector<16x32xf32>
    %75 = arith.addf %73, %74 : vector<16x32xf32>
    %cst_38 = arith.constant 0.000000e+00 : f32
    %76 = vector.broadcast %cst_38 : f32 to vector<16x32xf32>
    %77 = arith.cmpf oge, %75, %76 : vector<16x32xf32>
    %cst_39 = arith.constant 0.00999999977 : f32
    %78 = vector.broadcast %cst_39 : f32 to vector<16x32xf32>
    %79 = arith.mulf %78, %75 : vector<16x32xf32>
    %80 = arith.select %77, %75, %79 : vector<16x32xi1>, vector<16x32xf32>
    %81 = arith.truncf %80 : vector<16x32xf32> to vector<16x32xbf16>
    %82 = tpu.concatenate %19, %81 in 0 : vector<16x32xbf16>, vector<16x32xbf16> -> vector<32x32xbf16>
    %83 = vector.extract_strided_slice %82 {offsets = [15, 0], sizes = [16, 32], strides = [1, 1]} : vector<32x32xbf16> to vector<16x32xbf16>
    %84 = tpu.concatenate %83, %81 in 1 : vector<16x32xbf16>, vector<16x32xbf16> -> vector<16x64xbf16>
    %c0_40 = arith.constant 0 : index
    %c0_41 = arith.constant 0 : index
    %c0_42 = arith.constant 0 : index
    %85 = vector.load %arg10[%c0_40, %c0_41, %c0_42] : memref<7x64x32xbf16, #tpu.memory_space<vmem>>, vector<1x64x32xbf16>
    %86 = vector.shape_cast %85 : vector<1x64x32xbf16> to vector<64x32xbf16>
    %cst_43 = arith.constant dense<0.000000e+00> : vector<16x32xf32>
    %87 = tpu.matmul %84, %86, %cst_43 {dimension_numbers = #tpu.dot_dimension_numbers<[1], [0], [0], [1], [0, 0, 1, 1], [], []>} : vector<16x64xbf16>, vector<64x32xbf16>, vector<16x32xf32> -> vector<16x32xf32>
    %c0_44 = arith.constant 0 : index
    %c0_45 = arith.constant 0 : index
    %88 = vector.load %arg11[%c0_44, %c0_45] : memref<7x32xf32, #tpu.memory_space<vmem>>, vector<1x32xf32>
    %89 = vector.broadcast %88 : vector<1x32xf32> to vector<16x32xf32>
    %90 = arith.addf %87, %89 : vector<16x32xf32>
    %c2 = arith.constant 2 : index
    %c0_46 = arith.constant 0 : index
    %91 = vector.load %arg6[%c2, %c0_46] : memref<21x32xf32, #tpu.memory_space<vmem>>, vector<1x32xf32>
    %c2_47 = arith.constant 2 : index
    %c0_48 = arith.constant 0 : index
    %92 = vector.load %arg7[%c2_47, %c0_48] : memref<21x32xf32, #tpu.memory_space<vmem>>, vector<1x32xf32>
    %cst_49 = arith.constant dense<0.000000e+00> : vector<16xf32>
    %93 = vector.multi_reduction <add>, %90, %cst_49 [1] : vector<16x32xf32> to vector<16xf32>
    %94 = vector.shape_cast %93 : vector<16xf32> to vector<16x1xf32>
    %cst_50 = arith.constant 3.200000e+01 : f32
    %95 = vector.broadcast %cst_50 : f32 to vector<16x1xf32>
    %96 = arith.divf %94, %95 : vector<16x1xf32>
    %97 = vector.broadcast %96 : vector<16x1xf32> to vector<16x32xf32>
    %98 = arith.subf %90, %97 : vector<16x32xf32>
    %99 = arith.mulf %98, %98 : vector<16x32xf32>
    %cst_51 = arith.constant dense<0.000000e+00> : vector<16xf32>
    %100 = vector.multi_reduction <add>, %99, %cst_51 [1] : vector<16x32xf32> to vector<16xf32>
    %101 = vector.shape_cast %100 : vector<16xf32> to vector<16x1xf32>
    %cst_52 = arith.constant 3.200000e+01 : f32
    %102 = vector.broadcast %cst_52 : f32 to vector<16x1xf32>
    %103 = arith.divf %101, %102 : vector<16x1xf32>
    %cst_53 = arith.constant 9.99999974E-6 : f32
    %104 = vector.broadcast %cst_53 : f32 to vector<16x1xf32>
    %105 = arith.addf %103, %104 : vector<16x1xf32>
    %106 = math.rsqrt %105 : vector<16x1xf32>
    %107 = vector.broadcast %106 : vector<16x1xf32> to vector<16x32xf32>
    %108 = arith.mulf %98, %107 : vector<16x32xf32>
    %109 = vector.broadcast %91 : vector<1x32xf32> to vector<16x32xf32>
    %110 = arith.mulf %108, %109 : vector<16x32xf32>
    %111 = vector.broadcast %92 : vector<1x32xf32> to vector<16x32xf32>
    %112 = arith.addf %110, %111 : vector<16x32xf32>
    %cst_54 = arith.constant 0.000000e+00 : f32
    %113 = vector.broadcast %cst_54 : f32 to vector<16x32xf32>
    %114 = arith.cmpf oge, %112, %113 : vector<16x32xf32>
    %cst_55 = arith.constant 0.00999999977 : f32
    %115 = vector.broadcast %cst_55 : f32 to vector<16x32xf32>
    %116 = arith.mulf %115, %112 : vector<16x32xf32>
    %117 = arith.select %114, %112, %116 : vector<16x32xi1>, vector<16x32xf32>
    %118 = arith.truncf %117 : vector<16x32xf32> to vector<16x32xbf16>
    %c0_56 = arith.constant 0 : index
    %c0_57 = arith.constant 0 : index
    %c0_58 = arith.constant 0 : index
    %119 = vector.load %arg12[%c0_56, %c0_57, %c0_58] : memref<7x32x64xbf16, #tpu.memory_space<vmem>>, vector<1x32x64xbf16>
    %120 = vector.shape_cast %119 : vector<1x32x64xbf16> to vector<32x64xbf16>
    %cst_59 = arith.constant dense<0.000000e+00> : vector<16x64xf32>
    %121 = tpu.matmul %118, %120, %cst_59 {dimension_numbers = #tpu.dot_dimension_numbers<[1], [0], [0], [1], [0, 0, 1, 1], [], []>} : vector<16x32xbf16>, vector<32x64xbf16>, vector<16x64xf32> -> vector<16x64xf32>
    %c0_60 = arith.constant 0 : index
    %c0_61 = arith.constant 0 : index
    %122 = vector.load %arg13[%c0_60, %c0_61] : memref<7x64xf32, #tpu.memory_space<vmem>>, vector<1x64xf32>
    %123 = vector.broadcast %122 : vector<1x64xf32> to vector<16x64xf32>
    %124 = arith.addf %121, %123 : vector<16x64xf32>
    %125 = vector.extract_strided_slice %124 {offsets = [0, 0], sizes = [16, 32], strides = [1, 1]} : vector<16x64xf32> to vector<16x32xf32>
    %126 = vector.extract_strided_slice %124 {offsets = [0, 32], sizes = [16, 32], strides = [1, 1]} : vector<16x64xf32> to vector<16x32xf32>
    %127 = arith.negf %126 : vector<16x32xf32>
    %128 = math.exp %127 : vector<16x32xf32>
    %cst_62 = arith.constant 1.000000e+00 : f32
    %129 = vector.broadcast %cst_62 : f32 to vector<16x32xf32>
    %130 = arith.addf %129, %128 : vector<16x32xf32>
    %131 = arith.divf %129, %130 : vector<16x32xf32>
    %132 = arith.mulf %125, %131 : vector<16x32xf32>
    %133 = arith.addf %132, %18 : vector<16x32xf32>
    %c3 = arith.constant 3 : index
    %c0_63 = arith.constant 0 : index
    %134 = vector.load %arg6[%c3, %c0_63] : memref<21x32xf32, #tpu.memory_space<vmem>>, vector<1x32xf32>
    %c3_64 = arith.constant 3 : index
    %c0_65 = arith.constant 0 : index
    %135 = vector.load %arg7[%c3_64, %c0_65] : memref<21x32xf32, #tpu.memory_space<vmem>>, vector<1x32xf32>
    %cst_66 = arith.constant dense<0.000000e+00> : vector<16xf32>
    %136 = vector.multi_reduction <add>, %133, %cst_66 [1] : vector<16x32xf32> to vector<16xf32>
    %137 = vector.shape_cast %136 : vector<16xf32> to vector<16x1xf32>
    %cst_67 = arith.constant 3.200000e+01 : f32
    %138 = vector.broadcast %cst_67 : f32 to vector<16x1xf32>
    %139 = arith.divf %137, %138 : vector<16x1xf32>
    %140 = vector.broadcast %139 : vector<16x1xf32> to vector<16x32xf32>
    %141 = arith.subf %133, %140 : vector<16x32xf32>
    %142 = arith.mulf %141, %141 : vector<16x32xf32>
    %cst_68 = arith.constant dense<0.000000e+00> : vector<16xf32>
    %143 = vector.multi_reduction <add>, %142, %cst_68 [1] : vector<16x32xf32> to vector<16xf32>
    %144 = vector.shape_cast %143 : vector<16xf32> to vector<16x1xf32>
    %cst_69 = arith.constant 3.200000e+01 : f32
    %145 = vector.broadcast %cst_69 : f32 to vector<16x1xf32>
    %146 = arith.divf %144, %145 : vector<16x1xf32>
    %cst_70 = arith.constant 9.99999974E-6 : f32
    %147 = vector.broadcast %cst_70 : f32 to vector<16x1xf32>
    %148 = arith.addf %146, %147 : vector<16x1xf32>
    %149 = math.rsqrt %148 : vector<16x1xf32>
    %150 = vector.broadcast %149 : vector<16x1xf32> to vector<16x32xf32>
    %151 = arith.mulf %141, %150 : vector<16x32xf32>
    %152 = vector.broadcast %134 : vector<1x32xf32> to vector<16x32xf32>
    %153 = arith.mulf %151, %152 : vector<16x32xf32>
    %154 = vector.broadcast %135 : vector<1x32xf32> to vector<16x32xf32>
    %155 = arith.addf %153, %154 : vector<16x32xf32>
    %cst_71 = arith.constant 0.000000e+00 : f32
    %156 = vector.broadcast %cst_71 : f32 to vector<16x32xf32>
    %157 = arith.cmpf oge, %155, %156 : vector<16x32xf32>
    %cst_72 = arith.constant 0.00999999977 : f32
    %158 = vector.broadcast %cst_72 : f32 to vector<16x32xf32>
    %159 = arith.mulf %158, %155 : vector<16x32xf32>
    %160 = arith.select %157, %155, %159 : vector<16x32xi1>, vector<16x32xf32>
    %161 = arith.truncf %160 : vector<16x32xf32> to vector<16x32xbf16>
    %c1_73 = arith.constant 1 : index
    %c0_74 = arith.constant 0 : index
    %c0_75 = arith.constant 0 : index
    %162 = vector.load %arg8[%c1_73, %c0_74, %c0_75] : memref<7x32x32xbf16, #tpu.memory_space<vmem>>, vector<1x32x32xbf16>
    %163 = vector.shape_cast %162 : vector<1x32x32xbf16> to vector<32x32xbf16>
    %cst_76 = arith.constant dense<0.000000e+00> : vector<16x32xf32>
    %164 = tpu.matmul %161, %163, %cst_76 {dimension_numbers = #tpu.dot_dimension_numbers<[1], [0], [0], [1], [0, 0, 1, 1], [], []>} : vector<16x32xbf16>, vector<32x32xbf16>, vector<16x32xf32> -> vector<16x32xf32>
    %c1_77 = arith.constant 1 : index
    %c0_78 = arith.constant 0 : index
    %165 = vector.load %arg9[%c1_77, %c0_78] : memref<7x32xf32, #tpu.memory_space<vmem>>, vector<1x32xf32>
    %166 = vector.broadcast %165 : vector<1x32xf32> to vector<16x32xf32>
    %167 = arith.addf %164, %166 : vector<16x32xf32>
    %c4 = arith.constant 4 : index
    %c0_79 = arith.constant 0 : index
    %168 = vector.load %arg6[%c4, %c0_79] : memref<21x32xf32, #tpu.memory_space<vmem>>, vector<1x32xf32>
    %c4_80 = arith.constant 4 : index
    %c0_81 = arith.constant 0 : index
    %169 = vector.load %arg7[%c4_80, %c0_81] : memref<21x32xf32, #tpu.memory_space<vmem>>, vector<1x32xf32>
    %cst_82 = arith.constant dense<0.000000e+00> : vector<16xf32>
    %170 = vector.multi_reduction <add>, %167, %cst_82 [1] : vector<16x32xf32> to vector<16xf32>
    %171 = vector.shape_cast %170 : vector<16xf32> to vector<16x1xf32>
    %cst_83 = arith.constant 3.200000e+01 : f32
    %172 = vector.broadcast %cst_83 : f32 to vector<16x1xf32>
    %173 = arith.divf %171, %172 : vector<16x1xf32>
    %174 = vector.broadcast %173 : vector<16x1xf32> to vector<16x32xf32>
    %175 = arith.subf %167, %174 : vector<16x32xf32>
    %176 = arith.mulf %175, %175 : vector<16x32xf32>
    %cst_84 = arith.constant dense<0.000000e+00> : vector<16xf32>
    %177 = vector.multi_reduction <add>, %176, %cst_84 [1] : vector<16x32xf32> to vector<16xf32>
    %178 = vector.shape_cast %177 : vector<16xf32> to vector<16x1xf32>
    %cst_85 = arith.constant 3.200000e+01 : f32
    %179 = vector.broadcast %cst_85 : f32 to vector<16x1xf32>
    %180 = arith.divf %178, %179 : vector<16x1xf32>
    %cst_86 = arith.constant 9.99999974E-6 : f32
    %181 = vector.broadcast %cst_86 : f32 to vector<16x1xf32>
    %182 = arith.addf %180, %181 : vector<16x1xf32>
    %183 = math.rsqrt %182 : vector<16x1xf32>
    %184 = vector.broadcast %183 : vector<16x1xf32> to vector<16x32xf32>
    %185 = arith.mulf %175, %184 : vector<16x32xf32>
    %186 = vector.broadcast %168 : vector<1x32xf32> to vector<16x32xf32>
    %187 = arith.mulf %185, %186 : vector<16x32xf32>
    %188 = vector.broadcast %169 : vector<1x32xf32> to vector<16x32xf32>
    %189 = arith.addf %187, %188 : vector<16x32xf32>
    %cst_87 = arith.constant 0.000000e+00 : f32
    %190 = vector.broadcast %cst_87 : f32 to vector<16x32xf32>
    %191 = arith.cmpf oge, %189, %190 : vector<16x32xf32>
    %cst_88 = arith.constant 0.00999999977 : f32
    %192 = vector.broadcast %cst_88 : f32 to vector<16x32xf32>
    %193 = arith.mulf %192, %189 : vector<16x32xf32>
    %194 = arith.select %191, %189, %193 : vector<16x32xi1>, vector<16x32xf32>
    %195 = arith.truncf %194 : vector<16x32xf32> to vector<16x32xbf16>
    %196 = tpu.concatenate %19, %195 in 0 : vector<16x32xbf16>, vector<16x32xbf16> -> vector<32x32xbf16>
    %197 = vector.extract_strided_slice %196 {offsets = [14, 0], sizes = [16, 32], strides = [1, 1]} : vector<32x32xbf16> to vector<16x32xbf16>
    %198 = tpu.concatenate %197, %195 in 1 : vector<16x32xbf16>, vector<16x32xbf16> -> vector<16x64xbf16>
    %c1_89 = arith.constant 1 : index
    %c0_90 = arith.constant 0 : index
    %c0_91 = arith.constant 0 : index
    %199 = vector.load %arg10[%c1_89, %c0_90, %c0_91] : memref<7x64x32xbf16, #tpu.memory_space<vmem>>, vector<1x64x32xbf16>
    %200 = vector.shape_cast %199 : vector<1x64x32xbf16> to vector<64x32xbf16>
    %cst_92 = arith.constant dense<0.000000e+00> : vector<16x32xf32>
    %201 = tpu.matmul %198, %200, %cst_92 {dimension_numbers = #tpu.dot_dimension_numbers<[1], [0], [0], [1], [0, 0, 1, 1], [], []>} : vector<16x64xbf16>, vector<64x32xbf16>, vector<16x32xf32> -> vector<16x32xf32>
    %c1_93 = arith.constant 1 : index
    %c0_94 = arith.constant 0 : index
    %202 = vector.load %arg11[%c1_93, %c0_94] : memref<7x32xf32, #tpu.memory_space<vmem>>, vector<1x32xf32>
    %203 = vector.broadcast %202 : vector<1x32xf32> to vector<16x32xf32>
    %204 = arith.addf %201, %203 : vector<16x32xf32>
    %c5 = arith.constant 5 : index
    %c0_95 = arith.constant 0 : index
    %205 = vector.load %arg6[%c5, %c0_95] : memref<21x32xf32, #tpu.memory_space<vmem>>, vector<1x32xf32>
    %c5_96 = arith.constant 5 : index
    %c0_97 = arith.constant 0 : index
    %206 = vector.load %arg7[%c5_96, %c0_97] : memref<21x32xf32, #tpu.memory_space<vmem>>, vector<1x32xf32>
    %cst_98 = arith.constant dense<0.000000e+00> : vector<16xf32>
    %207 = vector.multi_reduction <add>, %204, %cst_98 [1] : vector<16x32xf32> to vector<16xf32>
    %208 = vector.shape_cast %207 : vector<16xf32> to vector<16x1xf32>
    %cst_99 = arith.constant 3.200000e+01 : f32
    %209 = vector.broadcast %cst_99 : f32 to vector<16x1xf32>
    %210 = arith.divf %208, %209 : vector<16x1xf32>
    %211 = vector.broadcast %210 : vector<16x1xf32> to vector<16x32xf32>
    %212 = arith.subf %204, %211 : vector<16x32xf32>
    %213 = arith.mulf %212, %212 : vector<16x32xf32>
    %cst_100 = arith.constant dense<0.000000e+00> : vector<16xf32>
    %214 = vector.multi_reduction <add>, %213, %cst_100 [1] : vector<16x32xf32> to vector<16xf32>
    %215 = vector.shape_cast %214 : vector<16xf32> to vector<16x1xf32>
    %cst_101 = arith.constant 3.200000e+01 : f32
    %216 = vector.broadcast %cst_101 : f32 to vector<16x1xf32>
    %217 = arith.divf %215, %216 : vector<16x1xf32>
    %cst_102 = arith.constant 9.99999974E-6 : f32
    %218 = vector.broadcast %cst_102 : f32 to vector<16x1xf32>
    %219 = arith.addf %217, %218 : vector<16x1xf32>
    %220 = math.rsqrt %219 : vector<16x1xf32>
    %221 = vector.broadcast %220 : vector<16x1xf32> to vector<16x32xf32>
    %222 = arith.mulf %212, %221 : vector<16x32xf32>
    %223 = vector.broadcast %205 : vector<1x32xf32> to vector<16x32xf32>
    %224 = arith.mulf %222, %223 : vector<16x32xf32>
    %225 = vector.broadcast %206 : vector<1x32xf32> to vector<16x32xf32>
    %226 = arith.addf %224, %225 : vector<16x32xf32>
    %cst_103 = arith.constant 0.000000e+00 : f32
    %227 = vector.broadcast %cst_103 : f32 to vector<16x32xf32>
    %228 = arith.cmpf oge, %226, %227 : vector<16x32xf32>
    %cst_104 = arith.constant 0.00999999977 : f32
    %229 = vector.broadcast %cst_104 : f32 to vector<16x32xf32>
    %230 = arith.mulf %229, %226 : vector<16x32xf32>
    %231 = arith.select %228, %226, %230 : vector<16x32xi1>, vector<16x32xf32>
    %232 = arith.truncf %231 : vector<16x32xf32> to vector<16x32xbf16>
    %c1_105 = arith.constant 1 : index
    %c0_106 = arith.constant 0 : index
    %c0_107 = arith.constant 0 : index
    %233 = vector.load %arg12[%c1_105, %c0_106, %c0_107] : memref<7x32x64xbf16, #tpu.memory_space<vmem>>, vector<1x32x64xbf16>
    %234 = vector.shape_cast %233 : vector<1x32x64xbf16> to vector<32x64xbf16>
    %cst_108 = arith.constant dense<0.000000e+00> : vector<16x64xf32>
    %235 = tpu.matmul %232, %234, %cst_108 {dimension_numbers = #tpu.dot_dimension_numbers<[1], [0], [0], [1], [0, 0, 1, 1], [], []>} : vector<16x32xbf16>, vector<32x64xbf16>, vector<16x64xf32> -> vector<16x64xf32>
    %c1_109 = arith.constant 1 : index
    %c0_110 = arith.constant 0 : index
    %236 = vector.load %arg13[%c1_109, %c0_110] : memref<7x64xf32, #tpu.memory_space<vmem>>, vector<1x64xf32>
    %237 = vector.broadcast %236 : vector<1x64xf32> to vector<16x64xf32>
    %238 = arith.addf %235, %237 : vector<16x64xf32>
    %239 = vector.extract_strided_slice %238 {offsets = [0, 0], sizes = [16, 32], strides = [1, 1]} : vector<16x64xf32> to vector<16x32xf32>
    %240 = vector.extract_strided_slice %238 {offsets = [0, 32], sizes = [16, 32], strides = [1, 1]} : vector<16x64xf32> to vector<16x32xf32>
    %241 = arith.negf %240 : vector<16x32xf32>
    %242 = math.exp %241 : vector<16x32xf32>
    %cst_111 = arith.constant 1.000000e+00 : f32
    %243 = vector.broadcast %cst_111 : f32 to vector<16x32xf32>
    %244 = arith.addf %243, %242 : vector<16x32xf32>
    %245 = arith.divf %243, %244 : vector<16x32xf32>
    %246 = arith.mulf %239, %245 : vector<16x32xf32>
    %247 = arith.addf %246, %133 : vector<16x32xf32>
    %c6 = arith.constant 6 : index
    %c0_112 = arith.constant 0 : index
    %248 = vector.load %arg6[%c6, %c0_112] : memref<21x32xf32, #tpu.memory_space<vmem>>, vector<1x32xf32>
    %c6_113 = arith.constant 6 : index
    %c0_114 = arith.constant 0 : index
    %249 = vector.load %arg7[%c6_113, %c0_114] : memref<21x32xf32, #tpu.memory_space<vmem>>, vector<1x32xf32>
    %cst_115 = arith.constant dense<0.000000e+00> : vector<16xf32>
    %250 = vector.multi_reduction <add>, %247, %cst_115 [1] : vector<16x32xf32> to vector<16xf32>
    %251 = vector.shape_cast %250 : vector<16xf32> to vector<16x1xf32>
    %cst_116 = arith.constant 3.200000e+01 : f32
    %252 = vector.broadcast %cst_116 : f32 to vector<16x1xf32>
    %253 = arith.divf %251, %252 : vector<16x1xf32>
    %254 = vector.broadcast %253 : vector<16x1xf32> to vector<16x32xf32>
    %255 = arith.subf %247, %254 : vector<16x32xf32>
    %256 = arith.mulf %255, %255 : vector<16x32xf32>
    %cst_117 = arith.constant dense<0.000000e+00> : vector<16xf32>
    %257 = vector.multi_reduction <add>, %256, %cst_117 [1] : vector<16x32xf32> to vector<16xf32>
    %258 = vector.shape_cast %257 : vector<16xf32> to vector<16x1xf32>
    %cst_118 = arith.constant 3.200000e+01 : f32
    %259 = vector.broadcast %cst_118 : f32 to vector<16x1xf32>
    %260 = arith.divf %258, %259 : vector<16x1xf32>
    %cst_119 = arith.constant 9.99999974E-6 : f32
    %261 = vector.broadcast %cst_119 : f32 to vector<16x1xf32>
    %262 = arith.addf %260, %261 : vector<16x1xf32>
    %263 = math.rsqrt %262 : vector<16x1xf32>
    %264 = vector.broadcast %263 : vector<16x1xf32> to vector<16x32xf32>
    %265 = arith.mulf %255, %264 : vector<16x32xf32>
    %266 = vector.broadcast %248 : vector<1x32xf32> to vector<16x32xf32>
    %267 = arith.mulf %265, %266 : vector<16x32xf32>
    %268 = vector.broadcast %249 : vector<1x32xf32> to vector<16x32xf32>
    %269 = arith.addf %267, %268 : vector<16x32xf32>
    %cst_120 = arith.constant 0.000000e+00 : f32
    %270 = vector.broadcast %cst_120 : f32 to vector<16x32xf32>
    %271 = arith.cmpf oge, %269, %270 : vector<16x32xf32>
    %cst_121 = arith.constant 0.00999999977 : f32
    %272 = vector.broadcast %cst_121 : f32 to vector<16x32xf32>
    %273 = arith.mulf %272, %269 : vector<16x32xf32>
    %274 = arith.select %271, %269, %273 : vector<16x32xi1>, vector<16x32xf32>
    %275 = arith.truncf %274 : vector<16x32xf32> to vector<16x32xbf16>
    %c2_122 = arith.constant 2 : index
    %c0_123 = arith.constant 0 : index
    %c0_124 = arith.constant 0 : index
    %276 = vector.load %arg8[%c2_122, %c0_123, %c0_124] : memref<7x32x32xbf16, #tpu.memory_space<vmem>>, vector<1x32x32xbf16>
    %277 = vector.shape_cast %276 : vector<1x32x32xbf16> to vector<32x32xbf16>
    %cst_125 = arith.constant dense<0.000000e+00> : vector<16x32xf32>
    %278 = tpu.matmul %275, %277, %cst_125 {dimension_numbers = #tpu.dot_dimension_numbers<[1], [0], [0], [1], [0, 0, 1, 1], [], []>} : vector<16x32xbf16>, vector<32x32xbf16>, vector<16x32xf32> -> vector<16x32xf32>
    %c2_126 = arith.constant 2 : index
    %c0_127 = arith.constant 0 : index
    %279 = vector.load %arg9[%c2_126, %c0_127] : memref<7x32xf32, #tpu.memory_space<vmem>>, vector<1x32xf32>
    %280 = vector.broadcast %279 : vector<1x32xf32> to vector<16x32xf32>
    %281 = arith.addf %278, %280 : vector<16x32xf32>
    %c7 = arith.constant 7 : index
    %c0_128 = arith.constant 0 : index
    %282 = vector.load %arg6[%c7, %c0_128] : memref<21x32xf32, #tpu.memory_space<vmem>>, vector<1x32xf32>
    %c7_129 = arith.constant 7 : index
    %c0_130 = arith.constant 0 : index
    %283 = vector.load %arg7[%c7_129, %c0_130] : memref<21x32xf32, #tpu.memory_space<vmem>>, vector<1x32xf32>
    %cst_131 = arith.constant dense<0.000000e+00> : vector<16xf32>
    %284 = vector.multi_reduction <add>, %281, %cst_131 [1] : vector<16x32xf32> to vector<16xf32>
    %285 = vector.shape_cast %284 : vector<16xf32> to vector<16x1xf32>
    %cst_132 = arith.constant 3.200000e+01 : f32
    %286 = vector.broadcast %cst_132 : f32 to vector<16x1xf32>
    %287 = arith.divf %285, %286 : vector<16x1xf32>
    %288 = vector.broadcast %287 : vector<16x1xf32> to vector<16x32xf32>
    %289 = arith.subf %281, %288 : vector<16x32xf32>
    %290 = arith.mulf %289, %289 : vector<16x32xf32>
    %cst_133 = arith.constant dense<0.000000e+00> : vector<16xf32>
    %291 = vector.multi_reduction <add>, %290, %cst_133 [1] : vector<16x32xf32> to vector<16xf32>
    %292 = vector.shape_cast %291 : vector<16xf32> to vector<16x1xf32>
    %cst_134 = arith.constant 3.200000e+01 : f32
    %293 = vector.broadcast %cst_134 : f32 to vector<16x1xf32>
    %294 = arith.divf %292, %293 : vector<16x1xf32>
    %cst_135 = arith.constant 9.99999974E-6 : f32
    %295 = vector.broadcast %cst_135 : f32 to vector<16x1xf32>
    %296 = arith.addf %294, %295 : vector<16x1xf32>
    %297 = math.rsqrt %296 : vector<16x1xf32>
    %298 = vector.broadcast %297 : vector<16x1xf32> to vector<16x32xf32>
    %299 = arith.mulf %289, %298 : vector<16x32xf32>
    %300 = vector.broadcast %282 : vector<1x32xf32> to vector<16x32xf32>
    %301 = arith.mulf %299, %300 : vector<16x32xf32>
    %302 = vector.broadcast %283 : vector<1x32xf32> to vector<16x32xf32>
    %303 = arith.addf %301, %302 : vector<16x32xf32>
    %cst_136 = arith.constant 0.000000e+00 : f32
    %304 = vector.broadcast %cst_136 : f32 to vector<16x32xf32>
    %305 = arith.cmpf oge, %303, %304 : vector<16x32xf32>
    %cst_137 = arith.constant 0.00999999977 : f32
    %306 = vector.broadcast %cst_137 : f32 to vector<16x32xf32>
    %307 = arith.mulf %306, %303 : vector<16x32xf32>
    %308 = arith.select %305, %303, %307 : vector<16x32xi1>, vector<16x32xf32>
    %309 = arith.truncf %308 : vector<16x32xf32> to vector<16x32xbf16>
    %310 = tpu.concatenate %19, %309 in 0 : vector<16x32xbf16>, vector<16x32xbf16> -> vector<32x32xbf16>
    %311 = vector.extract_strided_slice %310 {offsets = [12, 0], sizes = [16, 32], strides = [1, 1]} : vector<32x32xbf16> to vector<16x32xbf16>
    %312 = tpu.concatenate %311, %309 in 1 : vector<16x32xbf16>, vector<16x32xbf16> -> vector<16x64xbf16>
    %c2_138 = arith.constant 2 : index
    %c0_139 = arith.constant 0 : index
    %c0_140 = arith.constant 0 : index
    %313 = vector.load %arg10[%c2_138, %c0_139, %c0_140] : memref<7x64x32xbf16, #tpu.memory_space<vmem>>, vector<1x64x32xbf16>
    %314 = vector.shape_cast %313 : vector<1x64x32xbf16> to vector<64x32xbf16>
    %cst_141 = arith.constant dense<0.000000e+00> : vector<16x32xf32>
    %315 = tpu.matmul %312, %314, %cst_141 {dimension_numbers = #tpu.dot_dimension_numbers<[1], [0], [0], [1], [0, 0, 1, 1], [], []>} : vector<16x64xbf16>, vector<64x32xbf16>, vector<16x32xf32> -> vector<16x32xf32>
    %c2_142 = arith.constant 2 : index
    %c0_143 = arith.constant 0 : index
    %316 = vector.load %arg11[%c2_142, %c0_143] : memref<7x32xf32, #tpu.memory_space<vmem>>, vector<1x32xf32>
    %317 = vector.broadcast %316 : vector<1x32xf32> to vector<16x32xf32>
    %318 = arith.addf %315, %317 : vector<16x32xf32>
    %c8 = arith.constant 8 : index
    %c0_144 = arith.constant 0 : index
    %319 = vector.load %arg6[%c8, %c0_144] : memref<21x32xf32, #tpu.memory_space<vmem>>, vector<1x32xf32>
    %c8_145 = arith.constant 8 : index
    %c0_146 = arith.constant 0 : index
    %320 = vector.load %arg7[%c8_145, %c0_146] : memref<21x32xf32, #tpu.memory_space<vmem>>, vector<1x32xf32>
    %cst_147 = arith.constant dense<0.000000e+00> : vector<16xf32>
    %321 = vector.multi_reduction <add>, %318, %cst_147 [1] : vector<16x32xf32> to vector<16xf32>
    %322 = vector.shape_cast %321 : vector<16xf32> to vector<16x1xf32>
    %cst_148 = arith.constant 3.200000e+01 : f32
    %323 = vector.broadcast %cst_148 : f32 to vector<16x1xf32>
    %324 = arith.divf %322, %323 : vector<16x1xf32>
    %325 = vector.broadcast %324 : vector<16x1xf32> to vector<16x32xf32>
    %326 = arith.subf %318, %325 : vector<16x32xf32>
    %327 = arith.mulf %326, %326 : vector<16x32xf32>
    %cst_149 = arith.constant dense<0.000000e+00> : vector<16xf32>
    %328 = vector.multi_reduction <add>, %327, %cst_149 [1] : vector<16x32xf32> to vector<16xf32>
    %329 = vector.shape_cast %328 : vector<16xf32> to vector<16x1xf32>
    %cst_150 = arith.constant 3.200000e+01 : f32
    %330 = vector.broadcast %cst_150 : f32 to vector<16x1xf32>
    %331 = arith.divf %329, %330 : vector<16x1xf32>
    %cst_151 = arith.constant 9.99999974E-6 : f32
    %332 = vector.broadcast %cst_151 : f32 to vector<16x1xf32>
    %333 = arith.addf %331, %332 : vector<16x1xf32>
    %334 = math.rsqrt %333 : vector<16x1xf32>
    %335 = vector.broadcast %334 : vector<16x1xf32> to vector<16x32xf32>
    %336 = arith.mulf %326, %335 : vector<16x32xf32>
    %337 = vector.broadcast %319 : vector<1x32xf32> to vector<16x32xf32>
    %338 = arith.mulf %336, %337 : vector<16x32xf32>
    %339 = vector.broadcast %320 : vector<1x32xf32> to vector<16x32xf32>
    %340 = arith.addf %338, %339 : vector<16x32xf32>
    %cst_152 = arith.constant 0.000000e+00 : f32
    %341 = vector.broadcast %cst_152 : f32 to vector<16x32xf32>
    %342 = arith.cmpf oge, %340, %341 : vector<16x32xf32>
    %cst_153 = arith.constant 0.00999999977 : f32
    %343 = vector.broadcast %cst_153 : f32 to vector<16x32xf32>
    %344 = arith.mulf %343, %340 : vector<16x32xf32>
    %345 = arith.select %342, %340, %344 : vector<16x32xi1>, vector<16x32xf32>
    %346 = arith.truncf %345 : vector<16x32xf32> to vector<16x32xbf16>
    %c2_154 = arith.constant 2 : index
    %c0_155 = arith.constant 0 : index
    %c0_156 = arith.constant 0 : index
    %347 = vector.load %arg12[%c2_154, %c0_155, %c0_156] : memref<7x32x64xbf16, #tpu.memory_space<vmem>>, vector<1x32x64xbf16>
    %348 = vector.shape_cast %347 : vector<1x32x64xbf16> to vector<32x64xbf16>
    %cst_157 = arith.constant dense<0.000000e+00> : vector<16x64xf32>
    %349 = tpu.matmul %346, %348, %cst_157 {dimension_numbers = #tpu.dot_dimension_numbers<[1], [0], [0], [1], [0, 0, 1, 1], [], []>} : vector<16x32xbf16>, vector<32x64xbf16>, vector<16x64xf32> -> vector<16x64xf32>
    %c2_158 = arith.constant 2 : index
    %c0_159 = arith.constant 0 : index
    %350 = vector.load %arg13[%c2_158, %c0_159] : memref<7x64xf32, #tpu.memory_space<vmem>>, vector<1x64xf32>
    %351 = vector.broadcast %350 : vector<1x64xf32> to vector<16x64xf32>
    %352 = arith.addf %349, %351 : vector<16x64xf32>
    %353 = vector.extract_strided_slice %352 {offsets = [0, 0], sizes = [16, 32], strides = [1, 1]} : vector<16x64xf32> to vector<16x32xf32>
    %354 = vector.extract_strided_slice %352 {offsets = [0, 32], sizes = [16, 32], strides = [1, 1]} : vector<16x64xf32> to vector<16x32xf32>
    %355 = arith.negf %354 : vector<16x32xf32>
    %356 = math.exp %355 : vector<16x32xf32>
    %cst_160 = arith.constant 1.000000e+00 : f32
    %357 = vector.broadcast %cst_160 : f32 to vector<16x32xf32>
    %358 = arith.addf %357, %356 : vector<16x32xf32>
    %359 = arith.divf %357, %358 : vector<16x32xf32>
    %360 = arith.mulf %353, %359 : vector<16x32xf32>
    %361 = arith.addf %360, %247 : vector<16x32xf32>
    %c9 = arith.constant 9 : index
    %c0_161 = arith.constant 0 : index
    %362 = vector.load %arg6[%c9, %c0_161] : memref<21x32xf32, #tpu.memory_space<vmem>>, vector<1x32xf32>
    %c9_162 = arith.constant 9 : index
    %c0_163 = arith.constant 0 : index
    %363 = vector.load %arg7[%c9_162, %c0_163] : memref<21x32xf32, #tpu.memory_space<vmem>>, vector<1x32xf32>
    %cst_164 = arith.constant dense<0.000000e+00> : vector<16xf32>
    %364 = vector.multi_reduction <add>, %361, %cst_164 [1] : vector<16x32xf32> to vector<16xf32>
    %365 = vector.shape_cast %364 : vector<16xf32> to vector<16x1xf32>
    %cst_165 = arith.constant 3.200000e+01 : f32
    %366 = vector.broadcast %cst_165 : f32 to vector<16x1xf32>
    %367 = arith.divf %365, %366 : vector<16x1xf32>
    %368 = vector.broadcast %367 : vector<16x1xf32> to vector<16x32xf32>
    %369 = arith.subf %361, %368 : vector<16x32xf32>
    %370 = arith.mulf %369, %369 : vector<16x32xf32>
    %cst_166 = arith.constant dense<0.000000e+00> : vector<16xf32>
    %371 = vector.multi_reduction <add>, %370, %cst_166 [1] : vector<16x32xf32> to vector<16xf32>
    %372 = vector.shape_cast %371 : vector<16xf32> to vector<16x1xf32>
    %cst_167 = arith.constant 3.200000e+01 : f32
    %373 = vector.broadcast %cst_167 : f32 to vector<16x1xf32>
    %374 = arith.divf %372, %373 : vector<16x1xf32>
    %cst_168 = arith.constant 9.99999974E-6 : f32
    %375 = vector.broadcast %cst_168 : f32 to vector<16x1xf32>
    %376 = arith.addf %374, %375 : vector<16x1xf32>
    %377 = math.rsqrt %376 : vector<16x1xf32>
    %378 = vector.broadcast %377 : vector<16x1xf32> to vector<16x32xf32>
    %379 = arith.mulf %369, %378 : vector<16x32xf32>
    %380 = vector.broadcast %362 : vector<1x32xf32> to vector<16x32xf32>
    %381 = arith.mulf %379, %380 : vector<16x32xf32>
    %382 = vector.broadcast %363 : vector<1x32xf32> to vector<16x32xf32>
    %383 = arith.addf %381, %382 : vector<16x32xf32>
    %cst_169 = arith.constant 0.000000e+00 : f32
    %384 = vector.broadcast %cst_169 : f32 to vector<16x32xf32>
    %385 = arith.cmpf oge, %383, %384 : vector<16x32xf32>
    %cst_170 = arith.constant 0.00999999977 : f32
    %386 = vector.broadcast %cst_170 : f32 to vector<16x32xf32>
    %387 = arith.mulf %386, %383 : vector<16x32xf32>
    %388 = arith.select %385, %383, %387 : vector<16x32xi1>, vector<16x32xf32>
    %389 = arith.truncf %388 : vector<16x32xf32> to vector<16x32xbf16>
    %c3_171 = arith.constant 3 : index
    %c0_172 = arith.constant 0 : index
    %c0_173 = arith.constant 0 : index
    %390 = vector.load %arg8[%c3_171, %c0_172, %c0_173] : memref<7x32x32xbf16, #tpu.memory_space<vmem>>, vector<1x32x32xbf16>
    %391 = vector.shape_cast %390 : vector<1x32x32xbf16> to vector<32x32xbf16>
    %cst_174 = arith.constant dense<0.000000e+00> : vector<16x32xf32>
    %392 = tpu.matmul %389, %391, %cst_174 {dimension_numbers = #tpu.dot_dimension_numbers<[1], [0], [0], [1], [0, 0, 1, 1], [], []>} : vector<16x32xbf16>, vector<32x32xbf16>, vector<16x32xf32> -> vector<16x32xf32>
    %c3_175 = arith.constant 3 : index
    %c0_176 = arith.constant 0 : index
    %393 = vector.load %arg9[%c3_175, %c0_176] : memref<7x32xf32, #tpu.memory_space<vmem>>, vector<1x32xf32>
    %394 = vector.broadcast %393 : vector<1x32xf32> to vector<16x32xf32>
    %395 = arith.addf %392, %394 : vector<16x32xf32>
    %c10 = arith.constant 10 : index
    %c0_177 = arith.constant 0 : index
    %396 = vector.load %arg6[%c10, %c0_177] : memref<21x32xf32, #tpu.memory_space<vmem>>, vector<1x32xf32>
    %c10_178 = arith.constant 10 : index
    %c0_179 = arith.constant 0 : index
    %397 = vector.load %arg7[%c10_178, %c0_179] : memref<21x32xf32, #tpu.memory_space<vmem>>, vector<1x32xf32>
    %cst_180 = arith.constant dense<0.000000e+00> : vector<16xf32>
    %398 = vector.multi_reduction <add>, %395, %cst_180 [1] : vector<16x32xf32> to vector<16xf32>
    %399 = vector.shape_cast %398 : vector<16xf32> to vector<16x1xf32>
    %cst_181 = arith.constant 3.200000e+01 : f32
    %400 = vector.broadcast %cst_181 : f32 to vector<16x1xf32>
    %401 = arith.divf %399, %400 : vector<16x1xf32>
    %402 = vector.broadcast %401 : vector<16x1xf32> to vector<16x32xf32>
    %403 = arith.subf %395, %402 : vector<16x32xf32>
    %404 = arith.mulf %403, %403 : vector<16x32xf32>
    %cst_182 = arith.constant dense<0.000000e+00> : vector<16xf32>
    %405 = vector.multi_reduction <add>, %404, %cst_182 [1] : vector<16x32xf32> to vector<16xf32>
    %406 = vector.shape_cast %405 : vector<16xf32> to vector<16x1xf32>
    %cst_183 = arith.constant 3.200000e+01 : f32
    %407 = vector.broadcast %cst_183 : f32 to vector<16x1xf32>
    %408 = arith.divf %406, %407 : vector<16x1xf32>
    %cst_184 = arith.constant 9.99999974E-6 : f32
    %409 = vector.broadcast %cst_184 : f32 to vector<16x1xf32>
    %410 = arith.addf %408, %409 : vector<16x1xf32>
    %411 = math.rsqrt %410 : vector<16x1xf32>
    %412 = vector.broadcast %411 : vector<16x1xf32> to vector<16x32xf32>
    %413 = arith.mulf %403, %412 : vector<16x32xf32>
    %414 = vector.broadcast %396 : vector<1x32xf32> to vector<16x32xf32>
    %415 = arith.mulf %413, %414 : vector<16x32xf32>
    %416 = vector.broadcast %397 : vector<1x32xf32> to vector<16x32xf32>
    %417 = arith.addf %415, %416 : vector<16x32xf32>
    %cst_185 = arith.constant 0.000000e+00 : f32
    %418 = vector.broadcast %cst_185 : f32 to vector<16x32xf32>
    %419 = arith.cmpf oge, %417, %418 : vector<16x32xf32>
    %cst_186 = arith.constant 0.00999999977 : f32
    %420 = vector.broadcast %cst_186 : f32 to vector<16x32xf32>
    %421 = arith.mulf %420, %417 : vector<16x32xf32>
    %422 = arith.select %419, %417, %421 : vector<16x32xi1>, vector<16x32xf32>
    %423 = arith.truncf %422 : vector<16x32xf32> to vector<16x32xbf16>
    %424 = tpu.concatenate %19, %423 in 0 : vector<16x32xbf16>, vector<16x32xbf16> -> vector<32x32xbf16>
    %425 = vector.extract_strided_slice %424 {offsets = [8, 0], sizes = [16, 32], strides = [1, 1]} : vector<32x32xbf16> to vector<16x32xbf16>
    %426 = tpu.concatenate %425, %423 in 1 : vector<16x32xbf16>, vector<16x32xbf16> -> vector<16x64xbf16>
    %c3_187 = arith.constant 3 : index
    %c0_188 = arith.constant 0 : index
    %c0_189 = arith.constant 0 : index
    %427 = vector.load %arg10[%c3_187, %c0_188, %c0_189] : memref<7x64x32xbf16, #tpu.memory_space<vmem>>, vector<1x64x32xbf16>
    %428 = vector.shape_cast %427 : vector<1x64x32xbf16> to vector<64x32xbf16>
    %cst_190 = arith.constant dense<0.000000e+00> : vector<16x32xf32>
    %429 = tpu.matmul %426, %428, %cst_190 {dimension_numbers = #tpu.dot_dimension_numbers<[1], [0], [0], [1], [0, 0, 1, 1], [], []>} : vector<16x64xbf16>, vector<64x32xbf16>, vector<16x32xf32> -> vector<16x32xf32>
    %c3_191 = arith.constant 3 : index
    %c0_192 = arith.constant 0 : index
    %430 = vector.load %arg11[%c3_191, %c0_192] : memref<7x32xf32, #tpu.memory_space<vmem>>, vector<1x32xf32>
    %431 = vector.broadcast %430 : vector<1x32xf32> to vector<16x32xf32>
    %432 = arith.addf %429, %431 : vector<16x32xf32>
    %c11 = arith.constant 11 : index
    %c0_193 = arith.constant 0 : index
    %433 = vector.load %arg6[%c11, %c0_193] : memref<21x32xf32, #tpu.memory_space<vmem>>, vector<1x32xf32>
    %c11_194 = arith.constant 11 : index
    %c0_195 = arith.constant 0 : index
    %434 = vector.load %arg7[%c11_194, %c0_195] : memref<21x32xf32, #tpu.memory_space<vmem>>, vector<1x32xf32>
    %cst_196 = arith.constant dense<0.000000e+00> : vector<16xf32>
    %435 = vector.multi_reduction <add>, %432, %cst_196 [1] : vector<16x32xf32> to vector<16xf32>
    %436 = vector.shape_cast %435 : vector<16xf32> to vector<16x1xf32>
    %cst_197 = arith.constant 3.200000e+01 : f32
    %437 = vector.broadcast %cst_197 : f32 to vector<16x1xf32>
    %438 = arith.divf %436, %437 : vector<16x1xf32>
    %439 = vector.broadcast %438 : vector<16x1xf32> to vector<16x32xf32>
    %440 = arith.subf %432, %439 : vector<16x32xf32>
    %441 = arith.mulf %440, %440 : vector<16x32xf32>
    %cst_198 = arith.constant dense<0.000000e+00> : vector<16xf32>
    %442 = vector.multi_reduction <add>, %441, %cst_198 [1] : vector<16x32xf32> to vector<16xf32>
    %443 = vector.shape_cast %442 : vector<16xf32> to vector<16x1xf32>
    %cst_199 = arith.constant 3.200000e+01 : f32
    %444 = vector.broadcast %cst_199 : f32 to vector<16x1xf32>
    %445 = arith.divf %443, %444 : vector<16x1xf32>
    %cst_200 = arith.constant 9.99999974E-6 : f32
    %446 = vector.broadcast %cst_200 : f32 to vector<16x1xf32>
    %447 = arith.addf %445, %446 : vector<16x1xf32>
    %448 = math.rsqrt %447 : vector<16x1xf32>
    %449 = vector.broadcast %448 : vector<16x1xf32> to vector<16x32xf32>
    %450 = arith.mulf %440, %449 : vector<16x32xf32>
    %451 = vector.broadcast %433 : vector<1x32xf32> to vector<16x32xf32>
    %452 = arith.mulf %450, %451 : vector<16x32xf32>
    %453 = vector.broadcast %434 : vector<1x32xf32> to vector<16x32xf32>
    %454 = arith.addf %452, %453 : vector<16x32xf32>
    %cst_201 = arith.constant 0.000000e+00 : f32
    %455 = vector.broadcast %cst_201 : f32 to vector<16x32xf32>
    %456 = arith.cmpf oge, %454, %455 : vector<16x32xf32>
    %cst_202 = arith.constant 0.00999999977 : f32
    %457 = vector.broadcast %cst_202 : f32 to vector<16x32xf32>
    %458 = arith.mulf %457, %454 : vector<16x32xf32>
    %459 = arith.select %456, %454, %458 : vector<16x32xi1>, vector<16x32xf32>
    %460 = arith.truncf %459 : vector<16x32xf32> to vector<16x32xbf16>
    %c3_203 = arith.constant 3 : index
    %c0_204 = arith.constant 0 : index
    %c0_205 = arith.constant 0 : index
    %461 = vector.load %arg12[%c3_203, %c0_204, %c0_205] : memref<7x32x64xbf16, #tpu.memory_space<vmem>>, vector<1x32x64xbf16>
    %462 = vector.shape_cast %461 : vector<1x32x64xbf16> to vector<32x64xbf16>
    %cst_206 = arith.constant dense<0.000000e+00> : vector<16x64xf32>
    %463 = tpu.matmul %460, %462, %cst_206 {dimension_numbers = #tpu.dot_dimension_numbers<[1], [0], [0], [1], [0, 0, 1, 1], [], []>} : vector<16x32xbf16>, vector<32x64xbf16>, vector<16x64xf32> -> vector<16x64xf32>
    %c3_207 = arith.constant 3 : index
    %c0_208 = arith.constant 0 : index
    %464 = vector.load %arg13[%c3_207, %c0_208] : memref<7x64xf32, #tpu.memory_space<vmem>>, vector<1x64xf32>
    %465 = vector.broadcast %464 : vector<1x64xf32> to vector<16x64xf32>
    %466 = arith.addf %463, %465 : vector<16x64xf32>
    %467 = vector.extract_strided_slice %466 {offsets = [0, 0], sizes = [16, 32], strides = [1, 1]} : vector<16x64xf32> to vector<16x32xf32>
    %468 = vector.extract_strided_slice %466 {offsets = [0, 32], sizes = [16, 32], strides = [1, 1]} : vector<16x64xf32> to vector<16x32xf32>
    %469 = arith.negf %468 : vector<16x32xf32>
    %470 = math.exp %469 : vector<16x32xf32>
    %cst_209 = arith.constant 1.000000e+00 : f32
    %471 = vector.broadcast %cst_209 : f32 to vector<16x32xf32>
    %472 = arith.addf %471, %470 : vector<16x32xf32>
    %473 = arith.divf %471, %472 : vector<16x32xf32>
    %474 = arith.mulf %467, %473 : vector<16x32xf32>
    %475 = arith.addf %474, %361 : vector<16x32xf32>
    %c12 = arith.constant 12 : index
    %c0_210 = arith.constant 0 : index
    %476 = vector.load %arg6[%c12, %c0_210] : memref<21x32xf32, #tpu.memory_space<vmem>>, vector<1x32xf32>
    %c12_211 = arith.constant 12 : index
    %c0_212 = arith.constant 0 : index
    %477 = vector.load %arg7[%c12_211, %c0_212] : memref<21x32xf32, #tpu.memory_space<vmem>>, vector<1x32xf32>
    %cst_213 = arith.constant dense<0.000000e+00> : vector<16xf32>
    %478 = vector.multi_reduction <add>, %475, %cst_213 [1] : vector<16x32xf32> to vector<16xf32>
    %479 = vector.shape_cast %478 : vector<16xf32> to vector<16x1xf32>
    %cst_214 = arith.constant 3.200000e+01 : f32
    %480 = vector.broadcast %cst_214 : f32 to vector<16x1xf32>
    %481 = arith.divf %479, %480 : vector<16x1xf32>
    %482 = vector.broadcast %481 : vector<16x1xf32> to vector<16x32xf32>
    %483 = arith.subf %475, %482 : vector<16x32xf32>
    %484 = arith.mulf %483, %483 : vector<16x32xf32>
    %cst_215 = arith.constant dense<0.000000e+00> : vector<16xf32>
    %485 = vector.multi_reduction <add>, %484, %cst_215 [1] : vector<16x32xf32> to vector<16xf32>
    %486 = vector.shape_cast %485 : vector<16xf32> to vector<16x1xf32>
    %cst_216 = arith.constant 3.200000e+01 : f32
    %487 = vector.broadcast %cst_216 : f32 to vector<16x1xf32>
    %488 = arith.divf %486, %487 : vector<16x1xf32>
    %cst_217 = arith.constant 9.99999974E-6 : f32
    %489 = vector.broadcast %cst_217 : f32 to vector<16x1xf32>
    %490 = arith.addf %488, %489 : vector<16x1xf32>
    %491 = math.rsqrt %490 : vector<16x1xf32>
    %492 = vector.broadcast %491 : vector<16x1xf32> to vector<16x32xf32>
    %493 = arith.mulf %483, %492 : vector<16x32xf32>
    %494 = vector.broadcast %476 : vector<1x32xf32> to vector<16x32xf32>
    %495 = arith.mulf %493, %494 : vector<16x32xf32>
    %496 = vector.broadcast %477 : vector<1x32xf32> to vector<16x32xf32>
    %497 = arith.addf %495, %496 : vector<16x32xf32>
    %cst_218 = arith.constant 0.000000e+00 : f32
    %498 = vector.broadcast %cst_218 : f32 to vector<16x32xf32>
    %499 = arith.cmpf oge, %497, %498 : vector<16x32xf32>
    %cst_219 = arith.constant 0.00999999977 : f32
    %500 = vector.broadcast %cst_219 : f32 to vector<16x32xf32>
    %501 = arith.mulf %500, %497 : vector<16x32xf32>
    %502 = arith.select %499, %497, %501 : vector<16x32xi1>, vector<16x32xf32>
    %503 = arith.truncf %502 : vector<16x32xf32> to vector<16x32xbf16>
    %c4_220 = arith.constant 4 : index
    %c0_221 = arith.constant 0 : index
    %c0_222 = arith.constant 0 : index
    %504 = vector.load %arg8[%c4_220, %c0_221, %c0_222] : memref<7x32x32xbf16, #tpu.memory_space<vmem>>, vector<1x32x32xbf16>
    %505 = vector.shape_cast %504 : vector<1x32x32xbf16> to vector<32x32xbf16>
    %cst_223 = arith.constant dense<0.000000e+00> : vector<16x32xf32>
    %506 = tpu.matmul %503, %505, %cst_223 {dimension_numbers = #tpu.dot_dimension_numbers<[1], [0], [0], [1], [0, 0, 1, 1], [], []>} : vector<16x32xbf16>, vector<32x32xbf16>, vector<16x32xf32> -> vector<16x32xf32>
    %c4_224 = arith.constant 4 : index
    %c0_225 = arith.constant 0 : index
    %507 = vector.load %arg9[%c4_224, %c0_225] : memref<7x32xf32, #tpu.memory_space<vmem>>, vector<1x32xf32>
    %508 = vector.broadcast %507 : vector<1x32xf32> to vector<16x32xf32>
    %509 = arith.addf %506, %508 : vector<16x32xf32>
    %c13 = arith.constant 13 : index
    %c0_226 = arith.constant 0 : index
    %510 = vector.load %arg6[%c13, %c0_226] : memref<21x32xf32, #tpu.memory_space<vmem>>, vector<1x32xf32>
    %c13_227 = arith.constant 13 : index
    %c0_228 = arith.constant 0 : index
    %511 = vector.load %arg7[%c13_227, %c0_228] : memref<21x32xf32, #tpu.memory_space<vmem>>, vector<1x32xf32>
    %cst_229 = arith.constant dense<0.000000e+00> : vector<16xf32>
    %512 = vector.multi_reduction <add>, %509, %cst_229 [1] : vector<16x32xf32> to vector<16xf32>
    %513 = vector.shape_cast %512 : vector<16xf32> to vector<16x1xf32>
    %cst_230 = arith.constant 3.200000e+01 : f32
    %514 = vector.broadcast %cst_230 : f32 to vector<16x1xf32>
    %515 = arith.divf %513, %514 : vector<16x1xf32>
    %516 = vector.broadcast %515 : vector<16x1xf32> to vector<16x32xf32>
    %517 = arith.subf %509, %516 : vector<16x32xf32>
    %518 = arith.mulf %517, %517 : vector<16x32xf32>
    %cst_231 = arith.constant dense<0.000000e+00> : vector<16xf32>
    %519 = vector.multi_reduction <add>, %518, %cst_231 [1] : vector<16x32xf32> to vector<16xf32>
    %520 = vector.shape_cast %519 : vector<16xf32> to vector<16x1xf32>
    %cst_232 = arith.constant 3.200000e+01 : f32
    %521 = vector.broadcast %cst_232 : f32 to vector<16x1xf32>
    %522 = arith.divf %520, %521 : vector<16x1xf32>
    %cst_233 = arith.constant 9.99999974E-6 : f32
    %523 = vector.broadcast %cst_233 : f32 to vector<16x1xf32>
    %524 = arith.addf %522, %523 : vector<16x1xf32>
    %525 = math.rsqrt %524 : vector<16x1xf32>
    %526 = vector.broadcast %525 : vector<16x1xf32> to vector<16x32xf32>
    %527 = arith.mulf %517, %526 : vector<16x32xf32>
    %528 = vector.broadcast %510 : vector<1x32xf32> to vector<16x32xf32>
    %529 = arith.mulf %527, %528 : vector<16x32xf32>
    %530 = vector.broadcast %511 : vector<1x32xf32> to vector<16x32xf32>
    %531 = arith.addf %529, %530 : vector<16x32xf32>
    %cst_234 = arith.constant 0.000000e+00 : f32
    %532 = vector.broadcast %cst_234 : f32 to vector<16x32xf32>
    %533 = arith.cmpf oge, %531, %532 : vector<16x32xf32>
    %cst_235 = arith.constant 0.00999999977 : f32
    %534 = vector.broadcast %cst_235 : f32 to vector<16x32xf32>
    %535 = arith.mulf %534, %531 : vector<16x32xf32>
    %536 = arith.select %533, %531, %535 : vector<16x32xi1>, vector<16x32xf32>
    %537 = arith.truncf %536 : vector<16x32xf32> to vector<16x32xbf16>
    %538 = tpu.concatenate %19, %537 in 1 : vector<16x32xbf16>, vector<16x32xbf16> -> vector<16x64xbf16>
    %c4_236 = arith.constant 4 : index
    %c0_237 = arith.constant 0 : index
    %c0_238 = arith.constant 0 : index
    %539 = vector.load %arg10[%c4_236, %c0_237, %c0_238] : memref<7x64x32xbf16, #tpu.memory_space<vmem>>, vector<1x64x32xbf16>
    %540 = vector.shape_cast %539 : vector<1x64x32xbf16> to vector<64x32xbf16>
    %cst_239 = arith.constant dense<0.000000e+00> : vector<16x32xf32>
    %541 = tpu.matmul %538, %540, %cst_239 {dimension_numbers = #tpu.dot_dimension_numbers<[1], [0], [0], [1], [0, 0, 1, 1], [], []>} : vector<16x64xbf16>, vector<64x32xbf16>, vector<16x32xf32> -> vector<16x32xf32>
    %c4_240 = arith.constant 4 : index
    %c0_241 = arith.constant 0 : index
    %542 = vector.load %arg11[%c4_240, %c0_241] : memref<7x32xf32, #tpu.memory_space<vmem>>, vector<1x32xf32>
    %543 = vector.broadcast %542 : vector<1x32xf32> to vector<16x32xf32>
    %544 = arith.addf %541, %543 : vector<16x32xf32>
    %c14 = arith.constant 14 : index
    %c0_242 = arith.constant 0 : index
    %545 = vector.load %arg6[%c14, %c0_242] : memref<21x32xf32, #tpu.memory_space<vmem>>, vector<1x32xf32>
    %c14_243 = arith.constant 14 : index
    %c0_244 = arith.constant 0 : index
    %546 = vector.load %arg7[%c14_243, %c0_244] : memref<21x32xf32, #tpu.memory_space<vmem>>, vector<1x32xf32>
    %cst_245 = arith.constant dense<0.000000e+00> : vector<16xf32>
    %547 = vector.multi_reduction <add>, %544, %cst_245 [1] : vector<16x32xf32> to vector<16xf32>
    %548 = vector.shape_cast %547 : vector<16xf32> to vector<16x1xf32>
    %cst_246 = arith.constant 3.200000e+01 : f32
    %549 = vector.broadcast %cst_246 : f32 to vector<16x1xf32>
    %550 = arith.divf %548, %549 : vector<16x1xf32>
    %551 = vector.broadcast %550 : vector<16x1xf32> to vector<16x32xf32>
    %552 = arith.subf %544, %551 : vector<16x32xf32>
    %553 = arith.mulf %552, %552 : vector<16x32xf32>
    %cst_247 = arith.constant dense<0.000000e+00> : vector<16xf32>
    %554 = vector.multi_reduction <add>, %553, %cst_247 [1] : vector<16x32xf32> to vector<16xf32>
    %555 = vector.shape_cast %554 : vector<16xf32> to vector<16x1xf32>
    %cst_248 = arith.constant 3.200000e+01 : f32
    %556 = vector.broadcast %cst_248 : f32 to vector<16x1xf32>
    %557 = arith.divf %555, %556 : vector<16x1xf32>
    %cst_249 = arith.constant 9.99999974E-6 : f32
    %558 = vector.broadcast %cst_249 : f32 to vector<16x1xf32>
    %559 = arith.addf %557, %558 : vector<16x1xf32>
    %560 = math.rsqrt %559 : vector<16x1xf32>
    %561 = vector.broadcast %560 : vector<16x1xf32> to vector<16x32xf32>
    %562 = arith.mulf %552, %561 : vector<16x32xf32>
    %563 = vector.broadcast %545 : vector<1x32xf32> to vector<16x32xf32>
    %564 = arith.mulf %562, %563 : vector<16x32xf32>
    %565 = vector.broadcast %546 : vector<1x32xf32> to vector<16x32xf32>
    %566 = arith.addf %564, %565 : vector<16x32xf32>
    %cst_250 = arith.constant 0.000000e+00 : f32
    %567 = vector.broadcast %cst_250 : f32 to vector<16x32xf32>
    %568 = arith.cmpf oge, %566, %567 : vector<16x32xf32>
    %cst_251 = arith.constant 0.00999999977 : f32
    %569 = vector.broadcast %cst_251 : f32 to vector<16x32xf32>
    %570 = arith.mulf %569, %566 : vector<16x32xf32>
    %571 = arith.select %568, %566, %570 : vector<16x32xi1>, vector<16x32xf32>
    %572 = arith.truncf %571 : vector<16x32xf32> to vector<16x32xbf16>
    %c4_252 = arith.constant 4 : index
    %c0_253 = arith.constant 0 : index
    %c0_254 = arith.constant 0 : index
    %573 = vector.load %arg12[%c4_252, %c0_253, %c0_254] : memref<7x32x64xbf16, #tpu.memory_space<vmem>>, vector<1x32x64xbf16>
    %574 = vector.shape_cast %573 : vector<1x32x64xbf16> to vector<32x64xbf16>
    %cst_255 = arith.constant dense<0.000000e+00> : vector<16x64xf32>
    %575 = tpu.matmul %572, %574, %cst_255 {dimension_numbers = #tpu.dot_dimension_numbers<[1], [0], [0], [1], [0, 0, 1, 1], [], []>} : vector<16x32xbf16>, vector<32x64xbf16>, vector<16x64xf32> -> vector<16x64xf32>
    %c4_256 = arith.constant 4 : index
    %c0_257 = arith.constant 0 : index
    %576 = vector.load %arg13[%c4_256, %c0_257] : memref<7x64xf32, #tpu.memory_space<vmem>>, vector<1x64xf32>
    %577 = vector.broadcast %576 : vector<1x64xf32> to vector<16x64xf32>
    %578 = arith.addf %575, %577 : vector<16x64xf32>
    %579 = vector.extract_strided_slice %578 {offsets = [0, 0], sizes = [16, 32], strides = [1, 1]} : vector<16x64xf32> to vector<16x32xf32>
    %580 = vector.extract_strided_slice %578 {offsets = [0, 32], sizes = [16, 32], strides = [1, 1]} : vector<16x64xf32> to vector<16x32xf32>
    %581 = arith.negf %580 : vector<16x32xf32>
    %582 = math.exp %581 : vector<16x32xf32>
    %cst_258 = arith.constant 1.000000e+00 : f32
    %583 = vector.broadcast %cst_258 : f32 to vector<16x32xf32>
    %584 = arith.addf %583, %582 : vector<16x32xf32>
    %585 = arith.divf %583, %584 : vector<16x32xf32>
    %586 = arith.mulf %579, %585 : vector<16x32xf32>
    %587 = arith.addf %586, %475 : vector<16x32xf32>
    %c15 = arith.constant 15 : index
    %c0_259 = arith.constant 0 : index
    %588 = vector.load %arg6[%c15, %c0_259] : memref<21x32xf32, #tpu.memory_space<vmem>>, vector<1x32xf32>
    %c15_260 = arith.constant 15 : index
    %c0_261 = arith.constant 0 : index
    %589 = vector.load %arg7[%c15_260, %c0_261] : memref<21x32xf32, #tpu.memory_space<vmem>>, vector<1x32xf32>
    %cst_262 = arith.constant dense<0.000000e+00> : vector<16xf32>
    %590 = vector.multi_reduction <add>, %587, %cst_262 [1] : vector<16x32xf32> to vector<16xf32>
    %591 = vector.shape_cast %590 : vector<16xf32> to vector<16x1xf32>
    %cst_263 = arith.constant 3.200000e+01 : f32
    %592 = vector.broadcast %cst_263 : f32 to vector<16x1xf32>
    %593 = arith.divf %591, %592 : vector<16x1xf32>
    %594 = vector.broadcast %593 : vector<16x1xf32> to vector<16x32xf32>
    %595 = arith.subf %587, %594 : vector<16x32xf32>
    %596 = arith.mulf %595, %595 : vector<16x32xf32>
    %cst_264 = arith.constant dense<0.000000e+00> : vector<16xf32>
    %597 = vector.multi_reduction <add>, %596, %cst_264 [1] : vector<16x32xf32> to vector<16xf32>
    %598 = vector.shape_cast %597 : vector<16xf32> to vector<16x1xf32>
    %cst_265 = arith.constant 3.200000e+01 : f32
    %599 = vector.broadcast %cst_265 : f32 to vector<16x1xf32>
    %600 = arith.divf %598, %599 : vector<16x1xf32>
    %cst_266 = arith.constant 9.99999974E-6 : f32
    %601 = vector.broadcast %cst_266 : f32 to vector<16x1xf32>
    %602 = arith.addf %600, %601 : vector<16x1xf32>
    %603 = math.rsqrt %602 : vector<16x1xf32>
    %604 = vector.broadcast %603 : vector<16x1xf32> to vector<16x32xf32>
    %605 = arith.mulf %595, %604 : vector<16x32xf32>
    %606 = vector.broadcast %588 : vector<1x32xf32> to vector<16x32xf32>
    %607 = arith.mulf %605, %606 : vector<16x32xf32>
    %608 = vector.broadcast %589 : vector<1x32xf32> to vector<16x32xf32>
    %609 = arith.addf %607, %608 : vector<16x32xf32>
    %cst_267 = arith.constant 0.000000e+00 : f32
    %610 = vector.broadcast %cst_267 : f32 to vector<16x32xf32>
    %611 = arith.cmpf oge, %609, %610 : vector<16x32xf32>
    %cst_268 = arith.constant 0.00999999977 : f32
    %612 = vector.broadcast %cst_268 : f32 to vector<16x32xf32>
    %613 = arith.mulf %612, %609 : vector<16x32xf32>
    %614 = arith.select %611, %609, %613 : vector<16x32xi1>, vector<16x32xf32>
    %615 = arith.truncf %614 : vector<16x32xf32> to vector<16x32xbf16>
    %c5_269 = arith.constant 5 : index
    %c0_270 = arith.constant 0 : index
    %c0_271 = arith.constant 0 : index
    %616 = vector.load %arg8[%c5_269, %c0_270, %c0_271] : memref<7x32x32xbf16, #tpu.memory_space<vmem>>, vector<1x32x32xbf16>
    %617 = vector.shape_cast %616 : vector<1x32x32xbf16> to vector<32x32xbf16>
    %cst_272 = arith.constant dense<0.000000e+00> : vector<16x32xf32>
    %618 = tpu.matmul %615, %617, %cst_272 {dimension_numbers = #tpu.dot_dimension_numbers<[1], [0], [0], [1], [0, 0, 1, 1], [], []>} : vector<16x32xbf16>, vector<32x32xbf16>, vector<16x32xf32> -> vector<16x32xf32>
    %c5_273 = arith.constant 5 : index
    %c0_274 = arith.constant 0 : index
    %619 = vector.load %arg9[%c5_273, %c0_274] : memref<7x32xf32, #tpu.memory_space<vmem>>, vector<1x32xf32>
    %620 = vector.broadcast %619 : vector<1x32xf32> to vector<16x32xf32>
    %621 = arith.addf %618, %620 : vector<16x32xf32>
    %c16 = arith.constant 16 : index
    %c0_275 = arith.constant 0 : index
    %622 = vector.load %arg6[%c16, %c0_275] : memref<21x32xf32, #tpu.memory_space<vmem>>, vector<1x32xf32>
    %c16_276 = arith.constant 16 : index
    %c0_277 = arith.constant 0 : index
    %623 = vector.load %arg7[%c16_276, %c0_277] : memref<21x32xf32, #tpu.memory_space<vmem>>, vector<1x32xf32>
    %cst_278 = arith.constant dense<0.000000e+00> : vector<16xf32>
    %624 = vector.multi_reduction <add>, %621, %cst_278 [1] : vector<16x32xf32> to vector<16xf32>
    %625 = vector.shape_cast %624 : vector<16xf32> to vector<16x1xf32>
    %cst_279 = arith.constant 3.200000e+01 : f32
    %626 = vector.broadcast %cst_279 : f32 to vector<16x1xf32>
    %627 = arith.divf %625, %626 : vector<16x1xf32>
    %628 = vector.broadcast %627 : vector<16x1xf32> to vector<16x32xf32>
    %629 = arith.subf %621, %628 : vector<16x32xf32>
    %630 = arith.mulf %629, %629 : vector<16x32xf32>
    %cst_280 = arith.constant dense<0.000000e+00> : vector<16xf32>
    %631 = vector.multi_reduction <add>, %630, %cst_280 [1] : vector<16x32xf32> to vector<16xf32>
    %632 = vector.shape_cast %631 : vector<16xf32> to vector<16x1xf32>
    %cst_281 = arith.constant 3.200000e+01 : f32
    %633 = vector.broadcast %cst_281 : f32 to vector<16x1xf32>
    %634 = arith.divf %632, %633 : vector<16x1xf32>
    %cst_282 = arith.constant 9.99999974E-6 : f32
    %635 = vector.broadcast %cst_282 : f32 to vector<16x1xf32>
    %636 = arith.addf %634, %635 : vector<16x1xf32>
    %637 = math.rsqrt %636 : vector<16x1xf32>
    %638 = vector.broadcast %637 : vector<16x1xf32> to vector<16x32xf32>
    %639 = arith.mulf %629, %638 : vector<16x32xf32>
    %640 = vector.broadcast %622 : vector<1x32xf32> to vector<16x32xf32>
    %641 = arith.mulf %639, %640 : vector<16x32xf32>
    %642 = vector.broadcast %623 : vector<1x32xf32> to vector<16x32xf32>
    %643 = arith.addf %641, %642 : vector<16x32xf32>
    %cst_283 = arith.constant 0.000000e+00 : f32
    %644 = vector.broadcast %cst_283 : f32 to vector<16x32xf32>
    %645 = arith.cmpf oge, %643, %644 : vector<16x32xf32>
    %cst_284 = arith.constant 0.00999999977 : f32
    %646 = vector.broadcast %cst_284 : f32 to vector<16x32xf32>
    %647 = arith.mulf %646, %643 : vector<16x32xf32>
    %648 = arith.select %645, %643, %647 : vector<16x32xi1>, vector<16x32xf32>
    %649 = arith.truncf %648 : vector<16x32xf32> to vector<16x32xbf16>
    %650 = tpu.concatenate %19, %649 in 1 : vector<16x32xbf16>, vector<16x32xbf16> -> vector<16x64xbf16>
    %c5_285 = arith.constant 5 : index
    %c0_286 = arith.constant 0 : index
    %c0_287 = arith.constant 0 : index
    %651 = vector.load %arg10[%c5_285, %c0_286, %c0_287] : memref<7x64x32xbf16, #tpu.memory_space<vmem>>, vector<1x64x32xbf16>
    %652 = vector.shape_cast %651 : vector<1x64x32xbf16> to vector<64x32xbf16>
    %cst_288 = arith.constant dense<0.000000e+00> : vector<16x32xf32>
    %653 = tpu.matmul %650, %652, %cst_288 {dimension_numbers = #tpu.dot_dimension_numbers<[1], [0], [0], [1], [0, 0, 1, 1], [], []>} : vector<16x64xbf16>, vector<64x32xbf16>, vector<16x32xf32> -> vector<16x32xf32>
    %c5_289 = arith.constant 5 : index
    %c0_290 = arith.constant 0 : index
    %654 = vector.load %arg11[%c5_289, %c0_290] : memref<7x32xf32, #tpu.memory_space<vmem>>, vector<1x32xf32>
    %655 = vector.broadcast %654 : vector<1x32xf32> to vector<16x32xf32>
    %656 = arith.addf %653, %655 : vector<16x32xf32>
    %c17 = arith.constant 17 : index
    %c0_291 = arith.constant 0 : index
    %657 = vector.load %arg6[%c17, %c0_291] : memref<21x32xf32, #tpu.memory_space<vmem>>, vector<1x32xf32>
    %c17_292 = arith.constant 17 : index
    %c0_293 = arith.constant 0 : index
    %658 = vector.load %arg7[%c17_292, %c0_293] : memref<21x32xf32, #tpu.memory_space<vmem>>, vector<1x32xf32>
    %cst_294 = arith.constant dense<0.000000e+00> : vector<16xf32>
    %659 = vector.multi_reduction <add>, %656, %cst_294 [1] : vector<16x32xf32> to vector<16xf32>
    %660 = vector.shape_cast %659 : vector<16xf32> to vector<16x1xf32>
    %cst_295 = arith.constant 3.200000e+01 : f32
    %661 = vector.broadcast %cst_295 : f32 to vector<16x1xf32>
    %662 = arith.divf %660, %661 : vector<16x1xf32>
    %663 = vector.broadcast %662 : vector<16x1xf32> to vector<16x32xf32>
    %664 = arith.subf %656, %663 : vector<16x32xf32>
    %665 = arith.mulf %664, %664 : vector<16x32xf32>
    %cst_296 = arith.constant dense<0.000000e+00> : vector<16xf32>
    %666 = vector.multi_reduction <add>, %665, %cst_296 [1] : vector<16x32xf32> to vector<16xf32>
    %667 = vector.shape_cast %666 : vector<16xf32> to vector<16x1xf32>
    %cst_297 = arith.constant 3.200000e+01 : f32
    %668 = vector.broadcast %cst_297 : f32 to vector<16x1xf32>
    %669 = arith.divf %667, %668 : vector<16x1xf32>
    %cst_298 = arith.constant 9.99999974E-6 : f32
    %670 = vector.broadcast %cst_298 : f32 to vector<16x1xf32>
    %671 = arith.addf %669, %670 : vector<16x1xf32>
    %672 = math.rsqrt %671 : vector<16x1xf32>
    %673 = vector.broadcast %672 : vector<16x1xf32> to vector<16x32xf32>
    %674 = arith.mulf %664, %673 : vector<16x32xf32>
    %675 = vector.broadcast %657 : vector<1x32xf32> to vector<16x32xf32>
    %676 = arith.mulf %674, %675 : vector<16x32xf32>
    %677 = vector.broadcast %658 : vector<1x32xf32> to vector<16x32xf32>
    %678 = arith.addf %676, %677 : vector<16x32xf32>
    %cst_299 = arith.constant 0.000000e+00 : f32
    %679 = vector.broadcast %cst_299 : f32 to vector<16x32xf32>
    %680 = arith.cmpf oge, %678, %679 : vector<16x32xf32>
    %cst_300 = arith.constant 0.00999999977 : f32
    %681 = vector.broadcast %cst_300 : f32 to vector<16x32xf32>
    %682 = arith.mulf %681, %678 : vector<16x32xf32>
    %683 = arith.select %680, %678, %682 : vector<16x32xi1>, vector<16x32xf32>
    %684 = arith.truncf %683 : vector<16x32xf32> to vector<16x32xbf16>
    %c5_301 = arith.constant 5 : index
    %c0_302 = arith.constant 0 : index
    %c0_303 = arith.constant 0 : index
    %685 = vector.load %arg12[%c5_301, %c0_302, %c0_303] : memref<7x32x64xbf16, #tpu.memory_space<vmem>>, vector<1x32x64xbf16>
    %686 = vector.shape_cast %685 : vector<1x32x64xbf16> to vector<32x64xbf16>
    %cst_304 = arith.constant dense<0.000000e+00> : vector<16x64xf32>
    %687 = tpu.matmul %684, %686, %cst_304 {dimension_numbers = #tpu.dot_dimension_numbers<[1], [0], [0], [1], [0, 0, 1, 1], [], []>} : vector<16x32xbf16>, vector<32x64xbf16>, vector<16x64xf32> -> vector<16x64xf32>
    %c5_305 = arith.constant 5 : index
    %c0_306 = arith.constant 0 : index
    %688 = vector.load %arg13[%c5_305, %c0_306] : memref<7x64xf32, #tpu.memory_space<vmem>>, vector<1x64xf32>
    %689 = vector.broadcast %688 : vector<1x64xf32> to vector<16x64xf32>
    %690 = arith.addf %687, %689 : vector<16x64xf32>
    %691 = vector.extract_strided_slice %690 {offsets = [0, 0], sizes = [16, 32], strides = [1, 1]} : vector<16x64xf32> to vector<16x32xf32>
    %692 = vector.extract_strided_slice %690 {offsets = [0, 32], sizes = [16, 32], strides = [1, 1]} : vector<16x64xf32> to vector<16x32xf32>
    %693 = arith.negf %692 : vector<16x32xf32>
    %694 = math.exp %693 : vector<16x32xf32>
    %cst_307 = arith.constant 1.000000e+00 : f32
    %695 = vector.broadcast %cst_307 : f32 to vector<16x32xf32>
    %696 = arith.addf %695, %694 : vector<16x32xf32>
    %697 = arith.divf %695, %696 : vector<16x32xf32>
    %698 = arith.mulf %691, %697 : vector<16x32xf32>
    %699 = arith.addf %698, %587 : vector<16x32xf32>
    %c18 = arith.constant 18 : index
    %c0_308 = arith.constant 0 : index
    %700 = vector.load %arg6[%c18, %c0_308] : memref<21x32xf32, #tpu.memory_space<vmem>>, vector<1x32xf32>
    %c18_309 = arith.constant 18 : index
    %c0_310 = arith.constant 0 : index
    %701 = vector.load %arg7[%c18_309, %c0_310] : memref<21x32xf32, #tpu.memory_space<vmem>>, vector<1x32xf32>
    %cst_311 = arith.constant dense<0.000000e+00> : vector<16xf32>
    %702 = vector.multi_reduction <add>, %699, %cst_311 [1] : vector<16x32xf32> to vector<16xf32>
    %703 = vector.shape_cast %702 : vector<16xf32> to vector<16x1xf32>
    %cst_312 = arith.constant 3.200000e+01 : f32
    %704 = vector.broadcast %cst_312 : f32 to vector<16x1xf32>
    %705 = arith.divf %703, %704 : vector<16x1xf32>
    %706 = vector.broadcast %705 : vector<16x1xf32> to vector<16x32xf32>
    %707 = arith.subf %699, %706 : vector<16x32xf32>
    %708 = arith.mulf %707, %707 : vector<16x32xf32>
    %cst_313 = arith.constant dense<0.000000e+00> : vector<16xf32>
    %709 = vector.multi_reduction <add>, %708, %cst_313 [1] : vector<16x32xf32> to vector<16xf32>
    %710 = vector.shape_cast %709 : vector<16xf32> to vector<16x1xf32>
    %cst_314 = arith.constant 3.200000e+01 : f32
    %711 = vector.broadcast %cst_314 : f32 to vector<16x1xf32>
    %712 = arith.divf %710, %711 : vector<16x1xf32>
    %cst_315 = arith.constant 9.99999974E-6 : f32
    %713 = vector.broadcast %cst_315 : f32 to vector<16x1xf32>
    %714 = arith.addf %712, %713 : vector<16x1xf32>
    %715 = math.rsqrt %714 : vector<16x1xf32>
    %716 = vector.broadcast %715 : vector<16x1xf32> to vector<16x32xf32>
    %717 = arith.mulf %707, %716 : vector<16x32xf32>
    %718 = vector.broadcast %700 : vector<1x32xf32> to vector<16x32xf32>
    %719 = arith.mulf %717, %718 : vector<16x32xf32>
    %720 = vector.broadcast %701 : vector<1x32xf32> to vector<16x32xf32>
    %721 = arith.addf %719, %720 : vector<16x32xf32>
    %cst_316 = arith.constant 0.000000e+00 : f32
    %722 = vector.broadcast %cst_316 : f32 to vector<16x32xf32>
    %723 = arith.cmpf oge, %721, %722 : vector<16x32xf32>
    %cst_317 = arith.constant 0.00999999977 : f32
    %724 = vector.broadcast %cst_317 : f32 to vector<16x32xf32>
    %725 = arith.mulf %724, %721 : vector<16x32xf32>
    %726 = arith.select %723, %721, %725 : vector<16x32xi1>, vector<16x32xf32>
    %727 = arith.truncf %726 : vector<16x32xf32> to vector<16x32xbf16>
    %c6_318 = arith.constant 6 : index
    %c0_319 = arith.constant 0 : index
    %c0_320 = arith.constant 0 : index
    %728 = vector.load %arg8[%c6_318, %c0_319, %c0_320] : memref<7x32x32xbf16, #tpu.memory_space<vmem>>, vector<1x32x32xbf16>
    %729 = vector.shape_cast %728 : vector<1x32x32xbf16> to vector<32x32xbf16>
    %cst_321 = arith.constant dense<0.000000e+00> : vector<16x32xf32>
    %730 = tpu.matmul %727, %729, %cst_321 {dimension_numbers = #tpu.dot_dimension_numbers<[1], [0], [0], [1], [0, 0, 1, 1], [], []>} : vector<16x32xbf16>, vector<32x32xbf16>, vector<16x32xf32> -> vector<16x32xf32>
    %c6_322 = arith.constant 6 : index
    %c0_323 = arith.constant 0 : index
    %731 = vector.load %arg9[%c6_322, %c0_323] : memref<7x32xf32, #tpu.memory_space<vmem>>, vector<1x32xf32>
    %732 = vector.broadcast %731 : vector<1x32xf32> to vector<16x32xf32>
    %733 = arith.addf %730, %732 : vector<16x32xf32>
    %c19 = arith.constant 19 : index
    %c0_324 = arith.constant 0 : index
    %734 = vector.load %arg6[%c19, %c0_324] : memref<21x32xf32, #tpu.memory_space<vmem>>, vector<1x32xf32>
    %c19_325 = arith.constant 19 : index
    %c0_326 = arith.constant 0 : index
    %735 = vector.load %arg7[%c19_325, %c0_326] : memref<21x32xf32, #tpu.memory_space<vmem>>, vector<1x32xf32>
    %cst_327 = arith.constant dense<0.000000e+00> : vector<16xf32>
    %736 = vector.multi_reduction <add>, %733, %cst_327 [1] : vector<16x32xf32> to vector<16xf32>
    %737 = vector.shape_cast %736 : vector<16xf32> to vector<16x1xf32>
    %cst_328 = arith.constant 3.200000e+01 : f32
    %738 = vector.broadcast %cst_328 : f32 to vector<16x1xf32>
    %739 = arith.divf %737, %738 : vector<16x1xf32>
    %740 = vector.broadcast %739 : vector<16x1xf32> to vector<16x32xf32>
    %741 = arith.subf %733, %740 : vector<16x32xf32>
    %742 = arith.mulf %741, %741 : vector<16x32xf32>
    %cst_329 = arith.constant dense<0.000000e+00> : vector<16xf32>
    %743 = vector.multi_reduction <add>, %742, %cst_329 [1] : vector<16x32xf32> to vector<16xf32>
    %744 = vector.shape_cast %743 : vector<16xf32> to vector<16x1xf32>
    %cst_330 = arith.constant 3.200000e+01 : f32
    %745 = vector.broadcast %cst_330 : f32 to vector<16x1xf32>
    %746 = arith.divf %744, %745 : vector<16x1xf32>
    %cst_331 = arith.constant 9.99999974E-6 : f32
    %747 = vector.broadcast %cst_331 : f32 to vector<16x1xf32>
    %748 = arith.addf %746, %747 : vector<16x1xf32>
    %749 = math.rsqrt %748 : vector<16x1xf32>
    %750 = vector.broadcast %749 : vector<16x1xf32> to vector<16x32xf32>
    %751 = arith.mulf %741, %750 : vector<16x32xf32>
    %752 = vector.broadcast %734 : vector<1x32xf32> to vector<16x32xf32>
    %753 = arith.mulf %751, %752 : vector<16x32xf32>
    %754 = vector.broadcast %735 : vector<1x32xf32> to vector<16x32xf32>
    %755 = arith.addf %753, %754 : vector<16x32xf32>
    %cst_332 = arith.constant 0.000000e+00 : f32
    %756 = vector.broadcast %cst_332 : f32 to vector<16x32xf32>
    %757 = arith.cmpf oge, %755, %756 : vector<16x32xf32>
    %cst_333 = arith.constant 0.00999999977 : f32
    %758 = vector.broadcast %cst_333 : f32 to vector<16x32xf32>
    %759 = arith.mulf %758, %755 : vector<16x32xf32>
    %760 = arith.select %757, %755, %759 : vector<16x32xi1>, vector<16x32xf32>
    %761 = arith.truncf %760 : vector<16x32xf32> to vector<16x32xbf16>
    %762 = tpu.concatenate %19, %761 in 1 : vector<16x32xbf16>, vector<16x32xbf16> -> vector<16x64xbf16>
    %c6_334 = arith.constant 6 : index
    %c0_335 = arith.constant 0 : index
    %c0_336 = arith.constant 0 : index
    %763 = vector.load %arg10[%c6_334, %c0_335, %c0_336] : memref<7x64x32xbf16, #tpu.memory_space<vmem>>, vector<1x64x32xbf16>
    %764 = vector.shape_cast %763 : vector<1x64x32xbf16> to vector<64x32xbf16>
    %cst_337 = arith.constant dense<0.000000e+00> : vector<16x32xf32>
    %765 = tpu.matmul %762, %764, %cst_337 {dimension_numbers = #tpu.dot_dimension_numbers<[1], [0], [0], [1], [0, 0, 1, 1], [], []>} : vector<16x64xbf16>, vector<64x32xbf16>, vector<16x32xf32> -> vector<16x32xf32>
    %c6_338 = arith.constant 6 : index
    %c0_339 = arith.constant 0 : index
    %766 = vector.load %arg11[%c6_338, %c0_339] : memref<7x32xf32, #tpu.memory_space<vmem>>, vector<1x32xf32>
    %767 = vector.broadcast %766 : vector<1x32xf32> to vector<16x32xf32>
    %768 = arith.addf %765, %767 : vector<16x32xf32>
    %c20 = arith.constant 20 : index
    %c0_340 = arith.constant 0 : index
    %769 = vector.load %arg6[%c20, %c0_340] : memref<21x32xf32, #tpu.memory_space<vmem>>, vector<1x32xf32>
    %c20_341 = arith.constant 20 : index
    %c0_342 = arith.constant 0 : index
    %770 = vector.load %arg7[%c20_341, %c0_342] : memref<21x32xf32, #tpu.memory_space<vmem>>, vector<1x32xf32>
    %cst_343 = arith.constant dense<0.000000e+00> : vector<16xf32>
    %771 = vector.multi_reduction <add>, %768, %cst_343 [1] : vector<16x32xf32> to vector<16xf32>
    %772 = vector.shape_cast %771 : vector<16xf32> to vector<16x1xf32>
    %cst_344 = arith.constant 3.200000e+01 : f32
    %773 = vector.broadcast %cst_344 : f32 to vector<16x1xf32>
    %774 = arith.divf %772, %773 : vector<16x1xf32>
    %775 = vector.broadcast %774 : vector<16x1xf32> to vector<16x32xf32>
    %776 = arith.subf %768, %775 : vector<16x32xf32>
    %777 = arith.mulf %776, %776 : vector<16x32xf32>
    %cst_345 = arith.constant dense<0.000000e+00> : vector<16xf32>
    %778 = vector.multi_reduction <add>, %777, %cst_345 [1] : vector<16x32xf32> to vector<16xf32>
    %779 = vector.shape_cast %778 : vector<16xf32> to vector<16x1xf32>
    %cst_346 = arith.constant 3.200000e+01 : f32
    %780 = vector.broadcast %cst_346 : f32 to vector<16x1xf32>
    %781 = arith.divf %779, %780 : vector<16x1xf32>
    %cst_347 = arith.constant 9.99999974E-6 : f32
    %782 = vector.broadcast %cst_347 : f32 to vector<16x1xf32>
    %783 = arith.addf %781, %782 : vector<16x1xf32>
    %784 = math.rsqrt %783 : vector<16x1xf32>
    %785 = vector.broadcast %784 : vector<16x1xf32> to vector<16x32xf32>
    %786 = arith.mulf %776, %785 : vector<16x32xf32>
    %787 = vector.broadcast %769 : vector<1x32xf32> to vector<16x32xf32>
    %788 = arith.mulf %786, %787 : vector<16x32xf32>
    %789 = vector.broadcast %770 : vector<1x32xf32> to vector<16x32xf32>
    %790 = arith.addf %788, %789 : vector<16x32xf32>
    %cst_348 = arith.constant 0.000000e+00 : f32
    %791 = vector.broadcast %cst_348 : f32 to vector<16x32xf32>
    %792 = arith.cmpf oge, %790, %791 : vector<16x32xf32>
    %cst_349 = arith.constant 0.00999999977 : f32
    %793 = vector.broadcast %cst_349 : f32 to vector<16x32xf32>
    %794 = arith.mulf %793, %790 : vector<16x32xf32>
    %795 = arith.select %792, %790, %794 : vector<16x32xi1>, vector<16x32xf32>
    %796 = arith.truncf %795 : vector<16x32xf32> to vector<16x32xbf16>
    %c6_350 = arith.constant 6 : index
    %c0_351 = arith.constant 0 : index
    %c0_352 = arith.constant 0 : index
    %797 = vector.load %arg12[%c6_350, %c0_351, %c0_352] : memref<7x32x64xbf16, #tpu.memory_space<vmem>>, vector<1x32x64xbf16>
    %798 = vector.shape_cast %797 : vector<1x32x64xbf16> to vector<32x64xbf16>
    %cst_353 = arith.constant dense<0.000000e+00> : vector<16x64xf32>
    %799 = tpu.matmul %796, %798, %cst_353 {dimension_numbers = #tpu.dot_dimension_numbers<[1], [0], [0], [1], [0, 0, 1, 1], [], []>} : vector<16x32xbf16>, vector<32x64xbf16>, vector<16x64xf32> -> vector<16x64xf32>
    %c6_354 = arith.constant 6 : index
    %c0_355 = arith.constant 0 : index
    %800 = vector.load %arg13[%c6_354, %c0_355] : memref<7x64xf32, #tpu.memory_space<vmem>>, vector<1x64xf32>
    %801 = vector.broadcast %800 : vector<1x64xf32> to vector<16x64xf32>
    %802 = arith.addf %799, %801 : vector<16x64xf32>
    %803 = vector.extract_strided_slice %802 {offsets = [0, 0], sizes = [16, 32], strides = [1, 1]} : vector<16x64xf32> to vector<16x32xf32>
    %804 = vector.extract_strided_slice %802 {offsets = [0, 32], sizes = [16, 32], strides = [1, 1]} : vector<16x64xf32> to vector<16x32xf32>
    %805 = arith.negf %804 : vector<16x32xf32>
    %806 = math.exp %805 : vector<16x32xf32>
    %cst_356 = arith.constant 1.000000e+00 : f32
    %807 = vector.broadcast %cst_356 : f32 to vector<16x32xf32>
    %808 = arith.addf %807, %806 : vector<16x32xf32>
    %809 = arith.divf %807, %808 : vector<16x32xf32>
    %810 = arith.mulf %803, %809 : vector<16x32xf32>
    %811 = arith.addf %810, %699 : vector<16x32xf32>
    %812 = arith.truncf %811 : vector<16x32xf32> to vector<16x32xbf16>
    %c0_357 = arith.constant 0 : index
    %c0_358 = arith.constant 0 : index
    %813 = vector.load %arg14[%c0_357, %c0_358] : memref<32x16xbf16, #tpu.memory_space<vmem>>, vector<32x16xbf16>
    %cst_359 = arith.constant dense<0.000000e+00> : vector<16x16xf32>
    %814 = tpu.matmul %812, %813, %cst_359 {dimension_numbers = #tpu.dot_dimension_numbers<[1], [0], [0], [1], [0, 0, 1, 1], [], []>} : vector<16x32xbf16>, vector<32x16xbf16>, vector<16x16xf32> -> vector<16x16xf32>
    %c0_360 = arith.constant 0 : index
    %c0_361 = arith.constant 0 : index
    %815 = vector.load %arg15[%c0_360, %c0_361] : memref<1x16xf32, #tpu.memory_space<vmem>>, vector<1x16xf32>
    %816 = vector.broadcast %815 : vector<1x16xf32> to vector<16x16xf32>
    %817 = arith.addf %814, %816 : vector<16x16xf32>
    %cst_362 = arith.constant dense<0xFF800000> : vector<16xf32>
    %818 = vector.multi_reduction <maximumf>, %817, %cst_362 [1] : vector<16x16xf32> to vector<16xf32>
    %819 = vector.shape_cast %818 : vector<16xf32> to vector<16x1xf32>
    %820 = vector.broadcast %819 : vector<16x1xf32> to vector<16x16xf32>
    %821 = arith.subf %817, %820 : vector<16x16xf32>
    %822 = math.exp %821 : vector<16x16xf32>
    %cst_363 = arith.constant dense<0.000000e+00> : vector<16xf32>
    %823 = vector.multi_reduction <add>, %822, %cst_363 [1] : vector<16x16xf32> to vector<16xf32>
    %824 = vector.shape_cast %823 : vector<16xf32> to vector<16x1xf32>
    %825 = math.log %824 : vector<16x1xf32>
    %826 = arith.addf %825, %819 : vector<16x1xf32>
    %827 = vector.broadcast %826 : vector<16x1xf32> to vector<16x16xf32>
    %828 = arith.subf %817, %827 : vector<16x16xf32>
    %829 = vector.extract_strided_slice %1 {offsets = [1, 0], sizes = [15, 1], strides = [1, 1]} : vector<16x1xi32> to vector<15x1xi32>
    %830 = vector.extract_strided_slice %1 {offsets = [0, 0], sizes = [1, 1], strides = [1, 1]} : vector<16x1xi32> to vector<1x1xi32>
    %831 = tpu.concatenate %829, %830 in 0 : vector<15x1xi32>, vector<1x1xi32> -> vector<16x1xi32>
    %832 = vector.broadcast %831 : vector<16x1xi32> to vector<16x16xi32>
    %833 = arith.cmpi eq, %2, %832 : vector<16x16xi32>
    %834 = arith.extui %833 : vector<16x16xi1> to vector<16x16xi32>
    %835 = arith.sitofp %834 : vector<16x16xi32> to vector<16x16xf32>
    %836 = arith.mulf %828, %835 : vector<16x16xf32>
    %cst_364 = arith.constant dense<0.000000e+00> : vector<16xf32>
    %837 = vector.multi_reduction <add>, %836, %cst_364 [1] : vector<16x16xf32> to vector<16xf32>
    %838 = vector.shape_cast %837 : vector<16xf32> to vector<1x1x16xf32>
    %c0_365 = arith.constant 0 : index
    %c0_366 = arith.constant 0 : index
    %c0_367 = arith.constant 0 : index
    %839 = vector.load %arg16[%c0_365, %c0_366, %c0_367] : memref<1x1x16xf32, #tpu.memory_space<vmem>>, vector<1x1x16xf32>
    tpu.vector_store %arg16[%c0_365, %c0_366, %c0_367], %838 {strides = array<i32>} : memref<1x1x16xf32, #tpu.memory_space<vmem>>, vector<1x1x16xf32>,
    return
  }
  func.func @transform_0(%arg0: i32) -> (i32, i32, i32) {
    %c0_i32 = arith.constant 0 : i32
    %c0_i32_0 = arith.constant 0 : i32
    %c0_i32_1 = arith.constant 0 : i32
    return %arg0, %c0_i32, %c0_i32_0 : i32, i32, i32
  }
  func.func @transform_1(%arg0: i32) -> (i32, i32, i32) {
    %c0_i32 = arith.constant 0 : i32
    %c0_i32_0 = arith.constant 0 : i32
    %c0_i32_1 = arith.constant 0 : i32
    return %arg0, %c0_i32, %c0_i32_0 : i32, i32, i32
  }
  func.func @transform_2(%arg0: i32) -> (i32, i32) {
    %c0_i32 = arith.constant 0 : i32
    %c0_i32_0 = arith.constant 0 : i32
    %c0_i32_1 = arith.constant 0 : i32
    return %c0_i32, %c0_i32_0 : i32, i32
  }
  func.func @transform_3(%arg0: i32) -> (i32, i32) {
    %c0_i32 = arith.constant 0 : i32
    %c0_i32_0 = arith.constant 0 : i32
    %c0_i32_1 = arith.constant 0 : i32
    return %c0_i32, %c0_i32_0 : i32, i32
  }
  func.func @transform_4(%arg0: i32) -> (i32, i32) {
    %c0_i32 = arith.constant 0 : i32
    %c0_i32_0 = arith.constant 0 : i32
    %c0_i32_1 = arith.constant 0 : i32
    return %c0_i32, %c0_i32_0 : i32, i32
  }
  func.func @transform_5(%arg0: i32) -> (i32, i32) {
    %c0_i32 = arith.constant 0 : i32
    %c0_i32_0 = arith.constant 0 : i32
    %c0_i32_1 = arith.constant 0 : i32
    return %c0_i32, %c0_i32_0 : i32, i32
  }
  func.func @transform_6(%arg0: i32) -> (i32, i32) {
    %c0_i32 = arith.constant 0 : i32
    %c0_i32_0 = arith.constant 0 : i32
    %c0_i32_1 = arith.constant 0 : i32
    return %c0_i32, %c0_i32_0 : i32, i32
  }
  func.func @transform_7(%arg0: i32) -> (i32, i32, i32) {
    %c0_i32 = arith.constant 0 : i32
    %c0_i32_0 = arith.constant 0 : i32
    %c0_i32_1 = arith.constant 0 : i32
    %c0_i32_2 = arith.constant 0 : i32
    return %c0_i32, %c0_i32_0, %c0_i32_1 : i32, i32, i32
  }
  func.func @transform_8(%arg0: i32) -> (i32, i32) {
    %c0_i32 = arith.constant 0 : i32
    %c0_i32_0 = arith.constant 0 : i32
    %c0_i32_1 = arith.constant 0 : i32
    return %c0_i32, %c0_i32_0 : i32, i32
  }
  func.func @transform_9(%arg0: i32) -> (i32, i32, i32) {
    %c0_i32 = arith.constant 0 : i32
    %c0_i32_0 = arith.constant 0 : i32
    %c0_i32_1 = arith.constant 0 : i32
    %c0_i32_2 = arith.constant 0 : i32
    return %c0_i32, %c0_i32_0, %c0_i32_1 : i32, i32, i32
  }
  func.func @transform_10(%arg0: i32) -> (i32, i32) {
    %c0_i32 = arith.constant 0 : i32
    %c0_i32_0 = arith.constant 0 : i32
    %c0_i32_1 = arith.constant 0 : i32
    return %c0_i32, %c0_i32_0 : i32, i32
  }
  func.func @transform_11(%arg0: i32) -> (i32, i32, i32) {
    %c0_i32 = arith.constant 0 : i32
    %c0_i32_0 = arith.constant 0 : i32
    %c0_i32_1 = arith.constant 0 : i32
    %c0_i32_2 = arith.constant 0 : i32
    return %c0_i32, %c0_i32_0, %c0_i32_1 : i32, i32, i32
  }
  func.func @transform_12(%arg0: i32) -> (i32, i32) {
    %c0_i32 = arith.constant 0 : i32
    %c0_i32_0 = arith.constant 0 : i32
    %c0_i32_1 = arith.constant 0 : i32
    return %c0_i32, %c0_i32_0 : i32, i32
  }
  func.func @transform_13(%arg0: i32) -> (i32, i32) {
    %c0_i32 = arith.constant 0 : i32
    %c0_i32_0 = arith.constant 0 : i32
    %c0_i32_1 = arith.constant 0 : i32
    return %c0_i32, %c0_i32_0 : i32, i32
  }
  func.func @transform_14(%arg0: i32) -> (i32, i32) {
    %c0_i32 = arith.constant 0 : i32
    %c0_i32_0 = arith.constant 0 : i32
    %c0_i32_1 = arith.constant 0 : i32
    return %c0_i32, %c0_i32_0 : i32, i32
  }
  func.func @transform_15(%arg0: i32) -> (i32, i32, i32) {
    %c0_i32 = arith.constant 0 : i32
    %c0_i32_0 = arith.constant 0 : i32
    %c0_i32_1 = arith.constant 0 : i32
    return %arg0, %c0_i32, %c0_i32_0 : i32, i32, i32
  }
}

</mosaic_0001>

<bundles_post_ra>
// kernel: dilconv_decoder_forward.1
= control target key start
LH: loop header
LB: loop body
LE: loop exit
PB: predicated region body
PF: predicated region fallthrough
CT: control target
= control target key end

     0   :  { %s4983_s0 = inlined_call_operand.vmem [shape: s32[2,16,1], index: 0, kind: input, shape index: {}]   ;;  %s4984_s1 = inlined_call_operand.vmem [shape: f32[2,1,16], index: 1, kind: input, shape index: {}]   ;;  %s4985_s2 = inlined_call_operand.vmem [shape: bf16[16,32], index: 2, kind: input, shape index: {}]   ;;  %s4986_s3 = inlined_call_operand.vmem [shape: bf16[16,32], index: 3, kind: input, shape index: {}]   ;;  %s4987_s4 = inlined_call_operand.vmem [shape: f32[1,32], index: 4, kind: input, shape index: {}]   ;;  %s4988_s5 = inlined_call_operand.vmem [shape: f32[21,32], index: 5, kind: input, shape index: {}]   ;;  %s4989_s6 = inlined_call_operand.vmem [shape: f32[21,32], index: 6, kind: input, shape index: {}]   ;;  %s4990_s7 = inlined_call_operand.vmem [shape: bf16[7,32,32], index: 7, kind: input, shape index: {}]   ;;  %s4991_s8 = inlined_call_operand.vmem [shape: f32[7,32], index: 8, kind: input, shape index: {}]   ;;  %s4992_s9 = inlined_call_operand.vmem [shape: bf16[7,64,32], index: 9, kind: input, shape index: {}]   ;;  %s4993_s10 = inlined_call_operand.vmem [shape: f32[7,32], index: 10, kind: input, shape index: {}]   ;;  %s4994_s11 = inlined_call_operand.vmem [shape: bf16[7,32,64], index: 11, kind: input, shape index: {}]   ;;  %s4995_s12 = inlined_call_operand.vmem [shape: f32[7,64], index: 12, kind: input, shape index: {}]   ;;  %s4996_s13 = inlined_call_operand.vmem [shape: bf16[32,16], index: 13, kind: input, shape index: {}]   ;;  %s4997_s14 = inlined_call_operand.vmem [shape: f32[1,16], index: 14, kind: input, shape index: {}]   ;;  %s4998_s15 = inlined_call_operand.hbm [shape: f32[2,1,16], index: 15, kind: output, shape index: {}]  }
   0x1   :  { %5006 = sst [smem:[#allocation8_spill]] %s4983_s0 }
   0x2   :  { %5007 = sst [smem:[#allocation9_spill]] %s4986_s3 }
   0x3   :  { %20 = vsyncpa [#allocation3], 0 }
   0x4   :  { %22 = vsyncpa [#allocation3 + $0x1], 0  ;;  %s4196_s18 = smov 0   ;;  %s4198_s19 = smov 0  }
   0x5   :  { %s4200_s20 = smov 0   ;;  %s4202_s21 = smov 0  }
   0x6 LB: > { %5008 = sst [smem:[#allocation5_spill]] %s4105_s20  ;;  %s4217_s22 = sadd.s32 4294967295, %s4109_s21   ;;  %s4109_s21 = sphi %s4202_s21, %s5017_s21   ;;  %s4105_s20 = sphi %s4200_s20, %s5019_s20   ;;  %s4101_s19 = sphi %s4198_s19, %s5021_s19   ;;  %s4097_s18 = sphi %s4196_s18, %s5020_s18  }
   0x7   : > { %s3338_s23 = sadd.s32 4294967294, %s4109_s21   ;;  %s4221_s24 = sadd.s32 1, %s4109_s21  }
   0x8   : > { %5009 = sst [smem:[#allocation6_spill]] %s4221_s24  ;;  %s360_s25 = sadd.s32 1, %s4105_s20 }
   0x9   : > { %s357_s26 = ssub.s32 %s4109_s21, %s4221_s24  ;;  %p370_p0 = scmp.ne.s32.totalorder %s4105_s20, %s4101_s19 }
   0xa   : > { %p358_p1 = scmp.eq.s32.totalorder %s357_s26, 0  ;;  %p371_p2 = scmp.eq.s32.totalorder %s4217_s22, 1 }
   0xb   : > { %p376_p3 = scmp.ne.s32.totalorder %s4101_s19, %s4097_s18  ;;  %p377_p4 = scmp.eq.s32.totalorder %s3338_s23, 1 }
   0xc   : > { %s4232_s27 = scalar_select %p358_p1, %s4105_s20, %s360_s25  }
   0xd   : > { %p4234_p5 = por %p371_p2, %p370_p0  ;;  %p4238_p6 = por %p377_p4, %p376_p3 }
   0xe   : > { %5010 = sst [smem:[#allocation7_spill]] %s4232_s27  ;;  %p3341_p7 = scmp.ge.s32.totalorder %s4109_s21, 1 }
   0xf   : > { %p448_p8 = scmp.lt.s32.totalorder %s4109_s21, 3 }
  0x11   : > { %p449_p9 = pnand %p3341_p7, %p448_p8 }
  0x12   : > { %p498_p10 = scmp.lt.s32.totalorder (!%p449_p9), %s4217_s22, 1  ;;  %s5013_s3 = sld [smem:[#allocation9_spill]] (!%p449_p9) }
  0x13   : > { %452 = sbr.rel (%p449_p9) target bundleno = 11290 (0x2c1a), region = 80  ;;  %s5014_s0 = sld [smem:[#allocation8_spill]] (!%p449_p9) }
  0x14   : > { %s5004_s30 = smov (!%p449_p9), 32   ;;  %s3270_s20 = scalar_lea.hbm (!%p449_p9), %s4998_s15, %s4217_s22 }
  0x15   : > { %s3274_s25 = sshll.u32 (!%p449_p9), %s3270_s20, 4  ;;  %s3275_s25 = int_to_ptr.hbm [resolvable:$true] %s3274_s25 }
  0x18   : > { %v3726_v0 = vld [vmem:[%s5013_s3] sm:$0xff]  ;;  %v4111_v1 = vmov 0   ;;  %s499_s17 = scalar_select %p498_p10, %s4217_s22, 1  ;;  %vm537_vm0 = vcmask 130048   ;;  %v509_v7 = vlaneseq  ;;  %v4112_v11 = vmov 0.0   ;;  %v3728_v43 = vld [vmem:[%s4990_s7 + $0x8] sm:$0xff] }
  0x19   : > { %3829 = vset.pattern.permute.xlu0 %v4111_v1  ;;  %3830 = vset.pattern.permute.xlu2 %v4111_v1  ;;  %v3725_v6 = vld [vmem:[%s4985_s2] sm:$0xff]  ;;  %vm580_vm3 = vcmask 261120   ;;  %v4113_v26 = vmov 32.0   ;;  %s4067_s3 = scalar_lea.hbm %s4998_s15, 2 }
  0x1a   : > { %548 = vmatpush.bf16.msra.mxu0 %v3726_v0  ;;  %s3724_s23 = sshll.u32 %s499_s17, 4  ;;  %s505_s16 = scalar_lea.vmem %s4984_s1, %s499_s17  ;;  %571 = vmatpush.bf16.msra.mxu1 %v3725_v6  ;;  %v4263_v9 = vand.u32 127, %v509_v7  ;;  %v530_v17 = vld [vmem:[%s4987_s4] sm:$0x1]  ;;  %3895 = vrcp.f32 %v4113_v26 }
  0x1b   : > { %s4252_s27 = scalar_lea.vmem %s5014_s0, %s3724_s23  ;;  %v526_v4 = vld [vmem:[%s505_s16] sm:$0x1]  ;;  %672 = vmatpush.bf16.msra.mxu2 %v3728_v43  ;;  %s5002_s17 = smov 96  }
  0x1c   : > { %v507_v2 = vld [vmem:[%s4252_s27] sm:$0xff]  ;;  %v508_v3 = vld [vmem:[%s4252_s27 + $0x8] sm:$0xff]  ;;  %v527_v5 = vpack.c.bf16 %v526_v4, %v526_v4  ;;  %s5015_s23 = smov 96   ;;  %s4061_s16 = sshra.s32 %s3275_s25, 4  ;;  %s4062_s16 = int_to_ptr.hbm [resolvable:$true] %s4061_s16 }
  0x1d   : > { %512 = vperm.xlu0 %3829, %v507_v2   ;;  %v3727_v46 = vld [vmem:[%s4990_s7] sm:$0xff]  ;;  %s4063_s22 = scalar_lea.hbm %s4062_s16, 1  ;;  %p4068_p0 = scmp.lt.s32.totalorder %s4062_s16, %s4998_s15 }
  0x1e   : > { %3350 = vmatmul.msk.bf16.vlgmr.msra.gmra.mxu0 %vm537_vm0, %v527_v5  ;;  %v3831_v62 = vld [vmem:[%s4988_s5] ss:$0 sm:$0xff]  ;;  %p4064_p11 = scmp.ne.s32.totalorder %s4062_s16, %s4063_s22  ;;  %p4069_p1 = scmp.lt.s32.totalorder %s4067_s3, %s4063_s22 }
  0x1f   : > { %673 = vmatpush.bf16.msra.mxu2 %v3727_v46  ;;  %v3832_v2 = vld [vmem:[%s4989_s6] ss:$0 sm:$0xff] }
  0x20   : > { %v3896_v27 = vpop.eup %3895  ;;  %p4065_p12 = pnand %p4064_p11, %p4234_p5  ;;  %p4070_p2 = por %p4069_p1, %p4068_p0 }
  0x21   : > { %v588_v28 = vmul.f32 32.0, %v3896_v27  ;;  %vm592_vm4 = vweird.f32 %v3896_v27 }
  0x22   : > { %p4066_p13 = pneg %p4065_p12 }
  0x23   : > { %v589_v29 = vsub.f32 1.0, %v588_v28 }
  0x24   : > { %p4071_p3 = pnand %p4070_p2, %p4066_p13 }
  0x25   : > { %515 = vperm.xlu0 %3829, %v508_v3   ;;  %v590_v30 = vmul.f32 %v3896_v27, %v589_v29 }
  0x27   : > { %v591_v31 = vadd.f32 %v3896_v27, %v590_v30 }
  0x29   : > { %v4281_v32 = vsel %vm592_vm4, %v3896_v27, %v591_v31 }
  0x8f   : > { %v513_v8 = vpop.permute.xlu0 %512 }
  0x90   : > { %vm517_vm1 = vcmp.eq.s32.totalorder %v4263_v9, %v513_v8 }
  0x91   : > { %v3344_v12 = vsel %vm517_vm1, 1.0, %v4112_v11 }
  0x97   : > { %v516_v10 = vpop.permute.xlu0 %515 }
  0x98   : > { %vm518_vm2 = vcmp.eq.s32.totalorder %v4263_v9, %v516_v10 }
  0x99   : > { %v3345_v13 = vsel %vm518_vm2, 1.0, %v4112_v11 }
  0x9a   : > { %v523_v14 = vpack.c.bf16 %v3345_v13, %v3344_v12 }
  0x9b   : > { %v550_v15 = vpop.f32.mrf.mxu0 }
  0x9c   : > { %3355 = vmatmul.msk.bf16.vlgmr.msra.gmra.mxu1 %vm537_vm0, %v523_v14  ;;  %v551_v18 = vadd.f32 %v550_v15, %v530_v17 }
  0x9e   : > { %v554_v19 = vperm.slane %v551_v18, 0 }
  0xa3   : > { %v552_v16 = vpop.f32.mrf.mxu0 }
  0xa4   : > { %v3833_v16 = vld [vmem:[%s4991_s8] ss:$0 sm:$0xff] }
 0x119   : > { %v573_v20 = vpop.f32.mrf.mxu1 }
 0x11a   : > { %v4273_v21 = vadd.f32 %v573_v20, %v554_v19 }
 0x11c   : > { %v581_v22 = vsel %vm580_vm3, %v4273_v21, 0.0 }
 0x11d   : > { %582 = vadd.xlane.f32.xlu1 %v581_v22 }
 0x121   : > { %v575_v23 = vpop.f32.mrf.mxu1 }
 0x122   : > { %v4277_v24 = vadd.f32 %v575_v23, %v554_v19 }
 0x124   : > { %v584_v25 = vsel %vm580_vm3, %v4277_v24, 0.0 }
 0x125   : > { %585 = vadd.xlane.f32.xlu1 %v584_v25 }
 0x190   : > { %v583_v33 = vpop.xlane.xlu1 %582 }
 0x191   : > { %v594_v34 = vmul.f32 %v4281_v32, %v583_v33 }
 0x193   : > { %v596_v35 = vsub.f32 %v4273_v21, %v594_v34 }
 0x195   : > { %v598_v36 = vmul.f32 %v596_v35, %v596_v35 }
 0x197   : > { %v600_v37 = vsel %vm580_vm3, %v598_v36, 0.0 }
 0x198   : > { %601 = vadd.xlane.f32.xlu2 %v600_v37  ;;  %v586_v38 = vpop.xlane.xlu1 %585 }
 0x199   : > { %v595_v39 = vmul.f32 %v4281_v32, %v586_v38 }
 0x19b   : > { %v597_v40 = vsub.f32 %v4277_v24, %v595_v39 }
 0x19d   : > { %v599_v41 = vmul.f32 %v597_v40, %v597_v40 }
 0x19f   : > { %v603_v42 = vsel %vm580_vm3, %v599_v41, 0.0 }
 0x1a0   : > { %604 = vadd.xlane.f32.xlu2 %v603_v42 }
 0x20b   : > { %v602_v44 = vpop.xlane.xlu2 %601 }
 0x20c   : > { %v606_v45 = vmul.f32 %v602_v44, %v4281_v32 }
 0x20e   : > { %v608_v47 = vadd.f32 1e-05, %v606_v45 }
 0x210   : > { %3897 = vrsqrt.f32 %v608_v47  ;;  %vm616_vm6 = vweird.f32 %v608_v47 }
 0x213   : > { %v605_v48 = vpop.xlane.xlu2 %604 }
 0x214   : > { %v607_v49 = vmul.f32 %v605_v48, %v4281_v32 }
 0x216   : > { %v3898_v50 = vpop.eup %3897  ;;  %v609_v51 = vadd.f32 1e-05, %v607_v49 }
 0x217   : > { %v611_v52 = vmul.f32 %v3898_v50, %v608_v47  ;;  %vm617_vm5 = vweird.f32 %v3898_v50 }
 0x218   : > { %3899 = vrsqrt.f32 %v609_v51  ;;  %vm618_vm7 = vmor %vm616_vm6, %vm617_vm5  ;;  %vm626_vm9 = vweird.f32 %v609_v51 }
 0x219   : > { %v612_v53 = vmul.f32 %v3898_v50, %v611_v52 }
 0x21b   : > { %v613_v54 = vmul.f32 0.5, %v612_v53  ;;  %v3835_v53 = vld [vmem:[%s4989_s6 + $0x1] ss:$0 sm:$0xff] }
 0x21d   : > { %v614_v55 = vsub.f32 1.5, %v613_v54 }
 0x21e   : > { %v3900_v56 = vpop.eup %3899 }
 0x21f   : > { %v615_v57 = vmul.f32 %v3898_v50, %v614_v55  ;;  %v621_v58 = vmul.f32 %v3900_v56, %v609_v51  ;;  %vm627_vm8 = vweird.f32 %v3900_v56 }
 0x220   : > { %vm628_vm10 = vmor %vm626_vm9, %vm627_vm8  ;;  %vm806_vm8 = vcmask 523264  }
 0x221   : > { %v619_v59 = vsel %vm618_vm7, %v3898_v50, %v615_v57  ;;  %v622_v60 = vmul.f32 %v3900_v56, %v621_v58  ;;  %v3834_v50 = vld [vmem:[%s4988_s5 + $0x1] ss:$0 sm:$0xff]  ;;  %vm771_vm7 = vsmask.f32 256 }
 0x222   : > { %v630_v61 = vmul.f32 %v619_v59, %v596_v35 }
 0x223   : > { %v623_v63 = vmul.f32 0.5, %v622_v60 }
 0x224   : > { %v633_v1 = vmul.f32 %v3831_v62, %v630_v61 }
 0x225   : > { %v624_v0 = vsub.f32 1.5, %v623_v63 }
 0x226   : > { %v636_v6 = vadd.f32 %v3832_v2, %v633_v1 }
 0x227   : > { %v625_v3 = vmul.f32 %v3900_v56, %v624_v0 }
 0x228   : > { %v640_v10 = vmul.f32 0.01, %v636_v6  ;;  %vm638_vm11 = vcmp.ge.f32.partialorder %v636_v6, 0.0 }
 0x229   : > { %v629_v4 = vsel %vm628_vm10, %v3900_v56, %v625_v3 }
 0x22a   : > { %v631_v5 = vmul.f32 %v629_v4, %v597_v40  ;;  %v642_v13 = vsel %vm638_vm11, %v636_v6, %v640_v10 }
 0x22c   : > { %v634_v7 = vmul.f32 %v3831_v62, %v631_v5 }
 0x22e   : > { %v637_v8 = vadd.f32 %v3832_v2, %v634_v7 }
 0x230   : > { %vm639_vm12 = vcmp.ge.f32.partialorder %v637_v8, 0.0  ;;  %v641_v12 = vmul.f32 0.01, %v637_v8 }
 0x232   : > { %v643_v14 = vsel %vm639_vm12, %v637_v8, %v641_v12 }
 0x233   : > { %v644_v15 = vpack.c.bf16 %v643_v14, %v642_v13 }
 0x235   : > { %3364 = vmatmul.msk.bf16.vlgmr.msra.gmra.mxu2 %vm580_vm3, %v644_v15  ;;  %v3732_v15 = vld [vmem:[%s4992_s9 + $0x18] sm:$0xff] }
 0x236   : > { %814 = vmatpush.bf16.msra.mxu3 %v3732_v15 }
 0x2b8   : > { %v675_v17 = vpop.f32.mrf.mxu2 }
 0x2b9   : > { %v676_v18 = vadd.f32 %v3833_v16, %v675_v17  ;;  %v3730_v17 = vld [vmem:[%s4992_s9 + $0x8] sm:$0xff] }
 0x2bb   : > { %v682_v19 = vsel %vm580_vm3, %v676_v18, 0.0 }
 0x2bc   : > { %683 = vadd.xlane.f32.xlu0 %v682_v19 }
 0x2c0   : > { %v677_v20 = vpop.f32.mrf.mxu2 }
 0x2c1   : > { %v678_v22 = vadd.f32 %v3833_v16, %v677_v20  ;;  %v3731_v16 = vld [vmem:[%s4992_s9 + $0x10] sm:$0xff] }
 0x2c2   : > { %815 = vmatpush.bf16.msra.mxu3 %v3731_v16 }
 0x2c3   : > { %v685_v23 = vsel %vm580_vm3, %v678_v22, 0.0 }
 0x2c4   : > { %686 = vadd.xlane.f32.xlu1 %v685_v23 }
 0x2c6   : > { %816 = vmatpush.bf16.msra.mxu3 %v3730_v17 }
 0x32f   : > { %v684_v25 = vpop.xlane.xlu0 %683 }
 0x330   : > { %v688_v26 = vmul.f32 %v684_v25, %v4281_v32 }
 0x332   : > { %v690_v27 = vsub.f32 %v676_v18, %v688_v26  ;;  %v3729_v18 = vld [vmem:[%s4992_s9] sm:$0xff] }
 0x333   : > { %817 = vmatpush.bf16.msra.mxu3 %v3729_v18 }
 0x334   : > { %v692_v28 = vmul.f32 %v690_v27, %v690_v27 }
 0x336   : > { %v694_v29 = vsel %vm580_vm3, %v692_v28, 0.0 }
 0x337   : > { %v687_v30 = vpop.xlane.xlu1 %686  ;;  %695 = vadd.xlane.f32.xlu2 %v694_v29 }
 0x338   : > { %v689_v31 = vmul.f32 %v687_v30, %v4281_v32 }
 0x33a   : > { %v691_v33 = vsub.f32 %v678_v22, %v689_v31 }
 0x33c   : > { %v693_v34 = vmul.f32 %v691_v33, %v691_v33 }
 0x33e   : > { %v697_v35 = vsel %vm580_vm3, %v693_v34, 0.0 }
 0x33f   : > { %698 = vadd.xlane.f32.xlu1 %v697_v35 }
 0x3aa   : > { %v696_v36 = vpop.xlane.xlu2 %695 }
 0x3ab   : > { %v700_v37 = vmul.f32 %v696_v36, %v4281_v32 }
 0x3ad   : > { %v702_v38 = vadd.f32 1e-05, %v700_v37 }
 0x3af   : > { %3901 = vrsqrt.f32 %v702_v38  ;;  %vm710_vm14 = vweird.f32 %v702_v38 }
 0x3b2   : > { %v699_v39 = vpop.xlane.xlu1 %698 }
 0x3b3   : > { %v701_v40 = vmul.f32 %v699_v39, %v4281_v32 }
 0x3b5   : > { %v3902_v41 = vpop.eup %3901  ;;  %v703_v42 = vadd.f32 1e-05, %v701_v40 }
 0x3b6   : > { %v705_v43 = vmul.f32 %v3902_v41, %v702_v38  ;;  %vm711_vm13 = vweird.f32 %v3902_v41 }
 0x3b7   : > { %3903 = vrsqrt.f32 %v703_v42  ;;  %vm712_vm15 = vmor %vm710_vm14, %vm711_vm13  ;;  %vm720_vm2 = vweird.f32 %v703_v42 }
 0x3b8   : > { %v706_v44 = vmul.f32 %v3902_v41, %v705_v43 }
 0x3ba   : > { %v707_v45 = vmul.f32 0.5, %v706_v44 }
 0x3bc   : > { %v708_v46 = vsub.f32 1.5, %v707_v45 }
 0x3bd   : > { %v3904_v47 = vpop.eup %3903 }
 0x3be   : > { %v709_v48 = vmul.f32 %v3902_v41, %v708_v46  ;;  %v715_v49 = vmul.f32 %v3904_v47, %v703_v42  ;;  %vm721_vm1 = vweird.f32 %v3904_v47 }
 0x3bf   : > { %vm722_vm4 = vmor %vm720_vm2, %vm721_vm1 }
 0x3c0   : > { %v713_v51 = vsel %vm712_vm15, %v3902_v41, %v709_v48  ;;  %v716_v52 = vmul.f32 %v3904_v47, %v715_v49 }
 0x3c1   : > { %v724_v54 = vmul.f32 %v713_v51, %v690_v27 }
 0x3c2   : > { %v717_v55 = vmul.f32 0.5, %v716_v52  ;;  %v3734_v52 = vld [vmem:[%s4994_s11 + $0x8] sm:$0xff] }
 0x3c3   : > { %v727_v56 = vmul.f32 %v3834_v50, %v724_v54  ;;  %910 = vmatpush.bf16.msrb.mxu0 %v3734_v52  ;;  %v3733_v54 = vld [vmem:[%s4994_s11] sm:$0xff] }
 0x3c4   : > { %v718_v57 = vsub.f32 1.5, %v717_v55 }
 0x3c5   : > { %v730_v58 = vadd.f32 %v3835_v53, %v727_v56 }
 0x3c6   : > { %v719_v59 = vmul.f32 %v3904_v47, %v718_v57 }
 0x3c7   : > { %v734_v62 = vmul.f32 0.01, %v730_v58  ;;  %vm732_vm5 = vcmp.ge.f32.partialorder %v730_v58, 0.0  ;;  %911 = vmatpush.bf16.msrb.mxu0 %v3733_v54 }
 0x3c8   : > { %v723_v60 = vsel %vm722_vm4, %v3904_v47, %v719_v59 }
 0x3c9   : > { %v725_v61 = vmul.f32 %v723_v60, %v691_v33  ;;  %v736_v1 = vsel %vm732_vm5, %v730_v58, %v734_v62  ;;  %v3836_v33 = vld [vmem:[%s4993_s10] ss:$0 sm:$0xff] }
 0x3ca   : > { %v738_v3 = vpack.c.bf16 %v736_v1, %v736_v1 }
 0x3cb   : > { %v728_v63 = vmul.f32 %v3834_v50, %v725_v61 }
 0x3cc   : > { %v742_v6 = vunpack.c.l.b16 %v738_v3 }
 0x3cd   : > { %v731_v0 = vadd.f32 %v3835_v53, %v728_v63 }
 0x3cf   : > { %vm733_vm6 = vcmp.ge.f32.partialorder %v731_v0, 0.0  ;;  %v735_v2 = vmul.f32 0.01, %v731_v0 }
 0x3d1   : > { %v737_v4 = vsel %vm733_vm6, %v731_v0, %v735_v2 }
 0x3d2   : > { %v739_v5 = vpack.c.bf16 %v737_v4, %v737_v4  ;;  %v3837_v4 = vld [vmem:[%s4988_s5 + $0x2] ss:$0 sm:$0xff] }
 0x3d4   : > { %v743_v7 = vunpack.c.l.b16 %v739_v5 }
 0x3d6   : > { %v744_v8 = vpack.c.b16 %v743_v7, %v742_v6 }
 0x3d8   : > { %v746_v10 = vshll.u32 %v744_v8, 16  ;;  %v749_v13 = vshrl.u32 %v744_v8, 16 }
 0x3da   : > { %v748_v12 = vrot.slane %v746_v10, 1  ;;  %v3838_v10 = vld [vmem:[%s4989_s6 + $0x2] ss:$0 sm:$0xff] }
 0x3dc   : > { %752 = vrot.lane.b32.xlu1 %v748_v12, %s5004_s30  ;;  %v751_v14 = vor.u32 %v749_v13, %v748_v12 }
 0x3de   : > { %754 = vrot.lane.b32.xlu2 %v751_v14, %s5004_s30 }
 0x438   : > { %v755_v19 = vpop.permute.xlu2 %754 }
 0x439   : > { %v760_v20 = vsel %vm580_vm3, %v744_v8, %v755_v19 }
 0x43a   : > { %v775_v22 = vshrl.u32 %v760_v20, 16  ;;  %v778_v27 = vshll.u32 %v760_v20, 16 }
 0x43c   : > { %v777_v23 = vrot.slane %v775_v22, 7 }
 0x43e   : > { %v780_v29 = vor.u32 %v778_v27, %v777_v23 }
 0x44e   : > { %v753_v25 = vpop.permute.xlu1 %752 }
 0x44f   : > { %v758_v26 = vsel %vm580_vm3, 0, %v753_v25  ;;  %v3839_v25 = vld [vmem:[%s4995_s12] ss:$0 sm:$0xff] }
 0x450   : > { %v772_v28 = vshrl.u32 %v758_v26, 16 }
 0x452   : > { %v774_v30 = vrot.slane %v772_v28, 7 }
 0x454   : > { %v781_v31 = vsel %vm771_vm7, %v774_v30, %v780_v29 }
 0x455   : > { %3381 = vmatmul.msk.bf16.vlgmr.msra.gmra.mxu3 %vm806_vm8, %v781_v31 }
 0x4d8   : > { %v819_v34 = vpop.f32.mrf.mxu3 }
 0x4d9   : > { %v820_v35 = vadd.f32 %v3836_v33, %v819_v34 }
 0x4db   : > { %v826_v36 = vsel %vm580_vm3, %v820_v35, 0.0 }
 0x4dc   : > { %827 = vadd.xlane.f32.xlu2 %v826_v36 }
 0x4e0   : > { %v821_v37 = vpop.f32.mrf.mxu3 }
 0x4e1   : > { %v822_v38 = vadd.f32 %v3836_v33, %v821_v37 }
 0x4e3   : > { %v829_v39 = vsel %vm580_vm3, %v822_v38, 0.0 }
 0x4e4   : > { %830 = vadd.xlane.f32.xlu1 %v829_v39 }
 0x54f   : > { %v828_v40 = vpop.xlane.xlu2 %827 }
 0x550   : > { %v832_v41 = vmul.f32 %v828_v40, %v4281_v32 }
 0x552   : > { %v834_v42 = vsub.f32 %v820_v35, %v832_v41 }
 0x554   : > { %v836_v43 = vmul.f32 %v834_v42, %v834_v42 }
 0x556   : > { %v838_v44 = vsel %vm580_vm3, %v836_v43, 0.0 }
 0x557   : > { %v831_v45 = vpop.xlane.xlu1 %830  ;;  %839 = vadd.xlane.f32.xlu0 %v838_v44 }
 0x558   : > { %v833_v46 = vmul.f32 %v831_v45, %v4281_v32 }
 0x55a   : > { %v835_v47 = vsub.f32 %v822_v38, %v833_v46 }
 0x55c   : > { %v837_v48 = vmul.f32 %v835_v47, %v835_v47 }
 0x55e   : > { %v841_v49 = vsel %vm580_vm3, %v837_v48, 0.0 }
 0x55f   : > { %842 = vadd.xlane.f32.xlu0 %v841_v49 }
 0x5ca   : > { %v840_v50 = vpop.xlane.xlu0 %839 }
 0x5cb   : > { %v844_v51 = vmul.f32 %v840_v50, %v4281_v32 }
 0x5cd   : > { %v846_v53 = vadd.f32 1e-05, %v844_v51 }
 0x5cf   : > { %3905 = vrsqrt.f32 %v846_v53  ;;  %vm854_vm10 = vweird.f32 %v846_v53 }
 0x5d2   : > { %v843_v55 = vpop.xlane.xlu0 %842 }
 0x5d3   : > { %v845_v56 = vmul.f32 %v843_v55, %v4281_v32 }
 0x5d5   : > { %v3906_v57 = vpop.eup %3905  ;;  %v847_v58 = vadd.f32 1e-05, %v845_v56 }
 0x5d6   : > { %v849_v59 = vmul.f32 %v3906_v57, %v846_v53  ;;  %vm855_vm9 = vweird.f32 %v3906_v57 }
 0x5d7   : > { %3907 = vrsqrt.f32 %v847_v58  ;;  %vm856_vm11 = vmor %vm854_vm10, %vm855_vm9  ;;  %vm864_vm13 = vweird.f32 %v847_v58 }
 0x5d8   : > { %v850_v60 = vmul.f32 %v3906_v57, %v849_v59 }
 0x5da   : > { %v851_v61 = vmul.f32 0.5, %v850_v60 }
 0x5dc   : > { %v852_v62 = vsub.f32 1.5, %v851_v61 }
 0x5dd   : > { %v3908_v63 = vpop.eup %3907 }
 0x5de   : > { %v853_v0 = vmul.f32 %v3906_v57, %v852_v62  ;;  %v859_v1 = vmul.f32 %v3908_v63, %v847_v58  ;;  %vm865_vm12 = vweird.f32 %v3908_v63 }
 0x5df   : > { %vm866_vm14 = vmor %vm864_vm13, %vm865_vm12 }
 0x5e0   : > { %v857_v2 = vsel %vm856_vm11, %v3906_v57, %v853_v0  ;;  %v860_v3 = vmul.f32 %v3908_v63, %v859_v1 }
 0x5e1   : > { %v868_v5 = vmul.f32 %v857_v2, %v834_v42 }
 0x5e2   : > { %v861_v6 = vmul.f32 0.5, %v860_v3 }
 0x5e3   : > { %v871_v8 = vmul.f32 %v3837_v4, %v868_v5 }
 0x5e4   : > { %v862_v7 = vsub.f32 1.5, %v861_v6 }
 0x5e5   : > { %v874_v15 = vadd.f32 %v3838_v10, %v871_v8 }
 0x5e6   : > { %v863_v12 = vmul.f32 %v3908_v63, %v862_v7 }
 0x5e7   : > { %v878_v18 = vmul.f32 0.01, %v874_v15  ;;  %vm876_vm15 = vcmp.ge.f32.partialorder %v874_v15, 0.0 }
 0x5e8   : > { %v867_v13 = vsel %vm866_vm14, %v3908_v63, %v863_v12 }
 0x5e9   : > { %v869_v14 = vmul.f32 %v867_v13, %v835_v47  ;;  %v880_v20 = vsel %vm876_vm15, %v874_v15, %v878_v18 }
 0x5eb   : > { %v872_v16 = vmul.f32 %v3837_v4, %v869_v14  ;;  %v3736_v14 = vld [vmem:[%s4990_s7 + $0x18] sm:$0xff] }
 0x5ec   : > { %1055 = vmatpush.bf16.msrb.mxu1 %v3736_v14  ;;  %v3740_v14 = vld [vmem:[%s4992_s9 + $0x38] sm:$0xff] }
 0x5ed   : > { %v875_v17 = vadd.f32 %v3838_v10, %v872_v16  ;;  %v3735_v16 = vld [vmem:[%s4990_s7 + $0x10] sm:$0xff]  ;;  %1183 = vmatpush.bf16.msrb.mxu2 %v3740_v14 }
 0x5ee   : > { %v3741_v14 = vld [vmem:[%s4994_s11 + $0x10] sm:$0xff] }
 0x5ef   : > { %vm877_vm1 = vcmp.ge.f32.partialorder %v875_v17, 0.0  ;;  %v879_v19 = vmul.f32 0.01, %v875_v17 }
 0x5f0   : > { %1056 = vmatpush.bf16.msrb.mxu1 %v3735_v16  ;;  %v3739_v16 = vld [vmem:[%s4992_s9 + $0x30] sm:$0xff] }
 0x5f1   : > { %v881_v22 = vsel %vm877_vm1, %v875_v17, %v879_v19  ;;  %1184 = vmatpush.bf16.msrb.mxu2 %v3739_v16 }
 0x5f2   : > { %v882_v23 = vpack.c.bf16 %v881_v22, %v880_v20 }
 0x5f4   : > { %3390 = vmatmul.msk.bf16.vlgmr.msrb.gmra.mxu0 %vm580_vm3, %v882_v23 }
 0x671   : > { %v913_v26 = vpop.f32.mrf.mxu0 }
 0x672   : > { %v914_v27 = vadd.f32 %v3839_v25, %v913_v26 }
 0x674   : > { %v3391_v28 = vmul.f32 -1.442695, %v914_v27 }
 0x676   : > { %3909 = vpow2.f32 %v3391_v28 }
 0x679   : > { %v915_v29 = vpop.f32.mrf.mxu0 }
 0x67a   : > { %v916_v30 = vadd.f32 %v3839_v25, %v915_v29 }
 0x67c   : > { %v3910_v31 = vpop.eup %3909  ;;  %v3392_v33 = vmul.f32 -1.442695, %v916_v30 }
 0x67d   : > { %v924_v34 = vadd.f32 1.0, %v3910_v31  ;;  %v3840_v31 = vld [vmem:[%s4988_s5 + $0x3] ss:$0 sm:$0xff] }
 0x67e   : > { %3911 = vpow2.f32 %v3392_v33 }
 0x67f   : > { %3913 = vrcp.f32 %v924_v34  ;;  %v937_v40 = vand.u32 2147483648, %v924_v34  ;;  %v935_v42 = vand.u32 2147483647, %v924_v34  ;;  %vm931_vm4 = vweird.f32 %v924_v34 }
 0x681   : > { %v938_v45 = vor.u32 1.1754944e-38, %v937_v40  ;;  %vm936_vm6 = vcmp.eq.f32.partialorder %v935_v42, 8.507059e+37 }
 0x684   : > { %v3912_v35 = vpop.eup %3911 }
 0x685   : > { %v3914_v36 = vpop.eup %3913  ;;  %v925_v37 = vadd.f32 1.0, %v3912_v35 }
 0x686   : > { %v927_v38 = vmul.f32 %v3914_v36, %v924_v34  ;;  %vm932_vm2 = vweird.f32 %v3914_v36 }
 0x687   : > { %3915 = vrcp.f32 %v925_v37  ;;  %vm933_vm5 = vmor %vm931_vm4, %vm932_vm2  ;;  %v952_v50 = vand.u32 2147483648, %v925_v37  ;;  %v950_v52 = vand.u32 2147483647, %v925_v37  ;;  %vm946_vm9 = vweird.f32 %v925_v37 }
 0x688   : > { %v928_v39 = vsub.f32 1.0, %v927_v38 }
 0x689   : > { %v953_v54 = vor.u32 1.1754944e-38, %v952_v50  ;;  %vm951_vm11 = vcmp.eq.f32.partialorder %v950_v52, 8.507059e+37 }
 0x68a   : > { %v929_v41 = vmul.f32 %v3914_v36, %v928_v39 }
 0x68c   : > { %v930_v43 = vadd.f32 %v3914_v36, %v929_v41 }
 0x68d   : > { %v3916_v44 = vpop.eup %3915 }
 0x68e   : > { %v934_v46 = vsel %vm933_vm5, %v3914_v36, %v930_v43  ;;  %v942_v47 = vmul.f32 %v3916_v44, %v925_v37  ;;  %vm947_vm7 = vweird.f32 %v3916_v44  ;;  %v3841_v37 = vld [vmem:[%s4989_s6 + $0x3] ss:$0 sm:$0xff] }
 0x68f   : > { %v939_v48 = vsel %vm936_vm6, %v938_v45, %v934_v46  ;;  %vm948_vm10 = vmor %vm946_vm9, %vm947_vm7 }
 0x690   : > { %958 = vrot.lane.b32.xlu0 %v939_v48, %s5002_s17  ;;  %v943_v49 = vsub.f32 1.0, %v942_v47 }
 0x692   : > { %v944_v51 = vmul.f32 %v3916_v44, %v943_v49  ;;  %v3842_v49 = vld [vmem:[%s4991_s8 + $0x1] ss:$0 sm:$0xff] }
 0x694   : > { %v945_v53 = vadd.f32 %v3916_v44, %v944_v51 }
 0x696   : > { %v949_v55 = vsel %vm948_vm10, %v3916_v44, %v945_v53 }
 0x697   : > { %v954_v56 = vsel %vm951_vm11, %v953_v54, %v949_v55 }
 0x698   : > { %960 = vrot.lane.b32.xlu2 %v954_v56, %s5002_s17 }
 0x6f2   : > { %v961_v57 = vpop.permute.xlu2 %960 }
 0x6f3   : > { %v965_v58 = vmul.f32 %v961_v57, %v916_v30 }
 0x6f5   : > { %v4368_v59 = vadd.f32 %v965_v58, %v4277_v24 }
 0x6f7   : > { %v973_v60 = vsel %vm580_vm3, %v4368_v59, 0.0 }
 0x6f8   : > { %974 = vadd.xlane.f32.xlu1 %v973_v60 }
 0x702   : > { %v959_v61 = vpop.permute.xlu0 %958 }
 0x703   : > { %v964_v62 = vmul.f32 %v959_v61, %v914_v27 }
 0x705   : > { %v4373_v63 = vadd.f32 %v964_v62, %v4273_v21 }
 0x707   : > { %v970_v0 = vsel %vm580_vm3, %v4373_v63, 0.0 }
 0x708   : > { %971 = vadd.xlane.f32.xlu0 %v970_v0 }
 0x76b   : > { %v975_v1 = vpop.xlane.xlu1 %974 }
 0x76c   : > { %v977_v2 = vmul.f32 %v975_v1, %v4281_v32 }
 0x76e   : > { %v979_v3 = vsub.f32 %v4368_v59, %v977_v2 }
 0x770   : > { %v981_v24 = vmul.f32 %v979_v3, %v979_v3 }
 0x772   : > { %v985_v4 = vsel %vm580_vm3, %v981_v24, 0.0 }
 0x773   : > { %986 = vadd.xlane.f32.xlu2 %v985_v4 }
 0x77b   : > { %v972_v5 = vpop.xlane.xlu0 %971 }
 0x77c   : > { %v976_v6 = vmul.f32 %v972_v5, %v4281_v32 }
 0x77e   : > { %v978_v7 = vsub.f32 %v4373_v63, %v976_v6 }
 0x780   : > { %v980_v21 = vmul.f32 %v978_v7, %v978_v7 }
 0x782   : > { %v982_v8 = vsel %vm580_vm3, %v980_v21, 0.0 }
 0x783   : > { %983 = vadd.xlane.f32.xlu1 %v982_v8 }
 0x7e6   : > { %v987_v10 = vpop.xlane.xlu2 %986 }
 0x7e7   : > { %v989_v12 = vmul.f32 %v987_v10, %v4281_v32 }
 0x7e9   : > { %v991_v13 = vadd.f32 1e-05, %v989_v12 }
 0x7eb   : > { %3917 = vrsqrt.f32 %v991_v13  ;;  %vm1008_vm13 = vweird.f32 %v991_v13 }
 0x7f1   : > { %v3918_v15 = vpop.eup %3917 }
 0x7f2   : > { %v1003_v17 = vmul.f32 %v3918_v15, %v991_v13  ;;  %vm1009_vm12 = vweird.f32 %v3918_v15 }
 0x7f3   : > { %vm1010_vm14 = vmor %vm1008_vm13, %vm1009_vm12 }
 0x7f4   : > { %v1004_v18 = vmul.f32 %v3918_v15, %v1003_v17 }
 0x7f6   : > { %v1005_v19 = vmul.f32 0.5, %v1004_v18  ;;  %v984_v20 = vpop.xlane.xlu1 %983 }
 0x7f7   : > { %v988_v22 = vmul.f32 %v984_v20, %v4281_v32  ;;  %v3843_v20 = vld [vmem:[%s4988_s5 + $0x4] ss:$0 sm:$0xff] }
 0x7f8   : > { %v1006_v25 = vsub.f32 1.5, %v1005_v19 }
 0x7f9   : > { %v990_v23 = vadd.f32 1e-05, %v988_v22 }
 0x7fa   : > { %v1007_v26 = vmul.f32 %v3918_v15, %v1006_v25  ;;  %v3738_v25 = vld [vmem:[%s4992_s9 + $0x28] sm:$0xff] }
 0x7fb   : > { %3919 = vrsqrt.f32 %v990_v23  ;;  %vm998_vm1 = vweird.f32 %v990_v23  ;;  %1185 = vmatpush.bf16.msrb.mxu2 %v3738_v25 }
 0x7fc   : > { %v1011_v28 = vsel %vm1010_vm14, %v3918_v15, %v1007_v26 }
 0x7fd   : > { %v1013_v33 = vmul.f32 %v1011_v28, %v979_v3 }
 0x7ff   : > { %v1016_v36 = vmul.f32 %v3840_v31, %v1013_v33 }
 0x801   : > { %v3920_v27 = vpop.eup %3919  ;;  %v1019_v41 = vadd.f32 %v3841_v37, %v1016_v36 }
 0x802   : > { %v993_v29 = vmul.f32 %v3920_v27, %v990_v23  ;;  %vm999_vm15 = vweird.f32 %v3920_v27 }
 0x803   : > { %vm1000_vm2 = vmor %vm998_vm1, %vm999_vm15  ;;  %v1023_v44 = vmul.f32 0.01, %v1019_v41  ;;  %vm1021_vm4 = vcmp.ge.f32.partialorder %v1019_v41, 0.0  ;;  %vm1148_vm15 = vcmask 1040384  }
 0x804   : > { %v994_v30 = vmul.f32 %v3920_v27, %v993_v29 }
 0x805   : > { %v1025_v47 = vsel %vm1021_vm4, %v1019_v41, %v1023_v44 }
 0x806   : > { %v995_v34 = vmul.f32 0.5, %v994_v30 }
 0x808   : > { %v996_v35 = vsub.f32 1.5, %v995_v34 }
 0x80a   : > { %v997_v38 = vmul.f32 %v3920_v27, %v996_v35 }
 0x80c   : > { %v1001_v39 = vsel %vm1000_vm2, %v3920_v27, %v997_v38  ;;  %v3844_v27 = vld [vmem:[%s4989_s6 + $0x4] ss:$0 sm:$0xff] }
 0x80d   : > { %v1012_v40 = vmul.f32 %v1001_v39, %v978_v7 }
 0x80f   : > { %v1015_v42 = vmul.f32 %v3840_v31, %v1012_v40 }
 0x811   : > { %v1018_v43 = vadd.f32 %v3841_v37, %v1015_v42 }
 0x813   : > { %vm1020_vm5 = vcmp.ge.f32.partialorder %v1018_v43, 0.0  ;;  %v1022_v45 = vmul.f32 0.01, %v1018_v43 }
 0x815   : > { %v1024_v46 = vsel %vm1020_vm5, %v1018_v43, %v1022_v45 }
 0x816   : > { %v1026_v48 = vpack.c.bf16 %v1025_v47, %v1024_v46 }
 0x818   : > { %3405 = vmatmul.msk.bf16.vlgmr.msrb.gmra.mxu1 %vm580_vm3, %v1026_v48  ;;  %v3737_v48 = vld [vmem:[%s4992_s9 + $0x20] sm:$0xff] }
 0x819   : > { %1186 = vmatpush.bf16.msrb.mxu2 %v3737_v48  ;;  %v3848_v48 = vld [vmem:[%s4995_s12 + $0x1] ss:$0 sm:$0xff] }
 0x895   : > { %v1058_v50 = vpop.f32.mrf.mxu1 }
 0x896   : > { %v1059_v51 = vadd.f32 %v3842_v49, %v1058_v50 }
 0x898   : > { %v1065_v52 = vsel %vm580_vm3, %v1059_v51, 0.0 }
 0x899   : > { %1066 = vadd.xlane.f32.xlu1 %v1065_v52 }
 0x89d   : > { %v1060_v53 = vpop.f32.mrf.mxu1 }
 0x89e   : > { %v1061_v54 = vadd.f32 %v3842_v49, %v1060_v53 }
 0x8a0   : > { %v1068_v55 = vsel %vm580_vm3, %v1061_v54, 0.0 }
 0x8a1   : > { %1069 = vadd.xlane.f32.xlu1 %v1068_v55  ;;  %v3845_v55 = vld [vmem:[%s4993_s10 + $0x1] ss:$0 sm:$0xff] }
 0x90c   : > { %v1067_v56 = vpop.xlane.xlu1 %1066 }
 0x90d   : > { %v1071_v57 = vmul.f32 %v1067_v56, %v4281_v32 }
 0x90f   : > { %v1073_v58 = vsub.f32 %v1059_v51, %v1071_v57 }
 0x911   : > { %v1075_v60 = vmul.f32 %v1073_v58, %v1073_v58 }
 0x913   : > { %v1077_v61 = vsel %vm580_vm3, %v1075_v60, 0.0 }
 0x914   : > { %1078 = vadd.xlane.f32.xlu1 %v1077_v61  ;;  %v1070_v62 = vpop.xlane.xlu1 %1069 }
 0x915   : > { %v1072_v0 = vmul.f32 %v1070_v62, %v4281_v32 }
 0x917   : > { %v1074_v1 = vsub.f32 %v1061_v54, %v1072_v0 }
 0x919   : > { %v1076_v2 = vmul.f32 %v1074_v1, %v1074_v1 }
 0x91b   : > { %v1080_v3 = vsel %vm580_vm3, %v1076_v2, 0.0 }
 0x91c   : > { %1081 = vadd.xlane.f32.xlu0 %v1080_v3 }
 0x987   : > { %v1079_v24 = vpop.xlane.xlu1 %1078 }
 0x988   : > { %v1083_v4 = vmul.f32 %v1079_v24, %v4281_v32 }
 0x98a   : > { %v1085_v5 = vadd.f32 1e-05, %v1083_v4 }
 0x98c   : > { %3921 = vrsqrt.f32 %v1085_v5  ;;  %vm1093_vm7 = vweird.f32 %v1085_v5 }
 0x98f   : > { %v1082_v6 = vpop.xlane.xlu0 %1081 }
 0x990   : > { %v1084_v7 = vmul.f32 %v1082_v6, %v4281_v32 }
 0x992   : > { %v3922_v21 = vpop.eup %3921  ;;  %v1086_v8 = vadd.f32 1e-05, %v1084_v7 }
 0x993   : > { %v1088_v10 = vmul.f32 %v3922_v21, %v1085_v5  ;;  %vm1094_vm6 = vweird.f32 %v3922_v21 }
 0x994   : > { %3923 = vrsqrt.f32 %v1086_v8  ;;  %vm1095_vm9 = vmor %vm1093_vm7, %vm1094_vm6  ;;  %vm1103_vm11 = vweird.f32 %v1086_v8 }
 0x995   : > { %v1089_v12 = vmul.f32 %v3922_v21, %v1088_v10 }
 0x997   : > { %v1090_v13 = vmul.f32 0.5, %v1089_v12  ;;  %v3742_v12 = vld [vmem:[%s4994_s11 + $0x18] sm:$0xff] }
 0x998   : > { %1280 = vmatpush.bf16.msrb.mxu3 %v3742_v12 }
 0x999   : > { %v1091_v15 = vsub.f32 1.5, %v1090_v13 }
 0x99a   : > { %v3924_v17 = vpop.eup %3923 }
 0x99b   : > { %v1092_v18 = vmul.f32 %v3922_v21, %v1091_v15  ;;  %v1098_v19 = vmul.f32 %v3924_v17, %v1086_v8  ;;  %vm1104_vm10 = vweird.f32 %v3924_v17 }
 0x99c   : > { %vm1105_vm12 = vmor %vm1103_vm11, %vm1104_vm10  ;;  %1281 = vmatpush.bf16.msrb.mxu3 %v3741_v14 }
 0x99d   : > { %v1096_v22 = vsel %vm1095_vm9, %v3922_v21, %v1092_v18  ;;  %v1099_v23 = vmul.f32 %v3924_v17, %v1098_v19 }
 0x99e   : > { %v1107_v26 = vmul.f32 %v1096_v22, %v1073_v58 }
 0x99f   : > { %v1100_v28 = vmul.f32 0.5, %v1099_v23 }
 0x9a0   : > { %v1110_v29 = vmul.f32 %v3843_v20, %v1107_v26 }
 0x9a1   : > { %v1101_v30 = vsub.f32 1.5, %v1100_v28 }
 0x9a2   : > { %v1113_v31 = vadd.f32 %v3844_v27, %v1110_v29 }
 0x9a3   : > { %v1102_v33 = vmul.f32 %v3924_v17, %v1101_v30  ;;  %v3846_v30 = vld [vmem:[%s4988_s5 + $0x5] ss:$0 sm:$0xff] }
 0x9a4   : > { %v1117_v36 = vmul.f32 0.01, %v1113_v31  ;;  %vm1115_vm13 = vcmp.ge.f32.partialorder %v1113_v31, 0.0 }
 0x9a5   : > { %v1106_v34 = vsel %vm1105_vm12, %v3924_v17, %v1102_v33 }
 0x9a6   : > { %v1108_v35 = vmul.f32 %v1106_v34, %v1074_v1  ;;  %v1119_v39 = vsel %vm1115_vm13, %v1113_v31, %v1117_v36  ;;  %v3847_v36 = vld [vmem:[%s4989_s6 + $0x5] ss:$0 sm:$0xff] }
 0x9a7   : > { %v1121_v41 = vpack.c.bf16 %v1119_v39, %v1119_v39 }
 0x9a8   : > { %v1111_v37 = vmul.f32 %v3843_v20, %v1108_v35 }
 0x9a9   : > { %v1125_v44 = vunpack.c.l.b16 %v1121_v41 }
 0x9aa   : > { %v1114_v38 = vadd.f32 %v3844_v27, %v1111_v37 }
 0x9ac   : > { %vm1116_vm14 = vcmp.ge.f32.partialorder %v1114_v38, 0.0  ;;  %v1118_v40 = vmul.f32 0.01, %v1114_v38 }
 0x9ae   : > { %v1120_v42 = vsel %vm1116_vm14, %v1114_v38, %v1118_v40 }
 0x9af   : > { %v1122_v43 = vpack.c.bf16 %v1120_v42, %v1120_v42 }
 0x9b1   : > { %v1126_v45 = vunpack.c.l.b16 %v1122_v43 }
 0x9b3   : > { %v1127_v46 = vpack.c.b16 %v1126_v45, %v1125_v44 }
 0x9b5   : > { %v1128_v47 = vrot.slane %v1127_v46, 1 }
 0x9b7   : > { %1129 = vrot.lane.b32.xlu1 %v1128_v47, %s5004_s30 }
 0xa29   : > { %v1130_v49 = vpop.permute.xlu1 %1129 }
 0xa2a   : > { %v1132_v50 = vsel %vm580_vm3, 0, %v1130_v49  ;;  %v1134_v51 = vsel %vm580_vm3, %v1127_v46, %v1130_v49 }
 0xa2b   : > { %v1149_v52 = vrot.slane %v1132_v50, 7  ;;  %v1150_v53 = vrot.slane %v1134_v51, 7 }
 0xa2d   : > { %v1151_v54 = vsel %vm1148_vm15, %v1149_v52, %v1150_v53 }
 0xa2e   : > { %3430 = vmatmul.msk.bf16.vlgmr.msrb.gmra.mxu2 %vm806_vm8, %v1151_v54 }
 0xab1   : > { %v1188_v56 = vpop.f32.mrf.mxu2 }
 0xab2   : > { %v1189_v57 = vadd.f32 %v3845_v55, %v1188_v56 }
 0xab4   : > { %v1195_v58 = vsel %vm580_vm3, %v1189_v57, 0.0 }
 0xab5   : > { %1196 = vadd.xlane.f32.xlu0 %v1195_v58 }
 0xab9   : > { %v1190_v60 = vpop.f32.mrf.mxu2 }
 0xaba   : > { %v1191_v61 = vadd.f32 %v3845_v55, %v1190_v60 }
 0xabc   : > { %v1198_v62 = vsel %vm580_vm3, %v1191_v61, 0.0 }
 0xabd   : > { %1199 = vadd.xlane.f32.xlu0 %v1198_v62 }
 0xb28   : > { %v1197_v0 = vpop.xlane.xlu0 %1196 }
 0xb29   : > { %v1201_v1 = vmul.f32 %v1197_v0, %v4281_v32 }
 0xb2b   : > { %v1203_v2 = vsub.f32 %v1189_v57, %v1201_v1 }
 0xb2d   : > { %v1205_v3 = vmul.f32 %v1203_v2, %v1203_v2 }
 0xb2f   : > { %v1207_v24 = vsel %vm580_vm3, %v1205_v3, 0.0 }
 0xb30   : > { %1208 = vadd.xlane.f32.xlu2 %v1207_v24  ;;  %v1200_v4 = vpop.xlane.xlu0 %1199 }
 0xb31   : > { %v1202_v5 = vmul.f32 %v1200_v4, %v4281_v32 }
 0xb33   : > { %v1204_v6 = vsub.f32 %v1191_v61, %v1202_v5 }
 0xb35   : > { %v1206_v7 = vmul.f32 %v1204_v6, %v1204_v6 }
 0xb37   : > { %v1210_v21 = vsel %vm580_vm3, %v1206_v7, 0.0 }
 0xb38   : > { %1211 = vadd.xlane.f32.xlu0 %v1210_v21 }
 0xba3   : > { %v1209_v8 = vpop.xlane.xlu2 %1208 }
 0xba4   : > { %v1213_v10 = vmul.f32 %v1209_v8, %v4281_v32 }
 0xba6   : > { %v1215_v13 = vadd.f32 1e-05, %v1213_v10 }
 0xba8   : > { %3925 = vrsqrt.f32 %v1215_v13  ;;  %vm1223_vm2 = vweird.f32 %v1215_v13 }
 0xbab   : > { %v1212_v15 = vpop.xlane.xlu0 %1211 }
 0xbac   : > { %v1214_v16 = vmul.f32 %v1212_v15, %v4281_v32 }
 0xbae   : > { %v3926_v17 = vpop.eup %3925  ;;  %v1216_v18 = vadd.f32 1e-05, %v1214_v16 }
 0xbaf   : > { %v1218_v19 = vmul.f32 %v3926_v17, %v1215_v13  ;;  %vm1224_vm1 = vweird.f32 %v3926_v17 }
 0xbb0   : > { %3927 = vrsqrt.f32 %v1216_v18  ;;  %vm1225_vm4 = vmor %vm1223_vm2, %vm1224_vm1  ;;  %vm1233_vm6 = vweird.f32 %v1216_v18 }
 0xbb1   : > { %v1219_v20 = vmul.f32 %v3926_v17, %v1218_v19 }
 0xbb3   : > { %v1220_v22 = vmul.f32 0.5, %v1219_v20 }
 0xbb5   : > { %v1221_v23 = vsub.f32 1.5, %v1220_v22 }
 0xbb6   : > { %v3928_v25 = vpop.eup %3927 }
 0xbb7   : > { %v1222_v26 = vmul.f32 %v3926_v17, %v1221_v23  ;;  %v1228_v27 = vmul.f32 %v3928_v25, %v1216_v18  ;;  %vm1234_vm5 = vweird.f32 %v3928_v25 }
 0xbb8   : > { %vm1235_vm7 = vmor %vm1233_vm6, %vm1234_vm5 }
 0xbb9   : > { %v1226_v28 = vsel %vm1225_vm4, %v3926_v17, %v1222_v26  ;;  %v1229_v29 = vmul.f32 %v3928_v25, %v1228_v27 }
 0xbba   : > { %v1237_v31 = vmul.f32 %v1226_v28, %v1203_v2 }
 0xbbb   : > { %v1230_v33 = vmul.f32 0.5, %v1229_v29 }
 0xbbc   : > { %v1240_v35 = vmul.f32 %v3846_v30, %v1237_v31 }
 0xbbd   : > { %v1231_v34 = vsub.f32 1.5, %v1230_v33 }
 0xbbe   : > { %v1243_v40 = vadd.f32 %v3847_v36, %v1240_v35 }
 0xbbf   : > { %v1232_v37 = vmul.f32 %v3928_v25, %v1231_v34 }
 0xbc0   : > { %v1247_v43 = vmul.f32 0.01, %v1243_v40  ;;  %vm1245_vm9 = vcmp.ge.f32.partialorder %v1243_v40, 0.0 }
 0xbc1   : > { %v1236_v38 = vsel %vm1235_vm7, %v3928_v25, %v1232_v37 }
 0xbc2   : > { %v1238_v39 = vmul.f32 %v1236_v38, %v1204_v6  ;;  %v1249_v45 = vsel %vm1245_vm9, %v1243_v40, %v1247_v43 }
 0xbc4   : > { %v1241_v41 = vmul.f32 %v3846_v30, %v1238_v39 }
 0xbc6   : > { %v1244_v42 = vadd.f32 %v3847_v36, %v1241_v41  ;;  %v3744_v41 = vld [vmem:[%s4990_s7 + $0x28] sm:$0xff] }
 0xbc7   : > { %1425 = vmatpush.bf16.msra.mxu0 %v3744_v41  ;;  %v3747_v41 = vld [vmem:[%s4992_s9 + $0x50] sm:$0xff] }
 0xbc8   : > { %vm1246_vm10 = vcmp.ge.f32.partialorder %v1244_v42, 0.0  ;;  %v1248_v44 = vmul.f32 0.01, %v1244_v42 }
 0xbca   : > { %v1250_v46 = vsel %vm1246_vm10, %v1244_v42, %v1248_v44  ;;  %v3743_v42 = vld [vmem:[%s4990_s7 + $0x20] sm:$0xff] }
 0xbcb   : > { %v1251_v47 = vpack.c.bf16 %v1250_v46, %v1249_v45  ;;  %1426 = vmatpush.bf16.msra.mxu0 %v3743_v42 }
 0xbcd   : > { %3443 = vmatmul.msk.bf16.vlgmr.msrb.gmra.mxu3 %vm580_vm3, %v1251_v47 }
 0xc50   : > { %v1283_v49 = vpop.f32.mrf.mxu3 }
 0xc51   : > { %v1284_v50 = vadd.f32 %v3848_v48, %v1283_v49 }
 0xc53   : > { %v3444_v51 = vmul.f32 -1.442695, %v1284_v50 }
 0xc55   : > { %3929 = vpow2.f32 %v3444_v51 }
 0xc58   : > { %v1285_v52 = vpop.f32.mrf.mxu3 }
 0xc59   : > { %v1286_v53 = vadd.f32 %v3848_v48, %v1285_v52 }
 0xc5b   : > { %v3930_v54 = vpop.eup %3929  ;;  %v3445_v55 = vmul.f32 -1.442695, %v1286_v53 }
 0xc5c   : > { %v1294_v56 = vadd.f32 1.0, %v3930_v54  ;;  %v3849_v54 = vld [vmem:[%s4988_s5 + $0x6] ss:$0 sm:$0xff] }
 0xc5d   : > { %3931 = vpow2.f32 %v3445_v55 }
 0xc5e   : > { %3933 = vrcp.f32 %v1294_v56  ;;  %v1307_v0 = vand.u32 2147483648, %v1294_v56  ;;  %v1305_v2 = vand.u32 2147483647, %v1294_v56  ;;  %vm1301_vm12 = vweird.f32 %v1294_v56 }
 0xc60   : > { %v1308_v4 = vor.u32 1.1754944e-38, %v1307_v0  ;;  %vm1306_vm14 = vcmp.eq.f32.partialorder %v1305_v2, 8.507059e+37 }
 0xc63   : > { %v3932_v57 = vpop.eup %3931 }
 0xc64   : > { %v3934_v58 = vpop.eup %3933  ;;  %v1295_v60 = vadd.f32 1.0, %v3932_v57 }
 0xc65   : > { %v1297_v61 = vmul.f32 %v3934_v58, %v1294_v56  ;;  %vm1302_vm11 = vweird.f32 %v3934_v58 }
 0xc66   : > { %3935 = vrcp.f32 %v1295_v60  ;;  %vm1303_vm13 = vmor %vm1301_vm12, %vm1302_vm11  ;;  %v1322_v8 = vand.u32 2147483648, %v1295_v60  ;;  %v1320_v12 = vand.u32 2147483647, %v1295_v60  ;;  %vm1316_vm1 = vweird.f32 %v1295_v60 }
 0xc67   : > { %v1298_v62 = vsub.f32 1.0, %v1297_v61 }
 0xc68   : > { %v1323_v14 = vor.u32 1.1754944e-38, %v1322_v8  ;;  %vm1321_vm4 = vcmp.eq.f32.partialorder %v1320_v12, 8.507059e+37 }
 0xc69   : > { %v1299_v1 = vmul.f32 %v3934_v58, %v1298_v62 }
 0xc6b   : > { %v1300_v3 = vadd.f32 %v3934_v58, %v1299_v1 }
 0xc6c   : > { %v3936_v24 = vpop.eup %3935 }
 0xc6d   : > { %v1304_v5 = vsel %vm1303_vm13, %v3934_v58, %v1300_v3  ;;  %v1312_v6 = vmul.f32 %v3936_v24, %v1295_v60  ;;  %vm1317_vm15 = vweird.f32 %v3936_v24  ;;  %v3850_v58 = vld [vmem:[%s4989_s6 + $0x6] ss:$0 sm:$0xff] }
 0xc6e   : > { %v1309_v7 = vsel %vm1306_vm14, %v1308_v4, %v1304_v5  ;;  %vm1318_vm2 = vmor %vm1316_vm1, %vm1317_vm15 }
 0xc6f   : > { %1328 = vrot.lane.b32.xlu2 %v1309_v7, %s5002_s17  ;;  %v1313_v21 = vsub.f32 1.0, %v1312_v6 }
 0xc71   : > { %v1314_v10 = vmul.f32 %v3936_v24, %v1313_v21  ;;  %v3851_v21 = vld [vmem:[%s4991_s8 + $0x2] ss:$0 sm:$0xff] }
 0xc73   : > { %v1315_v13 = vadd.f32 %v3936_v24, %v1314_v10 }
 0xc75   : > { %v1319_v15 = vsel %vm1318_vm2, %v3936_v24, %v1315_v13 }
 0xc76   : > { %v1324_v16 = vsel %vm1321_vm4, %v1323_v14, %v1319_v15 }
 0xc77   : > { %1330 = vrot.lane.b32.xlu1 %v1324_v16, %s5002_s17 }
 0xcc9   : > { %v1329_v17 = vpop.permute.xlu2 %1328 }
 0xcca   : > { %v1334_v18 = vmul.f32 %v1329_v17, %v1284_v50 }
 0xccc   : > { %v4461_v19 = vadd.f32 %v1334_v18, %v4373_v63 }
 0xcce   : > { %v1340_v20 = vsel %vm580_vm3, %v4461_v19, 0.0 }
 0xccf   : > { %1341 = vadd.xlane.f32.xlu0 %v1340_v20 }
 0xce9   : > { %v1331_v22 = vpop.permute.xlu1 %1330 }
 0xcea   : > { %v1335_v23 = vmul.f32 %v1331_v22, %v1286_v53 }
 0xcec   : > { %v4466_v25 = vadd.f32 %v1335_v23, %v4368_v59 }
 0xcee   : > { %v1343_v26 = vsel %vm580_vm3, %v4466_v25, 0.0 }
 0xcef   : > { %1344 = vadd.xlane.f32.xlu1 %v1343_v26 }
 0xd42   : > { %v1342_v27 = vpop.xlane.xlu0 %1341 }
 0xd43   : > { %v1346_v28 = vmul.f32 %v1342_v27, %v4281_v32 }
 0xd45   : > { %v1348_v29 = vsub.f32 %v4461_v19, %v1346_v28 }
 0xd47   : > { %v1350_v63 = vmul.f32 %v1348_v29, %v1348_v29 }
 0xd49   : > { %v1352_v30 = vsel %vm580_vm3, %v1350_v63, 0.0 }
 0xd4a   : > { %1353 = vadd.xlane.f32.xlu0 %v1352_v30 }
 0xd62   : > { %v1345_v31 = vpop.xlane.xlu1 %1344 }
 0xd63   : > { %v1347_v33 = vmul.f32 %v1345_v31, %v4281_v32 }
 0xd65   : > { %v1349_v34 = vsub.f32 %v4466_v25, %v1347_v33 }
 0xd67   : > { %v1351_v59 = vmul.f32 %v1349_v34, %v1349_v34 }
 0xd69   : > { %v1355_v35 = vsel %vm580_vm3, %v1351_v59, 0.0 }
 0xd6a   : > { %1356 = vadd.xlane.f32.xlu0 %v1355_v35 }
 0xdbd   : > { %v1354_v36 = vpop.xlane.xlu0 %1353 }
 0xdbe   : > { %v1358_v37 = vmul.f32 %v1354_v36, %v4281_v32 }
 0xdc0   : > { %v1360_v38 = vadd.f32 1e-05, %v1358_v37 }
 0xdc2   : > { %3937 = vrsqrt.f32 %v1360_v38  ;;  %vm1368_vm6 = vweird.f32 %v1360_v38 }
 0xdc8   : > { %v3938_v39 = vpop.eup %3937 }
 0xdc9   : > { %v1363_v40 = vmul.f32 %v3938_v39, %v1360_v38  ;;  %vm1369_vm5 = vweird.f32 %v3938_v39 }
 0xdca   : > { %vm1370_vm7 = vmor %vm1368_vm6, %vm1369_vm5 }
 0xdcb   : > { %v1364_v43 = vmul.f32 %v3938_v39, %v1363_v40 }
 0xdcd   : > { %v1365_v44 = vmul.f32 0.5, %v1364_v43 }
 0xdcf   : > { %v1366_v48 = vsub.f32 1.5, %v1365_v44 }
 0xdd1   : > { %v1367_v49 = vmul.f32 %v3938_v39, %v1366_v48  ;;  %v3746_v48 = vld [vmem:[%s4992_s9 + $0x48] sm:$0xff] }
 0xdd3   : > { %v1371_v51 = vsel %vm1370_vm7, %v3938_v39, %v1367_v49  ;;  %v3748_v39 = vld [vmem:[%s4992_s9 + $0x58] sm:$0xff] }
 0xdd4   : > { %v1382_v55 = vmul.f32 %v1371_v51, %v1348_v29  ;;  %1553 = vmatpush.bf16.msra.mxu1 %v3748_v39  ;;  %v3749_v39 = vld [vmem:[%s4994_s11 + $0x20] sm:$0xff] }
 0xdd6   : > { %v1385_v60 = vmul.f32 %v3849_v54, %v1382_v55 }
 0xdd8   : > { %v1388_v0 = vadd.f32 %v3850_v58, %v1385_v60  ;;  %1554 = vmatpush.bf16.msra.mxu1 %v3747_v41 }
 0xdda   : > { %v1392_v24 = vmul.f32 0.01, %v1388_v0  ;;  %vm1390_vm12 = vcmp.ge.f32.partialorder %v1388_v0, 0.0 }
 0xddc   : > { %v1394_v5 = vsel %vm1390_vm12, %v1388_v0, %v1392_v24  ;;  %1555 = vmatpush.bf16.msra.mxu1 %v3746_v48 }
 0xddd   : > { %v1357_v45 = vpop.xlane.xlu0 %1356 }
 0xdde   : > { %v1359_v46 = vmul.f32 %v1357_v45, %v4281_v32  ;;  %v3852_v45 = vld [vmem:[%s4988_s5 + $0x7] ss:$0 sm:$0xff] }
 0xde0   : > { %v1361_v47 = vadd.f32 1e-05, %v1359_v46 }
 0xde2   : > { %3939 = vrsqrt.f32 %v1361_v47  ;;  %vm1378_vm10 = vweird.f32 %v1361_v47 }
 0xde8   : > { %v3940_v50 = vpop.eup %3939 }
 0xde9   : > { %v1373_v52 = vmul.f32 %v3940_v50, %v1361_v47  ;;  %vm1379_vm9 = vweird.f32 %v3940_v50 }
 0xdea   : > { %vm1380_vm11 = vmor %vm1378_vm10, %vm1379_vm9  ;;  %vm1518_vm9 = vcmask 1041408  }
 0xdeb   : > { %v1374_v53 = vmul.f32 %v3940_v50, %v1373_v52 }
 0xded   : > { %v1375_v56 = vmul.f32 0.5, %v1374_v53 }
 0xdef   : > { %v1376_v57 = vsub.f32 1.5, %v1375_v56 }
 0xdf1   : > { %v1377_v61 = vmul.f32 %v3940_v50, %v1376_v57 }
 0xdf3   : > { %v1381_v62 = vsel %vm1380_vm11, %v3940_v50, %v1377_v61  ;;  %v3853_v50 = vld [vmem:[%s4989_s6 + $0x7] ss:$0 sm:$0xff] }
 0xdf4   : > { %v1383_v1 = vmul.f32 %v1381_v62, %v1349_v34 }
 0xdf6   : > { %v1386_v2 = vmul.f32 %v3849_v54, %v1383_v1 }
 0xdf8   : > { %v1389_v3 = vadd.f32 %v3850_v58, %v1386_v2 }
 0xdfa   : > { %vm1391_vm13 = vcmp.ge.f32.partialorder %v1389_v3, 0.0  ;;  %v1393_v4 = vmul.f32 0.01, %v1389_v3 }
 0xdfc   : > { %v1395_v6 = vsel %vm1391_vm13, %v1389_v3, %v1393_v4 }
 0xdfd   : > { %v1396_v7 = vpack.c.bf16 %v1395_v6, %v1394_v5 }
 0xdff   : > { %3458 = vmatmul.msk.bf16.vlgmr.msra.gmra.mxu0 %vm580_vm3, %v1396_v7  ;;  %v3745_v7 = vld [vmem:[%s4992_s9 + $0x40] sm:$0xff] }
 0xe00   : > { %1556 = vmatpush.bf16.msra.mxu1 %v3745_v7  ;;  %v3857_v7 = vld [vmem:[%s4995_s12 + $0x2] ss:$0 sm:$0xff] }
 0xe7c   : > { %v1428_v8 = vpop.f32.mrf.mxu0 }
 0xe7d   : > { %v1429_v10 = vadd.f32 %v3851_v21, %v1428_v8 }
 0xe7f   : > { %v1435_v12 = vsel %vm580_vm3, %v1429_v10, 0.0 }
 0xe80   : > { %1436 = vadd.xlane.f32.xlu2 %v1435_v12 }
 0xe84   : > { %v1430_v13 = vpop.f32.mrf.mxu0 }
 0xe85   : > { %v1431_v14 = vadd.f32 %v3851_v21, %v1430_v13 }
 0xe87   : > { %v1438_v15 = vsel %vm580_vm3, %v1431_v14, 0.0 }
 0xe88   : > { %1439 = vadd.xlane.f32.xlu0 %v1438_v15  ;;  %v3854_v15 = vld [vmem:[%s4993_s10 + $0x2] ss:$0 sm:$0xff] }
 0xef3   : > { %v1437_v16 = vpop.xlane.xlu2 %1436 }
 0xef4   : > { %v1441_v17 = vmul.f32 %v1437_v16, %v4281_v32 }
 0xef6   : > { %v1443_v18 = vsub.f32 %v1429_v10, %v1441_v17 }
 0xef8   : > { %v1445_v20 = vmul.f32 %v1443_v18, %v1443_v18 }
 0xefa   : > { %v1447_v22 = vsel %vm580_vm3, %v1445_v20, 0.0 }
 0xefb   : > { %v1440_v23 = vpop.xlane.xlu0 %1439  ;;  %1448 = vadd.xlane.f32.xlu0 %v1447_v22 }
 0xefc   : > { %v1442_v26 = vmul.f32 %v1440_v23, %v4281_v32 }
 0xefe   : > { %v1444_v27 = vsub.f32 %v1431_v14, %v1442_v26 }
 0xf00   : > { %v1446_v28 = vmul.f32 %v1444_v27, %v1444_v27 }
 0xf02   : > { %v1450_v29 = vsel %vm580_vm3, %v1446_v28, 0.0 }
 0xf03   : > { %1451 = vadd.xlane.f32.xlu0 %v1450_v29 }
 0xf6e   : > { %v1449_v63 = vpop.xlane.xlu0 %1448 }
 0xf6f   : > { %v1453_v30 = vmul.f32 %v1449_v63, %v4281_v32 }
 0xf71   : > { %v1455_v31 = vadd.f32 1e-05, %v1453_v30 }
 0xf73   : > { %3941 = vrsqrt.f32 %v1455_v31  ;;  %vm1463_vm15 = vweird.f32 %v1455_v31 }
 0xf76   : > { %v1452_v33 = vpop.xlane.xlu0 %1451 }
 0xf77   : > { %v1454_v34 = vmul.f32 %v1452_v33, %v4281_v32 }
 0xf79   : > { %v3942_v59 = vpop.eup %3941  ;;  %v1456_v35 = vadd.f32 1e-05, %v1454_v34 }
 0xf7a   : > { %v1458_v36 = vmul.f32 %v3942_v59, %v1455_v31  ;;  %vm1464_vm14 = vweird.f32 %v3942_v59 }
 0xf7b   : > { %3943 = vrsqrt.f32 %v1456_v35  ;;  %vm1465_vm1 = vmor %vm1463_vm15, %vm1464_vm14  ;;  %vm1473_vm4 = vweird.f32 %v1456_v35 }
 0xf7c   : > { %v1459_v37 = vmul.f32 %v3942_v59, %v1458_v36 }
 0xf7e   : > { %v1460_v38 = vmul.f32 0.5, %v1459_v37  ;;  %v3750_v37 = vld [vmem:[%s4994_s11 + $0x28] sm:$0xff] }
 0xf7f   : > { %1650 = vmatpush.bf16.msra.mxu2 %v3750_v37 }
 0xf80   : > { %v1461_v40 = vsub.f32 1.5, %v1460_v38 }
 0xf81   : > { %v3944_v42 = vpop.eup %3943 }
 0xf82   : > { %v1462_v43 = vmul.f32 %v3942_v59, %v1461_v40  ;;  %v1468_v44 = vmul.f32 %v3944_v42, %v1456_v35  ;;  %vm1474_vm2 = vweird.f32 %v3944_v42 }
 0xf83   : > { %vm1475_vm5 = vmor %vm1473_vm4, %vm1474_vm2  ;;  %1651 = vmatpush.bf16.msra.mxu2 %v3749_v39 }
 0xf84   : > { %v1466_v46 = vsel %vm1465_vm1, %v3942_v59, %v1462_v43  ;;  %v1469_v47 = vmul.f32 %v3944_v42, %v1468_v44 }
 0xf85   : > { %v1477_v49 = vmul.f32 %v1466_v46, %v1443_v18 }
 0xf86   : > { %v1470_v51 = vmul.f32 0.5, %v1469_v47 }
 0xf87   : > { %v1480_v52 = vmul.f32 %v3852_v45, %v1477_v49 }
 0xf88   : > { %v1471_v53 = vsub.f32 1.5, %v1470_v51 }
 0xf89   : > { %v1483_v54 = vadd.f32 %v3853_v50, %v1480_v52 }
 0xf8a   : > { %v1472_v55 = vmul.f32 %v3944_v42, %v1471_v53  ;;  %v3855_v53 = vld [vmem:[%s4988_s5 + $0x8] ss:$0 sm:$0xff] }
 0xf8b   : > { %v1487_v58 = vmul.f32 0.01, %v1483_v54  ;;  %vm1485_vm6 = vcmp.ge.f32.partialorder %v1483_v54, 0.0 }
 0xf8c   : > { %v1476_v56 = vsel %vm1475_vm5, %v3944_v42, %v1472_v55 }
 0xf8d   : > { %v1478_v57 = vmul.f32 %v1476_v56, %v1444_v27  ;;  %v1489_v62 = vsel %vm1485_vm6, %v1483_v54, %v1487_v58 }
 0xf8e   : > { %v1491_v1 = vpack.c.bf16 %v1489_v62, %v1489_v62 }
 0xf8f   : > { %v1481_v60 = vmul.f32 %v3852_v45, %v1478_v57  ;;  %v3856_v57 = vld [vmem:[%s4989_s6 + $0x8] ss:$0 sm:$0xff] }
 0xf90   : > { %v1495_v24 = vunpack.c.l.b16 %v1491_v1 }
 0xf91   : > { %v1484_v61 = vadd.f32 %v3853_v50, %v1481_v60 }
 0xf93   : > { %vm1486_vm7 = vcmp.ge.f32.partialorder %v1484_v61, 0.0  ;;  %v1488_v0 = vmul.f32 0.01, %v1484_v61 }
 0xf95   : > { %v1490_v2 = vsel %vm1486_vm7, %v1484_v61, %v1488_v0 }
 0xf96   : > { %v1492_v3 = vpack.c.bf16 %v1490_v2, %v1490_v2 }
 0xf98   : > { %v1496_v4 = vunpack.c.l.b16 %v1492_v3 }
 0xf9a   : > { %v1497_v5 = vpack.c.b16 %v1496_v4, %v1495_v24 }
 0xf9c   : > { %v1498_v6 = vrot.slane %v1497_v5, 2 }
 0xf9e   : > { %1499 = vrot.lane.b32.xlu1 %v1498_v6, %s5004_s30 }
0x1010   : > { %v1500_v21 = vpop.permute.xlu1 %1499 }
0x1011   : > { %v1502_v8 = vsel %vm580_vm3, 0, %v1500_v21  ;;  %v1504_v10 = vsel %vm580_vm3, %v1497_v5, %v1500_v21 }
0x1012   : > { %v1519_v12 = vrot.slane %v1502_v8, 6  ;;  %v1520_v13 = vrot.slane %v1504_v10, 6 }
0x1014   : > { %v1521_v14 = vsel %vm1518_vm9, %v1519_v12, %v1520_v13 }
0x1015   : > { %3483 = vmatmul.msk.bf16.vlgmr.msra.gmra.mxu1 %vm806_vm8, %v1521_v14 }
0x1092   : > { %v1558_v16 = vpop.f32.mrf.mxu1 }
0x1093   : > { %v1559_v17 = vadd.f32 %v3854_v15, %v1558_v16 }
0x1095   : > { %v1565_v18 = vsel %vm580_vm3, %v1559_v17, 0.0 }
0x1096   : > { %1566 = vadd.xlane.f32.xlu0 %v1565_v18 }
0x109a   : > { %v1560_v20 = vpop.f32.mrf.mxu1 }
0x109b   : > { %v1561_v22 = vadd.f32 %v3854_v15, %v1560_v20 }
0x109d   : > { %v1568_v23 = vsel %vm580_vm3, %v1561_v22, 0.0 }
0x109e   : > { %1569 = vadd.xlane.f32.xlu0 %v1568_v23 }
0x1109   : > { %v1567_v26 = vpop.xlane.xlu0 %1566 }
0x110a   : > { %v1571_v27 = vmul.f32 %v1567_v26, %v4281_v32 }
0x110c   : > { %v1573_v28 = vsub.f32 %v1559_v17, %v1571_v27 }
0x110e   : > { %v1575_v29 = vmul.f32 %v1573_v28, %v1573_v28 }
0x1110   : > { %v1577_v63 = vsel %vm580_vm3, %v1575_v29, 0.0 }
0x1111   : > { %1578 = vadd.xlane.f32.xlu2 %v1577_v63  ;;  %v1570_v30 = vpop.xlane.xlu0 %1569 }
0x1112   : > { %v1572_v31 = vmul.f32 %v1570_v30, %v4281_v32 }
0x1114   : > { %v1574_v33 = vsub.f32 %v1561_v22, %v1572_v31 }
0x1116   : > { %v1576_v34 = vmul.f32 %v1574_v33, %v1574_v33 }
0x1118   : > { %v1580_v59 = vsel %vm580_vm3, %v1576_v34, 0.0 }
0x1119   : > { %1581 = vadd.xlane.f32.xlu0 %v1580_v59 }
0x1184   : > { %v1579_v35 = vpop.xlane.xlu2 %1578 }
0x1185   : > { %v1583_v36 = vmul.f32 %v1579_v35, %v4281_v32 }
0x1187   : > { %v1585_v38 = vadd.f32 1e-05, %v1583_v36 }
0x1189   : > { %3945 = vrsqrt.f32 %v1585_v38  ;;  %vm1593_vm11 = vweird.f32 %v1585_v38 }
0x118c   : > { %v1582_v40 = vpop.xlane.xlu0 %1581 }
0x118d   : > { %v1584_v41 = vmul.f32 %v1582_v40, %v4281_v32 }
0x118f   : > { %v3946_v42 = vpop.eup %3945  ;;  %v1586_v43 = vadd.f32 1e-05, %v1584_v41 }
0x1190   : > { %v1588_v44 = vmul.f32 %v3946_v42, %v1585_v38  ;;  %vm1594_vm10 = vweird.f32 %v3946_v42 }
0x1191   : > { %3947 = vrsqrt.f32 %v1586_v43  ;;  %vm1595_vm12 = vmor %vm1593_vm11, %vm1594_vm10  ;;  %vm1603_vm14 = vweird.f32 %v1586_v43 }
0x1192   : > { %v1589_v45 = vmul.f32 %v3946_v42, %v1588_v44 }
0x1194   : > { %v1590_v46 = vmul.f32 0.5, %v1589_v45 }
0x1196   : > { %v1591_v47 = vsub.f32 1.5, %v1590_v46 }
0x1197   : > { %v3948_v48 = vpop.eup %3947 }
0x1198   : > { %v1592_v49 = vmul.f32 %v3946_v42, %v1591_v47  ;;  %v1598_v50 = vmul.f32 %v3948_v48, %v1586_v43  ;;  %vm1604_vm13 = vweird.f32 %v3948_v48 }
0x1199   : > { %vm1605_vm15 = vmor %vm1603_vm14, %vm1604_vm13 }
0x119a   : > { %v1596_v51 = vsel %vm1595_vm12, %v3946_v42, %v1592_v49  ;;  %v1599_v52 = vmul.f32 %v3948_v48, %v1598_v50 }
0x119b   : > { %v1607_v54 = vmul.f32 %v1596_v51, %v1573_v28 }
0x119c   : > { %v1600_v55 = vmul.f32 0.5, %v1599_v52 }
0x119d   : > { %v1610_v58 = vmul.f32 %v3855_v53, %v1607_v54 }
0x119e   : > { %v1601_v56 = vsub.f32 1.5, %v1600_v55 }
0x119f   : > { %v1613_v62 = vadd.f32 %v3856_v57, %v1610_v58 }
0x11a0   : > { %v1602_v60 = vmul.f32 %v3948_v48, %v1601_v56 }
0x11a1   : > { %v1617_v3 = vmul.f32 0.01, %v1613_v62  ;;  %vm1615_vm1 = vcmp.ge.f32.partialorder %v1613_v62, 0.0 }
0x11a2   : > { %v1606_v61 = vsel %vm1605_vm15, %v3948_v48, %v1602_v60 }
0x11a3   : > { %v1608_v0 = vmul.f32 %v1606_v61, %v1574_v33  ;;  %v1619_v4 = vsel %vm1615_vm1, %v1613_v62, %v1617_v3 }
0x11a5   : > { %v1611_v1 = vmul.f32 %v3855_v53, %v1608_v0 }
0x11a7   : > { %v1614_v2 = vadd.f32 %v3856_v57, %v1611_v1  ;;  %v3752_v1 = vld [vmem:[%s4990_s7 + $0x38] sm:$0xff] }
0x11a8   : > { %1795 = vmatpush.bf16.msra.mxu3 %v3752_v1 }
0x11a9   : > { %vm1616_vm2 = vcmp.ge.f32.partialorder %v1614_v2, 0.0  ;;  %v1618_v24 = vmul.f32 0.01, %v1614_v2 }
0x11ab   : > { %v1620_v5 = vsel %vm1616_vm2, %v1614_v2, %v1618_v24  ;;  %v3751_v2 = vld [vmem:[%s4990_s7 + $0x30] sm:$0xff] }
0x11ac   : > { %v1621_v6 = vpack.c.bf16 %v1620_v5, %v1619_v4  ;;  %1796 = vmatpush.bf16.msra.mxu3 %v3751_v2 }
0x11ae   : > { %3496 = vmatmul.msk.bf16.vlgmr.msra.gmra.mxu2 %vm580_vm3, %v1621_v6 }
0x1231   : > { %v1653_v21 = vpop.f32.mrf.mxu2 }
0x1232   : > { %v1654_v8 = vadd.f32 %v3857_v7, %v1653_v21 }
0x1234   : > { %v3497_v10 = vmul.f32 -1.442695, %v1654_v8 }
0x1236   : > { %3949 = vpow2.f32 %v3497_v10 }
0x1239   : > { %v1655_v12 = vpop.f32.mrf.mxu2 }
0x123a   : > { %v1656_v13 = vadd.f32 %v3857_v7, %v1655_v12 }
0x123c   : > { %v3950_v14 = vpop.eup %3949  ;;  %v3498_v15 = vmul.f32 -1.442695, %v1656_v13 }
0x123d   : > { %v1664_v16 = vadd.f32 1.0, %v3950_v14  ;;  %v3858_v14 = vld [vmem:[%s4988_s5 + $0x9] ss:$0 sm:$0xff] }
0x123e   : > { %3951 = vpow2.f32 %v3498_v15 }
0x123f   : > { %3953 = vrcp.f32 %v1664_v16  ;;  %v1677_v26 = vand.u32 2147483648, %v1664_v16  ;;  %v1675_v28 = vand.u32 2147483647, %v1664_v16  ;;  %vm1671_vm5 = vweird.f32 %v1664_v16 }
0x1241   : > { %v1678_v30 = vor.u32 1.1754944e-38, %v1677_v26  ;;  %vm1676_vm7 = vcmp.eq.f32.partialorder %v1675_v28, 8.507059e+37 }
0x1244   : > { %v3952_v17 = vpop.eup %3951 }
0x1245   : > { %v3954_v18 = vpop.eup %3953  ;;  %v1665_v20 = vadd.f32 1.0, %v3952_v17 }
0x1246   : > { %v1667_v22 = vmul.f32 %v3954_v18, %v1664_v16  ;;  %vm1672_vm4 = vweird.f32 %v3954_v18 }
0x1247   : > { %3955 = vrcp.f32 %v1665_v20  ;;  %vm1673_vm6 = vmor %vm1671_vm5, %vm1672_vm4  ;;  %v1692_v35 = vand.u32 2147483648, %v1665_v20  ;;  %v1690_v37 = vand.u32 2147483647, %v1665_v20  ;;  %vm1686_vm10 = vweird.f32 %v1665_v20 }
0x1248   : > { %v1668_v23 = vsub.f32 1.0, %v1667_v22 }
0x1249   : > { %v1693_v39 = vor.u32 1.1754944e-38, %v1692_v35  ;;  %vm1691_vm12 = vcmp.eq.f32.partialorder %v1690_v37, 8.507059e+37 }
0x124a   : > { %v1669_v27 = vmul.f32 %v3954_v18, %v1668_v23 }
0x124c   : > { %v1670_v29 = vadd.f32 %v3954_v18, %v1669_v27 }
0x124d   : > { %v3956_v63 = vpop.eup %3955 }
0x124e   : > { %v1674_v31 = vsel %vm1673_vm6, %v3954_v18, %v1670_v29  ;;  %v1682_v33 = vmul.f32 %v3956_v63, %v1665_v20  ;;  %vm1687_vm9 = vweird.f32 %v3956_v63  ;;  %v3859_v18 = vld [vmem:[%s4989_s6 + $0x9] ss:$0 sm:$0xff] }
0x124f   : > { %v1679_v34 = vsel %vm1676_vm7, %v1678_v30, %v1674_v31  ;;  %vm1688_vm11 = vmor %vm1686_vm10, %vm1687_vm9 }
0x1250   : > { %1698 = vrot.lane.b32.xlu2 %v1679_v34, %s5002_s17  ;;  %v1683_v59 = vsub.f32 1.0, %v1682_v33 }
0x1252   : > { %v1684_v36 = vmul.f32 %v3956_v63, %v1683_v59  ;;  %v3860_v59 = vld [vmem:[%s4991_s8 + $0x3] ss:$0 sm:$0xff] }
0x1254   : > { %v1685_v38 = vadd.f32 %v3956_v63, %v1684_v36 }
0x1256   : > { %v1689_v40 = vsel %vm1688_vm11, %v3956_v63, %v1685_v38 }
0x1257   : > { %v1694_v41 = vsel %vm1691_vm12, %v1693_v39, %v1689_v40 }
0x1258   : > { %1700 = vrot.lane.b32.xlu1 %v1694_v41, %s5002_s17 }
0x12aa   : > { %v1699_v42 = vpop.permute.xlu2 %1698 }
0x12ab   : > { %v1704_v43 = vmul.f32 %v1699_v42, %v1654_v8 }
0x12ad   : > { %v4554_v44 = vadd.f32 %v1704_v43, %v4461_v19 }
0x12af   : > { %v1710_v45 = vsel %vm580_vm3, %v4554_v44, 0.0 }
0x12b0   : > { %1711 = vadd.xlane.f32.xlu0 %v1710_v45 }
0x12ca   : > { %v1701_v46 = vpop.permute.xlu1 %1700 }
0x12cb   : > { %v1705_v47 = vmul.f32 %v1701_v46, %v1656_v13 }
0x12cd   : > { %v4559_v48 = vadd.f32 %v1705_v47, %v4466_v25 }
0x12cf   : > { %v1713_v49 = vsel %vm580_vm3, %v4559_v48, 0.0 }
0x12d0   : > { %1714 = vadd.xlane.f32.xlu1 %v1713_v49 }
0x1323   : > { %v1712_v50 = vpop.xlane.xlu0 %1711 }
0x1324   : > { %v1716_v51 = vmul.f32 %v1712_v50, %v4281_v32 }
0x1326   : > { %v1718_v52 = vsub.f32 %v4554_v44, %v1716_v51 }
0x1328   : > { %v1720_v19 = vmul.f32 %v1718_v52, %v1718_v52 }
0x132a   : > { %v1722_v53 = vsel %vm580_vm3, %v1720_v19, 0.0 }
0x132b   : > { %1723 = vadd.xlane.f32.xlu0 %v1722_v53 }
0x1343   : > { %v1715_v54 = vpop.xlane.xlu1 %1714 }
0x1344   : > { %v1717_v55 = vmul.f32 %v1715_v54, %v4281_v32 }
0x1346   : > { %v1719_v56 = vsub.f32 %v4559_v48, %v1717_v55 }
0x1348   : > { %v1721_v25 = vmul.f32 %v1719_v56, %v1719_v56 }
0x134a   : > { %v1725_v57 = vsel %vm580_vm3, %v1721_v25, 0.0 }
0x134b   : > { %1726 = vadd.xlane.f32.xlu0 %v1725_v57 }
0x139e   : > { %v1724_v58 = vpop.xlane.xlu0 %1723 }
0x139f   : > { %v1728_v60 = vmul.f32 %v1724_v58, %v4281_v32 }
0x13a1   : > { %v1730_v61 = vadd.f32 1e-05, %v1728_v60 }
0x13a3   : > { %3957 = vrsqrt.f32 %v1730_v61  ;;  %vm1738_vm14 = vweird.f32 %v1730_v61 }
0x13a9   : > { %v3958_v62 = vpop.eup %3957 }
0x13aa   : > { %v1733_v0 = vmul.f32 %v3958_v62, %v1730_v61  ;;  %vm1739_vm13 = vweird.f32 %v3958_v62  ;;  %v3756_v61 = vld [vmem:[%s4992_s9 + $0x78] sm:$0xff] }
0x13ab   : > { %vm1740_vm15 = vmor %vm1738_vm14, %vm1739_vm13  ;;  %1927 = vmatpush.bf16.msrb.mxu0 %v3756_v61 }
0x13ac   : > { %v1734_v3 = vmul.f32 %v3958_v62, %v1733_v0 }
0x13ae   : > { %v1735_v24 = vmul.f32 0.5, %v1734_v3 }
0x13b0   : > { %v1736_v7 = vsub.f32 1.5, %v1735_v24  ;;  %v3861_v24 = vld [vmem:[%s4988_s5 + $0xa] ss:$0 sm:$0xff] }
0x13b2   : > { %v1737_v21 = vmul.f32 %v3958_v62, %v1736_v7  ;;  %v3862_v7 = vld [vmem:[%s4989_s6 + $0xa] ss:$0 sm:$0xff] }
0x13b4   : > { %v1741_v10 = vsel %vm1740_vm15, %v3958_v62, %v1737_v21 }
0x13b5   : > { %v1752_v15 = vmul.f32 %v1741_v10, %v1718_v52 }
0x13b7   : > { %v1755_v20 = vmul.f32 %v3858_v14, %v1752_v15 }
0x13b9   : > { %v1758_v26 = vadd.f32 %v3859_v18, %v1755_v20 }
0x13bb   : > { %v1762_v63 = vmul.f32 0.01, %v1758_v26  ;;  %vm1760_vm5 = vcmp.ge.f32.partialorder %v1758_v26, 0.0 }
0x13bd   : > { %v1764_v31 = vsel %vm1760_vm5, %v1758_v26, %v1762_v63 }
0x13be   : > { %v1727_v4 = vpop.xlane.xlu0 %1726 }
0x13bf   : > { %v1729_v5 = vmul.f32 %v1727_v4, %v4281_v32 }
0x13c1   : > { %v1731_v6 = vadd.f32 1e-05, %v1729_v5 }
0x13c3   : > { %3959 = vrsqrt.f32 %v1731_v6  ;;  %vm1748_vm2 = vweird.f32 %v1731_v6 }
0x13c9   : > { %v3960_v8 = vpop.eup %3959 }
0x13ca   : > { %v1743_v12 = vmul.f32 %v3960_v8, %v1731_v6  ;;  %vm1749_vm1 = vweird.f32 %v3960_v8 }
0x13cb   : > { %vm1750_vm4 = vmor %vm1748_vm2, %vm1749_vm1  ;;  %vm1892_vm1 = vcmask 1043456  }
0x13cc   : > { %v1744_v13 = vmul.f32 %v3960_v8, %v1743_v12 }
0x13ce   : > { %v1745_v16 = vmul.f32 0.5, %v1744_v13 }
0x13d0   : > { %v1746_v17 = vsub.f32 1.5, %v1745_v16 }
0x13d2   : > { %v1747_v22 = vmul.f32 %v3960_v8, %v1746_v17 }
0x13d4   : > { %v1751_v23 = vsel %vm1750_vm4, %v3960_v8, %v1747_v22 }
0x13d5   : > { %v1753_v27 = vmul.f32 %v1751_v23, %v1719_v56 }
0x13d7   : > { %v1756_v28 = vmul.f32 %v3858_v14, %v1753_v27 }
0x13d9   : > { %v1759_v29 = vadd.f32 %v3859_v18, %v1756_v28 }
0x13db   : > { %vm1761_vm6 = vcmp.ge.f32.partialorder %v1759_v29, 0.0  ;;  %v1763_v30 = vmul.f32 0.01, %v1759_v29 }
0x13dd   : > { %v1765_v33 = vsel %vm1761_vm6, %v1759_v29, %v1763_v30 }
0x13de   : > { %v1766_v34 = vpack.c.bf16 %v1765_v33, %v1764_v31  ;;  %v3755_v33 = vld [vmem:[%s4992_s9 + $0x70] sm:$0xff] }
0x13df   : > { %1928 = vmatpush.bf16.msrb.mxu0 %v3755_v33 }
0x13e0   : > { %3511 = vmatmul.msk.bf16.vlgmr.msra.gmra.mxu3 %vm580_vm3, %v1766_v34  ;;  %v3754_v34 = vld [vmem:[%s4992_s9 + $0x68] sm:$0xff] }
0x13e3   : > { %1929 = vmatpush.bf16.msrb.mxu0 %v3754_v34 }
0x1463   : > { %v1798_v35 = vpop.f32.mrf.mxu3 }
0x1464   : > { %v1799_v36 = vadd.f32 %v3860_v59, %v1798_v35 }
0x1466   : > { %v1805_v37 = vsel %vm580_vm3, %v1799_v36, 0.0 }
0x1467   : > { %1806 = vadd.xlane.f32.xlu2 %v1805_v37 }
0x146b   : > { %v1800_v38 = vpop.f32.mrf.mxu3 }
0x146c   : > { %v1801_v39 = vadd.f32 %v3860_v59, %v1800_v38  ;;  %v3753_v59 = vld [vmem:[%s4992_s9 + $0x60] sm:$0xff] }
0x146d   : > { %1930 = vmatpush.bf16.msrb.mxu0 %v3753_v59 }
0x146e   : > { %v1808_v40 = vsel %vm580_vm3, %v1801_v39, 0.0 }
0x146f   : > { %1809 = vadd.xlane.f32.xlu0 %v1808_v40 }
0x14da   : > { %v1807_v41 = vpop.xlane.xlu2 %1806 }
0x14db   : > { %v1811_v42 = vmul.f32 %v1807_v41, %v4281_v32 }
0x14dd   : > { %v1813_v43 = vsub.f32 %v1799_v36, %v1811_v42  ;;  %v3863_v42 = vld [vmem:[%s4993_s10 + $0x3] ss:$0 sm:$0xff] }
0x14df   : > { %v1815_v45 = vmul.f32 %v1813_v43, %v1813_v43 }
0x14e1   : > { %v1817_v46 = vsel %vm580_vm3, %v1815_v45, 0.0 }
0x14e2   : > { %v1810_v47 = vpop.xlane.xlu0 %1809  ;;  %1818 = vadd.xlane.f32.xlu0 %v1817_v46 }
0x14e3   : > { %v1812_v49 = vmul.f32 %v1810_v47, %v4281_v32 }
0x14e5   : > { %v1814_v50 = vsub.f32 %v1801_v39, %v1812_v49 }
0x14e7   : > { %v1816_v51 = vmul.f32 %v1814_v50, %v1814_v50 }
0x14e9   : > { %v1820_v52 = vsel %vm580_vm3, %v1816_v51, 0.0 }
0x14ea   : > { %1821 = vadd.xlane.f32.xlu0 %v1820_v52 }
0x1555   : > { %v1819_v19 = vpop.xlane.xlu0 %1818 }
0x1556   : > { %v1823_v53 = vmul.f32 %v1819_v19, %v4281_v32 }
0x1558   : > { %v1825_v54 = vadd.f32 1e-05, %v1823_v53 }
0x155a   : > { %3961 = vrsqrt.f32 %v1825_v54  ;;  %vm1833_vm9 = vweird.f32 %v1825_v54 }
0x155d   : > { %v1822_v55 = vpop.xlane.xlu0 %1821 }
0x155e   : > { %v1824_v56 = vmul.f32 %v1822_v55, %v4281_v32 }
0x1560   : > { %v3962_v25 = vpop.eup %3961  ;;  %v1826_v57 = vadd.f32 1e-05, %v1824_v56 }
0x1561   : > { %v1828_v58 = vmul.f32 %v3962_v25, %v1825_v54  ;;  %vm1834_vm7 = vweird.f32 %v3962_v25 }
0x1562   : > { %3963 = vrsqrt.f32 %v1826_v57  ;;  %vm1835_vm10 = vmor %vm1833_vm9, %vm1834_vm7  ;;  %vm1843_vm12 = vweird.f32 %v1826_v57 }
0x1563   : > { %v1829_v60 = vmul.f32 %v3962_v25, %v1828_v58 }
0x1565   : > { %v1830_v62 = vmul.f32 0.5, %v1829_v60 }
0x1567   : > { %v1831_v0 = vsub.f32 1.5, %v1830_v62  ;;  %v3758_v62 = vld [vmem:[%s4994_s11 + $0x38] sm:$0xff] }
0x1568   : > { %v3964_v1 = vpop.eup %3963  ;;  %2024 = vmatpush.bf16.msrb.mxu1 %v3758_v62 }
0x1569   : > { %v1832_v2 = vmul.f32 %v3962_v25, %v1831_v0  ;;  %v1838_v3 = vmul.f32 %v3964_v1, %v1826_v57  ;;  %vm1844_vm11 = vweird.f32 %v3964_v1 }
0x156a   : > { %vm1845_vm13 = vmor %vm1843_vm12, %vm1844_vm11 }
0x156b   : > { %v1836_v4 = vsel %vm1835_vm10, %v3962_v25, %v1832_v2  ;;  %v1839_v5 = vmul.f32 %v3964_v1, %v1838_v3 }
0x156c   : > { %v1847_v6 = vmul.f32 %v1836_v4, %v1813_v43 }
0x156d   : > { %v1840_v21 = vmul.f32 0.5, %v1839_v5 }
0x156e   : > { %v1850_v8 = vmul.f32 %v3861_v24, %v1847_v6 }
0x156f   : > { %v1841_v10 = vsub.f32 1.5, %v1840_v21 }
0x1570   : > { %v1853_v12 = vadd.f32 %v3862_v7, %v1850_v8 }
0x1571   : > { %v1842_v13 = vmul.f32 %v3964_v1, %v1841_v10 }
0x1572   : > { %vm1855_vm14 = vcmp.ge.f32.partialorder %v1853_v12, 0.0  ;;  %v1857_v14 = vmul.f32 0.01, %v1853_v12 }
0x1573   : > { %v1846_v15 = vsel %vm1845_vm13, %v3964_v1, %v1842_v13  ;;  %v3757_v1 = vld [vmem:[%s4994_s11 + $0x30] sm:$0xff] }
0x1574   : > { %v1848_v16 = vmul.f32 %v1846_v15, %v1814_v50  ;;  %v1859_v17 = vsel %vm1855_vm14, %v1853_v12, %v1857_v14  ;;  %2025 = vmatpush.bf16.msrb.mxu1 %v3757_v1  ;;  %v3864_v15 = vld [vmem:[%s4988_s5 + $0xb] ss:$0 sm:$0xff] }
0x1575   : > { %v1861_v18 = vpack.c.bf16 %v1859_v17, %v1859_v17 }
0x1576   : > { %v1851_v20 = vmul.f32 %v3861_v24, %v1848_v16 }
0x1577   : > { %v1865_v22 = vunpack.c.l.b16 %v1861_v18 }
0x1578   : > { %v1854_v23 = vadd.f32 %v3862_v7, %v1851_v20  ;;  %v3865_v20 = vld [vmem:[%s4989_s6 + $0xb] ss:$0 sm:$0xff] }
0x1579   : > { %v1868_v26 = vpack.c.b16 %v1865_v22, %v1865_v22 }
0x157a   : > { %vm1856_vm15 = vcmp.ge.f32.partialorder %v1854_v23, 0.0  ;;  %v1858_v27 = vmul.f32 0.01, %v1854_v23 }
0x157b   : > { %1870 = vrot.lane.b32.xlu0 %v1868_v26, %s5004_s30 }
0x157c   : > { %v1860_v28 = vsel %vm1856_vm15, %v1854_v23, %v1858_v27 }
0x157d   : > { %v1862_v29 = vpack.c.bf16 %v1860_v28, %v1860_v28 }
0x157f   : > { %v1866_v63 = vunpack.c.l.b16 %v1862_v29 }
0x1581   : > { %v1869_v30 = vpack.c.b16 %v1866_v63, %v1866_v63  ;;  %v1867_v31 = vpack.c.b16 %v1866_v63, %v1865_v22 }
0x1583   : > { %1872 = vrot.lane.b32.xlu1 %v1869_v30, %s5004_s30 }
0x15ed   : > { %v1871_v35 = vpop.permute.xlu0 %1870 }
0x15ee   : > { %v1875_v36 = vsel %vm580_vm3, 0, %v1871_v35  ;;  %v3866_v35 = vld [vmem:[%s4995_s12 + $0x3] ss:$0 sm:$0xff] }
0x15ef   : > { %v1893_v39 = vrot.slane %v1875_v36, 4 }
0x15f5   : > { %v1873_v37 = vpop.permute.xlu1 %1872 }
0x15f6   : > { %v1878_v38 = vsel %vm580_vm3, %v1867_v31, %v1873_v37 }
0x15f7   : > { %v1894_v40 = vrot.slane %v1878_v38, 4 }
0x15f9   : > { %v1895_v41 = vsel %vm1892_vm1, %v1893_v39, %v1894_v40 }
0x15fa   : > { %3536 = vmatmul.msk.bf16.vlgmr.msrb.gmra.mxu0 %vm806_vm8, %v1895_v41 }
0x1677   : > { %v1932_v43 = vpop.f32.mrf.mxu0 }
0x1678   : > { %v1933_v45 = vadd.f32 %v3863_v42, %v1932_v43 }
0x167a   : > { %v1939_v46 = vsel %vm580_vm3, %v1933_v45, 0.0 }
0x167b   : > { %1940 = vadd.xlane.f32.xlu2 %v1939_v46 }
0x167f   : > { %v1934_v47 = vpop.f32.mrf.mxu0 }
0x1680   : > { %v1935_v49 = vadd.f32 %v3863_v42, %v1934_v47 }
0x1682   : > { %v1942_v50 = vsel %vm580_vm3, %v1935_v49, 0.0 }
0x1683   : > { %1943 = vadd.xlane.f32.xlu0 %v1942_v50 }
0x16ee   : > { %v1941_v51 = vpop.xlane.xlu2 %1940 }
0x16ef   : > { %v1945_v52 = vmul.f32 %v1941_v51, %v4281_v32 }
0x16f1   : > { %v1947_v19 = vsub.f32 %v1933_v45, %v1945_v52 }
0x16f3   : > { %v1949_v53 = vmul.f32 %v1947_v19, %v1947_v19 }
0x16f5   : > { %v1951_v54 = vsel %vm580_vm3, %v1949_v53, 0.0 }
0x16f6   : > { %v1944_v55 = vpop.xlane.xlu0 %1943  ;;  %1952 = vadd.xlane.f32.xlu2 %v1951_v54 }
0x16f7   : > { %v1946_v56 = vmul.f32 %v1944_v55, %v4281_v32 }
0x16f9   : > { %v1948_v25 = vsub.f32 %v1935_v49, %v1946_v56 }
0x16fb   : > { %v1950_v57 = vmul.f32 %v1948_v25, %v1948_v25 }
0x16fd   : > { %v1954_v58 = vsel %vm580_vm3, %v1950_v57, 0.0 }
0x16fe   : > { %1955 = vadd.xlane.f32.xlu1 %v1954_v58 }
0x1769   : > { %v1953_v60 = vpop.xlane.xlu2 %1952 }
0x176a   : > { %v1957_v61 = vmul.f32 %v1953_v60, %v4281_v32 }
0x176c   : > { %v1959_v0 = vadd.f32 1e-05, %v1957_v61 }
0x176e   : > { %3965 = vrsqrt.f32 %v1959_v0  ;;  %vm1967_vm4 = vweird.f32 %v1959_v0 }
0x1771   : > { %v1956_v2 = vpop.xlane.xlu1 %1955 }
0x1772   : > { %v1958_v3 = vmul.f32 %v1956_v2, %v4281_v32 }
0x1774   : > { %v3966_v24 = vpop.eup %3965  ;;  %v1960_v4 = vadd.f32 1e-05, %v1958_v3 }
0x1775   : > { %v1962_v5 = vmul.f32 %v3966_v24, %v1959_v0  ;;  %vm1968_vm2 = vweird.f32 %v3966_v24 }
0x1776   : > { %3967 = vrsqrt.f32 %v1960_v4  ;;  %vm1969_vm5 = vmor %vm1967_vm4, %vm1968_vm2  ;;  %vm1977_vm7 = vweird.f32 %v1960_v4 }
0x1777   : > { %v1963_v6 = vmul.f32 %v3966_v24, %v1962_v5 }
0x1779   : > { %v1964_v7 = vmul.f32 0.5, %v1963_v6 }
0x177b   : > { %v1965_v21 = vsub.f32 1.5, %v1964_v7 }
0x177c   : > { %v3968_v8 = vpop.eup %3967 }
0x177d   : > { %v1966_v10 = vmul.f32 %v3966_v24, %v1965_v21  ;;  %v1972_v12 = vmul.f32 %v3968_v8, %v1960_v4  ;;  %vm1978_vm6 = vweird.f32 %v3968_v8 }
0x177e   : > { %vm1979_vm9 = vmor %vm1977_vm7, %vm1978_vm6 }
0x177f   : > { %v1970_v13 = vsel %vm1969_vm5, %v3966_v24, %v1966_v10  ;;  %v1973_v14 = vmul.f32 %v3968_v8, %v1972_v12 }
0x1780   : > { %v1981_v16 = vmul.f32 %v1970_v13, %v1947_v19 }
0x1781   : > { %v1974_v17 = vmul.f32 0.5, %v1973_v14 }
0x1782   : > { %v1984_v22 = vmul.f32 %v3864_v15, %v1981_v16 }
0x1783   : > { %v1975_v18 = vsub.f32 1.5, %v1974_v17 }
0x1784   : > { %v1987_v27 = vadd.f32 %v3865_v20, %v1984_v22 }
0x1785   : > { %v1976_v23 = vmul.f32 %v3968_v8, %v1975_v18 }
0x1786   : > { %v1991_v30 = vmul.f32 0.01, %v1987_v27  ;;  %vm1989_vm10 = vcmp.ge.f32.partialorder %v1987_v27, 0.0 }
0x1787   : > { %v1980_v26 = vsel %vm1979_vm9, %v3968_v8, %v1976_v23 }
0x1788   : > { %v1982_v28 = vmul.f32 %v1980_v26, %v1948_v25  ;;  %v1993_v33 = vsel %vm1989_vm10, %v1987_v27, %v1991_v30  ;;  %v3760_v26 = vld [vmem:[%s4990_s7 + $0x48] sm:$0xff] }
0x1789   : > { %2169 = vmatpush.bf16.msrb.mxu2 %v3760_v26  ;;  %v3764_v26 = vld [vmem:[%s4992_s9 + $0x98] sm:$0xff] }
0x178a   : > { %v1985_v29 = vmul.f32 %v3864_v15, %v1982_v28  ;;  %v3759_v28 = vld [vmem:[%s4990_s7 + $0x40] sm:$0xff]  ;;  %2287 = vmatpush.bf16.msrb.mxu3 %v3764_v26 }
0x178c   : > { %v1988_v63 = vadd.f32 %v3865_v20, %v1985_v29 }
0x178d   : > { %2170 = vmatpush.bf16.msrb.mxu2 %v3759_v28  ;;  %v3763_v28 = vld [vmem:[%s4992_s9 + $0x90] sm:$0xff] }
0x178e   : > { %vm1990_vm11 = vcmp.ge.f32.partialorder %v1988_v63, 0.0  ;;  %v1992_v31 = vmul.f32 0.01, %v1988_v63  ;;  %2288 = vmatpush.bf16.msrb.mxu3 %v3763_v28 }
0x1790   : > { %v1994_v34 = vsel %vm1990_vm11, %v1988_v63, %v1992_v31 }
0x1791   : > { %v1995_v59 = vpack.c.bf16 %v1994_v34, %v1993_v33 }
0x1793   : > { %3549 = vmatmul.msk.bf16.vlgmr.msrb.gmra.mxu1 %vm580_vm3, %v1995_v59 }
0x1810   : > { %v2027_v36 = vpop.f32.mrf.mxu1 }
0x1811   : > { %v2028_v37 = vadd.f32 %v3866_v35, %v2027_v36 }
0x1813   : > { %v3550_v38 = vmul.f32 -1.442695, %v2028_v37 }
0x1815   : > { %3969 = vpow2.f32 %v3550_v38 }
0x1818   : > { %v2029_v39 = vpop.f32.mrf.mxu1 }
0x1819   : > { %v2030_v40 = vadd.f32 %v3866_v35, %v2029_v39 }
0x181b   : > { %v3970_v41 = vpop.eup %3969  ;;  %v3551_v42 = vmul.f32 -1.442695, %v2030_v40 }
0x181c   : > { %v2038_v43 = vadd.f32 1.0, %v3970_v41  ;;  %v3867_v41 = vld [vmem:[%s4988_s5 + $0xc] ss:$0 sm:$0xff] }
0x181d   : > { %3971 = vpow2.f32 %v3551_v42 }
0x181e   : > { %3973 = vrcp.f32 %v2038_v43  ;;  %v2051_v51 = vand.u32 2147483648, %v2038_v43  ;;  %v2049_v19 = vand.u32 2147483647, %v2038_v43  ;;  %vm2045_vm13 = vweird.f32 %v2038_v43 }
0x1820   : > { %v2052_v55 = vor.u32 1.1754944e-38, %v2051_v51  ;;  %vm2050_vm15 = vcmp.eq.f32.partialorder %v2049_v19, 8.507059e+37 }
0x1823   : > { %v3972_v45 = vpop.eup %3971 }
0x1824   : > { %v3974_v46 = vpop.eup %3973  ;;  %v2039_v47 = vadd.f32 1.0, %v3972_v45 }
0x1825   : > { %v2041_v49 = vmul.f32 %v3974_v46, %v2038_v43  ;;  %vm2046_vm12 = vweird.f32 %v3974_v46 }
0x1826   : > { %3975 = vrcp.f32 %v2039_v47  ;;  %vm2047_vm14 = vmor %vm2045_vm13, %vm2046_vm12  ;;  %v2066_v60 = vand.u32 2147483648, %v2039_v47  ;;  %v2064_v62 = vand.u32 2147483647, %v2039_v47  ;;  %vm2060_vm2 = vweird.f32 %v2039_v47 }
0x1827   : > { %v2042_v50 = vsub.f32 1.0, %v2041_v49 }
0x1828   : > { %v2067_v1 = vor.u32 1.1754944e-38, %v2066_v60  ;;  %vm2065_vm5 = vcmp.eq.f32.partialorder %v2064_v62, 8.507059e+37 }
0x1829   : > { %v2043_v52 = vmul.f32 %v3974_v46, %v2042_v50 }
0x182b   : > { %v2044_v53 = vadd.f32 %v3974_v46, %v2043_v52 }
0x182c   : > { %v3976_v54 = vpop.eup %3975 }
0x182d   : > { %v2048_v56 = vsel %vm2047_vm14, %v3974_v46, %v2044_v53  ;;  %v2056_v25 = vmul.f32 %v3976_v54, %v2039_v47  ;;  %vm2061_vm1 = vweird.f32 %v3976_v54  ;;  %v3868_v46 = vld [vmem:[%s4989_s6 + $0xc] ss:$0 sm:$0xff] }
0x182e   : > { %v2053_v57 = vsel %vm2050_vm15, %v2052_v55, %v2048_v56  ;;  %vm2062_vm4 = vmor %vm2060_vm2, %vm2061_vm1 }
0x182f   : > { %2072 = vrot.lane.b32.xlu2 %v2053_v57, %s5002_s17  ;;  %v2057_v58 = vsub.f32 1.0, %v2056_v25 }
0x1831   : > { %v2058_v61 = vmul.f32 %v3976_v54, %v2057_v58  ;;  %v3869_v58 = vld [vmem:[%s4991_s8 + $0x4] ss:$0 sm:$0xff] }
0x1833   : > { %v2059_v0 = vadd.f32 %v3976_v54, %v2058_v61 }
0x1835   : > { %v2063_v2 = vsel %vm2062_vm4, %v3976_v54, %v2059_v0 }
0x1836   : > { %v2068_v3 = vsel %vm2065_vm5, %v2067_v1, %v2063_v2 }
0x1837   : > { %2074 = vrot.lane.b32.xlu2 %v2068_v3, %s5002_s17 }
0x1889   : > { %v2073_v24 = vpop.permute.xlu2 %2072 }
0x188a   : > { %v2078_v4 = vmul.f32 %v2073_v24, %v2028_v37 }
0x188c   : > { %v4648_v5 = vadd.f32 %v2078_v4, %v4554_v44 }
0x188e   : > { %v2084_v6 = vsel %vm580_vm3, %v4648_v5, 0.0 }
0x188f   : > { %2085 = vadd.xlane.f32.xlu2 %v2084_v6 }
0x1891   : > { %v2075_v7 = vpop.permute.xlu2 %2074 }
0x1892   : > { %v2079_v21 = vmul.f32 %v2075_v7, %v2030_v40 }
0x1894   : > { %v4653_v8 = vadd.f32 %v2079_v21, %v4559_v48 }
0x1896   : > { %v2087_v10 = vsel %vm580_vm3, %v4653_v8, 0.0 }
0x1897   : > { %2088 = vadd.xlane.f32.xlu0 %v2087_v10 }
0x1902   : > { %v2086_v12 = vpop.xlane.xlu2 %2085 }
0x1903   : > { %v2090_v13 = vmul.f32 %v2086_v12, %v4281_v32 }
0x1905   : > { %v2092_v14 = vsub.f32 %v4648_v5, %v2090_v13 }
0x1907   : > { %v2094_v44 = vmul.f32 %v2092_v14, %v2092_v14 }
0x1909   : > { %v2096_v15 = vsel %vm580_vm3, %v2094_v44, 0.0 }
0x190a   : > { %v2089_v16 = vpop.xlane.xlu0 %2088  ;;  %2097 = vadd.xlane.f32.xlu1 %v2096_v15 }
0x190b   : > { %v2091_v17 = vmul.f32 %v2089_v16, %v4281_v32 }
0x190d   : > { %v2093_v18 = vsub.f32 %v4653_v8, %v2091_v17 }
0x190f   : > { %v2095_v48 = vmul.f32 %v2093_v18, %v2093_v18 }
0x1911   : > { %v2099_v20 = vsel %vm580_vm3, %v2095_v48, 0.0 }
0x1912   : > { %2100 = vadd.xlane.f32.xlu0 %v2099_v20 }
0x197d   : > { %v2098_v22 = vpop.xlane.xlu1 %2097 }
0x197e   : > { %v2102_v23 = vmul.f32 %v2098_v22, %v4281_v32 }
0x1980   : > { %v2104_v27 = vadd.f32 1e-05, %v2102_v23 }
0x1982   : > { %3977 = vrsqrt.f32 %v2104_v27  ;;  %vm2112_vm7 = vweird.f32 %v2104_v27 }
0x1985   : > { %v2101_v29 = vpop.xlane.xlu0 %2100 }
0x1986   : > { %v2103_v63 = vmul.f32 %v2101_v29, %v4281_v32 }
0x1988   : > { %v3978_v30 = vpop.eup %3977  ;;  %v2105_v31 = vadd.f32 1e-05, %v2103_v63 }
0x1989   : > { %v2107_v33 = vmul.f32 %v3978_v30, %v2104_v27  ;;  %vm2113_vm6 = vweird.f32 %v3978_v30 }
0x198a   : > { %3979 = vrsqrt.f32 %v2105_v31  ;;  %vm2114_vm9 = vmor %vm2112_vm7, %vm2113_vm6  ;;  %vm2122_vm11 = vweird.f32 %v2105_v31 }
0x198b   : > { %v2108_v34 = vmul.f32 %v3978_v30, %v2107_v33  ;;  %v3762_v33 = vld [vmem:[%s4992_s9 + $0x88] sm:$0xff] }
0x198c   : > { %2289 = vmatpush.bf16.msrb.mxu3 %v3762_v33 }
0x198d   : > { %v2109_v59 = vmul.f32 0.5, %v2108_v34  ;;  %v3870_v34 = vld [vmem:[%s4988_s5 + $0xd] ss:$0 sm:$0xff] }
0x198f   : > { %v2110_v35 = vsub.f32 1.5, %v2109_v59 }
0x1990   : > { %v3980_v36 = vpop.eup %3979 }
0x1991   : > { %v2111_v37 = vmul.f32 %v3978_v30, %v2110_v35  ;;  %v2117_v38 = vmul.f32 %v3980_v36, %v2105_v31  ;;  %vm2123_vm10 = vweird.f32 %v3980_v36 }
0x1992   : > { %vm2124_vm12 = vmor %vm2122_vm11, %vm2123_vm10 }
0x1993   : > { %v2115_v39 = vsel %vm2114_vm9, %v3978_v30, %v2111_v37  ;;  %v2118_v40 = vmul.f32 %v3980_v36, %v2117_v38  ;;  %v3871_v37 = vld [vmem:[%s4989_s6 + $0xd] ss:$0 sm:$0xff] }
0x1994   : > { %v2126_v42 = vmul.f32 %v2115_v39, %v2092_v14  ;;  %v3761_v39 = vld [vmem:[%s4992_s9 + $0x80] sm:$0xff] }
0x1995   : > { %v2119_v43 = vmul.f32 0.5, %v2118_v40  ;;  %2290 = vmatpush.bf16.msrb.mxu3 %v3761_v39  ;;  %v3874_v39 = vld [vmem:[%s4989_s6 + $0xe] ss:$0 sm:$0xff] }
0x1996   : > { %v2129_v47 = vmul.f32 %v3867_v41, %v2126_v42 }
0x1997   : > { %v2120_v45 = vsub.f32 1.5, %v2119_v43 }
0x1998   : > { %v2132_v51 = vadd.f32 %v3868_v46, %v2129_v47 }
0x1999   : > { %v2121_v49 = vmul.f32 %v3980_v36, %v2120_v45 }
0x199a   : > { %v2136_v54 = vmul.f32 0.01, %v2132_v51  ;;  %vm2134_vm13 = vcmp.ge.f32.partialorder %v2132_v51, 0.0 }
0x199b   : > { %v2125_v50 = vsel %vm2124_vm12, %v3980_v36, %v2121_v49 }
0x199c   : > { %v2127_v52 = vmul.f32 %v2125_v50, %v2093_v18  ;;  %v2138_v56 = vsel %vm2134_vm13, %v2132_v51, %v2136_v54 }
0x199e   : > { %v2130_v19 = vmul.f32 %v3867_v41, %v2127_v52 }
0x19a0   : > { %v2133_v53 = vadd.f32 %v3868_v46, %v2130_v19 }
0x19a2   : > { %vm2135_vm14 = vcmp.ge.f32.partialorder %v2133_v53, 0.0  ;;  %v2137_v55 = vmul.f32 0.01, %v2133_v53 }
0x19a4   : > { %v2139_v25 = vsel %vm2135_vm14, %v2133_v53, %v2137_v55 }
0x19a5   : > { %v2140_v57 = vpack.c.bf16 %v2139_v25, %v2138_v56 }
0x19a7   : > { %3564 = vmatmul.msk.bf16.vlgmr.msrb.gmra.mxu2 %vm580_vm3, %v2140_v57 }
0x1a2a   : > { %v2172_v60 = vpop.f32.mrf.mxu2 }
0x1a2b   : > { %v2173_v61 = vadd.f32 %v3869_v58, %v2172_v60  ;;  %v3872_v60 = vld [vmem:[%s4993_s10 + $0x4] ss:$0 sm:$0xff] }
0x1a2d   : > { %v2179_v62 = vsel %vm580_vm3, %v2173_v61, 0.0 }
0x1a2e   : > { %2180 = vadd.xlane.f32.xlu1 %v2179_v62 }
0x1a32   : > { %v2174_v0 = vpop.f32.mrf.mxu2 }
0x1a33   : > { %v2175_v1 = vadd.f32 %v3869_v58, %v2174_v0 }
0x1a35   : > { %v2182_v2 = vsel %vm580_vm3, %v2175_v1, 0.0 }
0x1a36   : > { %2183 = vadd.xlane.f32.xlu0 %v2182_v2 }
0x1aa1   : > { %v2181_v3 = vpop.xlane.xlu1 %2180 }
0x1aa2   : > { %v2185_v24 = vmul.f32 %v2181_v3, %v4281_v32 }
0x1aa4   : > { %v2187_v4 = vsub.f32 %v2173_v61, %v2185_v24 }
0x1aa6   : > { %v2189_v6 = vmul.f32 %v2187_v4, %v2187_v4 }
0x1aa8   : > { %v2191_v7 = vsel %vm580_vm3, %v2189_v6, 0.0 }
0x1aa9   : > { %v2184_v21 = vpop.xlane.xlu0 %2183  ;;  %2192 = vadd.xlane.f32.xlu1 %v2191_v7 }
0x1aaa   : > { %v2186_v10 = vmul.f32 %v2184_v21, %v4281_v32 }
0x1aac   : > { %v2188_v12 = vsub.f32 %v2175_v1, %v2186_v10 }
0x1aae   : > { %v2190_v13 = vmul.f32 %v2188_v12, %v2188_v12 }
0x1ab0   : > { %v2194_v14 = vsel %vm580_vm3, %v2190_v13, 0.0 }
0x1ab1   : > { %2195 = vadd.xlane.f32.xlu0 %v2194_v14 }
0x1b1c   : > { %v2193_v44 = vpop.xlane.xlu1 %2192 }
0x1b1d   : > { %v2197_v15 = vmul.f32 %v2193_v44, %v4281_v32 }
0x1b1f   : > { %v2199_v16 = vadd.f32 1e-05, %v2197_v15 }
0x1b21   : > { %3981 = vrsqrt.f32 %v2199_v16  ;;  %vm2207_vm1 = vweird.f32 %v2199_v16 }
0x1b24   : > { %v2196_v17 = vpop.xlane.xlu0 %2195 }
0x1b25   : > { %v2198_v18 = vmul.f32 %v2196_v17, %v4281_v32  ;;  %v3766_v17 = vld [vmem:[%s4994_s11 + $0x48] sm:$0xff] }
0x1b26   : > { %2384 = vmatpush.bf16.msra.mxu0 %v3766_v17 }
0x1b27   : > { %v3982_v48 = vpop.eup %3981  ;;  %v2200_v20 = vadd.f32 1e-05, %v2198_v18 }
0x1b28   : > { %v2202_v22 = vmul.f32 %v3982_v48, %v2199_v16  ;;  %vm2208_vm15 = vweird.f32 %v3982_v48 }
0x1b29   : > { %3983 = vrsqrt.f32 %v2200_v20  ;;  %vm2209_vm2 = vmor %vm2207_vm1, %vm2208_vm15  ;;  %vm2217_vm5 = vweird.f32 %v2200_v20 }
0x1b2a   : > { %v2203_v23 = vmul.f32 %v3982_v48, %v2202_v22 }
0x1b2c   : > { %v2204_v27 = vmul.f32 0.5, %v2203_v23 }
0x1b2e   : > { %v2205_v29 = vsub.f32 1.5, %v2204_v27 }
0x1b2f   : > { %v3984_v63 = vpop.eup %3983 }
0x1b30   : > { %v2206_v30 = vmul.f32 %v3982_v48, %v2205_v29  ;;  %v2212_v31 = vmul.f32 %v3984_v63, %v2200_v20  ;;  %vm2218_vm4 = vweird.f32 %v3984_v63 }
0x1b31   : > { %vm2219_vm6 = vmor %vm2217_vm5, %vm2218_vm4 }
0x1b32   : > { %v2210_v59 = vsel %vm2209_vm2, %v3982_v48, %v2206_v30  ;;  %v2213_v35 = vmul.f32 %v3984_v63, %v2212_v31  ;;  %v3765_v48 = vld [vmem:[%s4994_s11 + $0x40] sm:$0xff] }
0x1b33   : > { %v2221_v36 = vmul.f32 %v2210_v59, %v2187_v4  ;;  %2385 = vmatpush.bf16.msra.mxu0 %v3765_v48 }
0x1b34   : > { %v2214_v38 = vmul.f32 0.5, %v2213_v35  ;;  %v3873_v35 = vld [vmem:[%s4988_s5 + $0xe] ss:$0 sm:$0xff] }
0x1b35   : > { %v2224_v40 = vmul.f32 %v3870_v34, %v2221_v36 }
0x1b36   : > { %v2215_v41 = vsub.f32 1.5, %v2214_v38 }
0x1b37   : > { %v2227_v42 = vadd.f32 %v3871_v37, %v2224_v40 }
0x1b38   : > { %v2216_v43 = vmul.f32 %v3984_v63, %v2215_v41 }
0x1b39   : > { %v2231_v47 = vmul.f32 0.01, %v2227_v42  ;;  %vm2229_vm7 = vcmp.ge.f32.partialorder %v2227_v42, 0.0 }
0x1b3a   : > { %v2220_v45 = vsel %vm2219_vm6, %v3984_v63, %v2216_v43 }
0x1b3b   : > { %v2222_v46 = vmul.f32 %v2220_v45, %v2188_v12  ;;  %v2233_v51 = vsel %vm2229_vm7, %v2227_v42, %v2231_v47 }
0x1b3c   : > { %v2235_v19 = vpack.c.bf16 %v2233_v51, %v2233_v51 }
0x1b3d   : > { %v2225_v49 = vmul.f32 %v3870_v34, %v2222_v46 }
0x1b3e   : > { %v2239_v55 = vunpack.c.l.b16 %v2235_v19 }
0x1b3f   : > { %v2228_v50 = vadd.f32 %v3871_v37, %v2225_v49 }
0x1b41   : > { %vm2230_vm9 = vcmp.ge.f32.partialorder %v2228_v50, 0.0  ;;  %v2232_v52 = vmul.f32 0.01, %v2228_v50 }
0x1b43   : > { %v2234_v53 = vsel %vm2230_vm9, %v2228_v50, %v2232_v52 }
0x1b44   : > { %v2236_v54 = vpack.c.bf16 %v2234_v53, %v2234_v53  ;;  %v3875_v53 = vld [vmem:[%s4995_s12 + $0x4] ss:$0 sm:$0xff] }
0x1b46   : > { %v2240_v56 = vunpack.c.l.b16 %v2236_v54 }
0x1b48   : > { %v2241_v25 = vpack.c.b16 %v2240_v56, %v2239_v55 }
0x1b4a   : > { %2242 = vrot.lane.b32.xlu1 %v2241_v25, %s5004_s30  ;;  %s5016_s30 = smov 32  }
0x1bbc   : > { %v2243_v57 = vpop.permute.xlu1 %2242 }
0x1bbd   : > { %v2245_v58 = vsel %vm580_vm3, 0, %v2243_v57 }
0x1bbe   : > { %3589 = vmatmul.msk.bf16.vlgmr.msrb.gmra.mxu3 %vm806_vm8, %v2245_v58 }
0x1c41   : > { %v2292_v61 = vpop.f32.mrf.mxu3 }
0x1c42   : > { %v2293_v62 = vadd.f32 %v3872_v60, %v2292_v61 }
0x1c44   : > { %v2299_v0 = vsel %vm580_vm3, %v2293_v62, 0.0 }
0x1c45   : > { %2300 = vadd.xlane.f32.xlu0 %v2299_v0 }
0x1c49   : > { %v2294_v1 = vpop.f32.mrf.mxu3 }
0x1c4a   : > { %v2295_v2 = vadd.f32 %v3872_v60, %v2294_v1 }
0x1c4c   : > { %v2302_v3 = vsel %vm580_vm3, %v2295_v2, 0.0 }
0x1c4d   : > { %2303 = vadd.xlane.f32.xlu2 %v2302_v3 }
0x1cb8   : > { %v2301_v24 = vpop.xlane.xlu0 %2300 }
0x1cb9   : > { %v2305_v4 = vmul.f32 %v2301_v24, %v4281_v32 }
0x1cbb   : > { %v2307_v6 = vsub.f32 %v2293_v62, %v2305_v4 }
0x1cbd   : > { %v2309_v7 = vmul.f32 %v2307_v6, %v2307_v6 }
0x1cbf   : > { %v2311_v21 = vsel %vm580_vm3, %v2309_v7, 0.0 }
0x1cc0   : > { %v2304_v10 = vpop.xlane.xlu2 %2303  ;;  %2312 = vadd.xlane.f32.xlu0 %v2311_v21 }
0x1cc1   : > { %v2306_v12 = vmul.f32 %v2304_v10, %v4281_v32 }
0x1cc3   : > { %v2308_v13 = vsub.f32 %v2295_v2, %v2306_v12 }
0x1cc5   : > { %v2310_v14 = vmul.f32 %v2308_v13, %v2308_v13 }
0x1cc7   : > { %v2314_v44 = vsel %vm580_vm3, %v2310_v14, 0.0 }
0x1cc8   : > { %2315 = vadd.xlane.f32.xlu2 %v2314_v44 }
0x1d33   : > { %v2313_v15 = vpop.xlane.xlu0 %2312 }
0x1d34   : > { %v2317_v16 = vmul.f32 %v2313_v15, %v4281_v32 }
0x1d36   : > { %v2319_v18 = vadd.f32 1e-05, %v2317_v16 }
0x1d38   : > { %3985 = vrsqrt.f32 %v2319_v18  ;;  %vm2327_vm11 = vweird.f32 %v2319_v18 }
0x1d3b   : > { %v2316_v20 = vpop.xlane.xlu2 %2315 }
0x1d3c   : > { %v2318_v22 = vmul.f32 %v2316_v20, %v4281_v32 }
0x1d3e   : > { %v3986_v23 = vpop.eup %3985  ;;  %v2320_v26 = vadd.f32 1e-05, %v2318_v22 }
0x1d3f   : > { %v2322_v27 = vmul.f32 %v3986_v23, %v2319_v18  ;;  %vm2328_vm10 = vweird.f32 %v3986_v23 }
0x1d40   : > { %3987 = vrsqrt.f32 %v2320_v26  ;;  %vm2329_vm12 = vmor %vm2327_vm11, %vm2328_vm10  ;;  %vm2337_vm14 = vweird.f32 %v2320_v26 }
0x1d41   : > { %v2323_v28 = vmul.f32 %v3986_v23, %v2322_v27 }
0x1d43   : > { %v2324_v29 = vmul.f32 0.5, %v2323_v28 }
0x1d45   : > { %v2325_v63 = vsub.f32 1.5, %v2324_v29 }
0x1d46   : > { %v3988_v30 = vpop.eup %3987 }
0x1d47   : > { %v2326_v31 = vmul.f32 %v3986_v23, %v2325_v63  ;;  %v2332_v33 = vmul.f32 %v3988_v30, %v2320_v26  ;;  %vm2338_vm13 = vweird.f32 %v3988_v30 }
0x1d48   : > { %vm2339_vm15 = vmor %vm2337_vm14, %vm2338_vm13 }
0x1d49   : > { %v2330_v34 = vsel %vm2329_vm12, %v3986_v23, %v2326_v31  ;;  %v2333_v59 = vmul.f32 %v3988_v30, %v2332_v33 }
0x1d4a   : > { %v2341_v36 = vmul.f32 %v2330_v34, %v2307_v6 }
0x1d4b   : > { %v2334_v37 = vmul.f32 0.5, %v2333_v59 }
0x1d4c   : > { %v2344_v40 = vmul.f32 %v3873_v35, %v2341_v36 }
0x1d4d   : > { %v2335_v38 = vsub.f32 1.5, %v2334_v37 }
0x1d4e   : > { %v2347_v43 = vadd.f32 %v3874_v39, %v2344_v40 }
0x1d4f   : > { %v2336_v41 = vmul.f32 %v3988_v30, %v2335_v38 }
0x1d50   : > { %v2351_v49 = vmul.f32 0.01, %v2347_v43  ;;  %vm2349_vm1 = vcmp.ge.f32.partialorder %v2347_v43, 0.0 }
0x1d51   : > { %v2340_v42 = vsel %vm2339_vm15, %v3988_v30, %v2336_v41 }
0x1d52   : > { %v2342_v45 = vmul.f32 %v2340_v42, %v2308_v13  ;;  %v2353_v51 = vsel %vm2349_vm1, %v2347_v43, %v2351_v49  ;;  %v3768_v42 = vld [vmem:[%s4990_s7 + $0x58] sm:$0xff] }
0x1d53   : > { %2529 = vmatpush.bf16.msra.mxu1 %v3768_v42  ;;  %v3772_v42 = vld [vmem:[%s4992_s9 + $0xb8] sm:$0xff] }
0x1d54   : > { %v2345_v46 = vmul.f32 %v3873_v35, %v2342_v45  ;;  %v3767_v45 = vld [vmem:[%s4990_s7 + $0x50] sm:$0xff]  ;;  %2647 = vmatpush.bf16.msra.mxu2 %v3772_v42 }
0x1d56   : > { %v2348_v47 = vadd.f32 %v3874_v39, %v2345_v46 }
0x1d57   : > { %2530 = vmatpush.bf16.msra.mxu1 %v3767_v45  ;;  %v3771_v45 = vld [vmem:[%s4992_s9 + $0xb0] sm:$0xff] }
0x1d58   : > { %vm2350_vm2 = vcmp.ge.f32.partialorder %v2348_v47, 0.0  ;;  %v2352_v50 = vmul.f32 0.01, %v2348_v47  ;;  %2648 = vmatpush.bf16.msra.mxu2 %v3771_v45 }
0x1d5a   : > { %v2354_v52 = vsel %vm2350_vm2, %v2348_v47, %v2352_v50 }
0x1d5b   : > { %v2355_v19 = vpack.c.bf16 %v2354_v52, %v2353_v51 }
0x1d5d   : > { %3602 = vmatmul.msk.bf16.vlgmr.msra.gmra.mxu0 %vm580_vm3, %v2355_v19 }
0x1dda   : > { %v2387_v54 = vpop.f32.mrf.mxu0 }
0x1ddb   : > { %v2388_v55 = vadd.f32 %v3875_v53, %v2387_v54 }
0x1ddd   : > { %v3603_v56 = vmul.f32 -1.442695, %v2388_v55 }
0x1ddf   : > { %3989 = vpow2.f32 %v3603_v56 }
0x1de2   : > { %v2389_v25 = vpop.f32.mrf.mxu0 }
0x1de3   : > { %v2390_v57 = vadd.f32 %v3875_v53, %v2389_v25 }
0x1de5   : > { %v3990_v58 = vpop.eup %3989  ;;  %v3604_v60 = vmul.f32 -1.442695, %v2390_v57 }
0x1de6   : > { %v2398_v61 = vadd.f32 1.0, %v3990_v58  ;;  %v3876_v58 = vld [vmem:[%s4988_s5 + $0xf] ss:$0 sm:$0xff] }
0x1de7   : > { %3991 = vpow2.f32 %v3604_v60 }
0x1de8   : > { %3993 = vrcp.f32 %v2398_v61  ;;  %v2411_v24 = vand.u32 2147483648, %v2398_v61  ;;  %v2409_v6 = vand.u32 2147483647, %v2398_v61  ;;  %vm2405_vm5 = vweird.f32 %v2398_v61 }
0x1dea   : > { %v2412_v10 = vor.u32 1.1754944e-38, %v2411_v24  ;;  %vm2410_vm7 = vcmp.eq.f32.partialorder %v2409_v6, 8.507059e+37 }
0x1ded   : > { %v3992_v62 = vpop.eup %3991 }
0x1dee   : > { %v3994_v0 = vpop.eup %3993  ;;  %v2399_v1 = vadd.f32 1.0, %v3992_v62 }
0x1def   : > { %v2401_v2 = vmul.f32 %v3994_v0, %v2398_v61  ;;  %vm2406_vm4 = vweird.f32 %v3994_v0 }
0x1df0   : > { %3995 = vrcp.f32 %v2399_v1  ;;  %vm2407_vm6 = vmor %vm2405_vm5, %vm2406_vm4  ;;  %v2426_v15 = vand.u32 2147483648, %v2399_v1  ;;  %v2424_v17 = vand.u32 2147483647, %v2399_v1  ;;  %vm2420_vm10 = vweird.f32 %v2399_v1 }
0x1df1   : > { %v2402_v3 = vsub.f32 1.0, %v2401_v2 }
0x1df2   : > { %v2427_v48 = vor.u32 1.1754944e-38, %v2426_v15  ;;  %vm2425_vm12 = vcmp.eq.f32.partialorder %v2424_v17, 8.507059e+37 }
0x1df3   : > { %v2403_v4 = vmul.f32 %v3994_v0, %v2402_v3 }
0x1df5   : > { %v2404_v7 = vadd.f32 %v3994_v0, %v2403_v4 }
0x1df6   : > { %v3996_v21 = vpop.eup %3995 }
0x1df7   : > { %v2408_v12 = vsel %vm2407_vm6, %v3994_v0, %v2404_v7  ;;  %v2416_v13 = vmul.f32 %v3996_v21, %v2399_v1  ;;  %vm2421_vm9 = vweird.f32 %v3996_v21  ;;  %v3877_v0 = vld [vmem:[%s4989_s6 + $0xf] ss:$0 sm:$0xff] }
0x1df8   : > { %v2413_v14 = vsel %vm2410_vm7, %v2412_v10, %v2408_v12  ;;  %vm2422_vm11 = vmor %vm2420_vm10, %vm2421_vm9 }
0x1df9   : > { %2432 = vrot.lane.b32.xlu0 %v2413_v14, %s5015_s23  ;;  %v2417_v44 = vsub.f32 1.0, %v2416_v13 }
0x1dfb   : > { %v2418_v16 = vmul.f32 %v3996_v21, %v2417_v44  ;;  %v3878_v44 = vld [vmem:[%s4991_s8 + $0x5] ss:$0 sm:$0xff] }
0x1dfd   : > { %v2419_v18 = vadd.f32 %v3996_v21, %v2418_v16 }
0x1dff   : > { %v2423_v20 = vsel %vm2422_vm11, %v3996_v21, %v2419_v18 }
0x1e00   : > { %v2428_v22 = vsel %vm2425_vm12, %v2427_v48, %v2423_v20 }
0x1e01   : > { %2434 = vrot.lane.b32.xlu1 %v2428_v22, %s5015_s23 }
0x1e6b   : > { %v2433_v23 = vpop.permute.xlu0 %2432 }
0x1e6c   : > { %v2438_v26 = vmul.f32 %v2433_v23, %v2388_v55 }
0x1e6e   : > { %v4740_v27 = vadd.f32 %v2438_v26, %v4648_v5 }
0x1e70   : > { %v2444_v28 = vsel %vm580_vm3, %v4740_v27, 0.0 }
0x1e71   : > { %2445 = vadd.xlane.f32.xlu2 %v2444_v28 }
0x1e73   : > { %v2435_v29 = vpop.permute.xlu1 %2434 }
0x1e74   : > { %v2439_v63 = vmul.f32 %v2435_v29, %v2390_v57 }
0x1e76   : > { %v4745_v30 = vadd.f32 %v2439_v63, %v4653_v8 }
0x1e78   : > { %v2447_v31 = vsel %vm580_vm3, %v4745_v30, 0.0 }
0x1e79   : > { %2448 = vadd.xlane.f32.xlu1 %v2447_v31 }
0x1ee4   : > { %v2446_v33 = vpop.xlane.xlu2 %2445 }
0x1ee5   : > { %v2450_v34 = vmul.f32 %v2446_v33, %v4281_v32 }
0x1ee7   : > { %v2452_v59 = vsub.f32 %v4740_v27, %v2450_v34 }
0x1ee9   : > { %v2454_v5 = vmul.f32 %v2452_v59, %v2452_v59 }
0x1eeb   : > { %v2456_v35 = vsel %vm580_vm3, %v2454_v5, 0.0 }
0x1eec   : > { %v2449_v36 = vpop.xlane.xlu1 %2448  ;;  %2457 = vadd.xlane.f32.xlu2 %v2456_v35 }
0x1eed   : > { %v2451_v37 = vmul.f32 %v2449_v36, %v4281_v32 }
0x1eef   : > { %v2453_v38 = vsub.f32 %v4745_v30, %v2451_v37 }
0x1ef1   : > { %v2455_v8 = vmul.f32 %v2453_v38, %v2453_v38 }
0x1ef3   : > { %v2459_v39 = vsel %vm580_vm3, %v2455_v8, 0.0 }
0x1ef4   : > { %2460 = vadd.xlane.f32.xlu0 %v2459_v39 }
0x1f5f   : > { %v2458_v40 = vpop.xlane.xlu2 %2457 }
0x1f60   : > { %v2462_v41 = vmul.f32 %v2458_v40, %v4281_v32 }
0x1f62   : > { %v2464_v43 = vadd.f32 1e-05, %v2462_v41 }
0x1f64   : > { %3997 = vrsqrt.f32 %v2464_v43  ;;  %vm2472_vm14 = vweird.f32 %v2464_v43 }
0x1f67   : > { %v2461_v46 = vpop.xlane.xlu0 %2460 }
0x1f68   : > { %v2463_v47 = vmul.f32 %v2461_v46, %v4281_v32 }
0x1f6a   : > { %v3998_v49 = vpop.eup %3997  ;;  %v2465_v50 = vadd.f32 1e-05, %v2463_v47 }
0x1f6b   : > { %v2467_v51 = vmul.f32 %v3998_v49, %v2464_v43  ;;  %vm2473_vm13 = vweird.f32 %v3998_v49 }
0x1f6c   : > { %3999 = vrsqrt.f32 %v2465_v50  ;;  %vm2474_vm15 = vmor %vm2472_vm14, %vm2473_vm13  ;;  %vm2482_vm2 = vweird.f32 %v2465_v50 }
0x1f6d   : > { %v2468_v52 = vmul.f32 %v3998_v49, %v2467_v51  ;;  %v3770_v51 = vld [vmem:[%s4992_s9 + $0xa8] sm:$0xff] }
0x1f6e   : > { %2649 = vmatpush.bf16.msra.mxu2 %v3770_v51 }
0x1f6f   : > { %v2469_v19 = vmul.f32 0.5, %v2468_v52  ;;  %v3879_v52 = vld [vmem:[%s4988_s5 + $0x10] ss:$0 sm:$0xff] }
0x1f71   : > { %v2470_v53 = vsub.f32 1.5, %v2469_v19 }
0x1f72   : > { %v4000_v54 = vpop.eup %3999 }
0x1f73   : > { %v2471_v55 = vmul.f32 %v3998_v49, %v2470_v53  ;;  %v2477_v56 = vmul.f32 %v4000_v54, %v2465_v50  ;;  %vm2483_vm1 = vweird.f32 %v4000_v54 }
0x1f74   : > { %vm2484_vm4 = vmor %vm2482_vm2, %vm2483_vm1 }
0x1f75   : > { %v2475_v25 = vsel %vm2474_vm15, %v3998_v49, %v2471_v55  ;;  %v2478_v57 = vmul.f32 %v4000_v54, %v2477_v56  ;;  %v3880_v55 = vld [vmem:[%s4989_s6 + $0x10] ss:$0 sm:$0xff] }
0x1f76   : > { %v2486_v60 = vmul.f32 %v2475_v25, %v2452_v59  ;;  %v3769_v25 = vld [vmem:[%s4992_s9 + $0xa0] sm:$0xff] }
0x1f77   : > { %v2479_v61 = vmul.f32 0.5, %v2478_v57  ;;  %2650 = vmatpush.bf16.msra.mxu2 %v3769_v25  ;;  %v3883_v25 = vld [vmem:[%s4989_s6 + $0x11] ss:$0 sm:$0xff] }
0x1f78   : > { %v2489_v1 = vmul.f32 %v3876_v58, %v2486_v60 }
0x1f79   : > { %v2480_v62 = vsub.f32 1.5, %v2479_v61 }
0x1f7a   : > { %v2492_v24 = vadd.f32 %v3877_v0, %v2489_v1 }
0x1f7b   : > { %v2481_v2 = vmul.f32 %v4000_v54, %v2480_v62 }
0x1f7c   : > { %v2496_v21 = vmul.f32 0.01, %v2492_v24  ;;  %vm2494_vm5 = vcmp.ge.f32.partialorder %v2492_v24, 0.0 }
0x1f7d   : > { %v2485_v3 = vsel %vm2484_vm4, %v4000_v54, %v2481_v2 }
0x1f7e   : > { %v2487_v4 = vmul.f32 %v2485_v3, %v2453_v38  ;;  %v2498_v12 = vsel %vm2494_vm5, %v2492_v24, %v2496_v21 }
0x1f80   : > { %v2490_v6 = vmul.f32 %v3876_v58, %v2487_v4 }
0x1f82   : > { %v2493_v7 = vadd.f32 %v3877_v0, %v2490_v6 }
0x1f84   : > { %vm2495_vm6 = vcmp.ge.f32.partialorder %v2493_v7, 0.0  ;;  %v2497_v10 = vmul.f32 0.01, %v2493_v7 }
0x1f86   : > { %v2499_v13 = vsel %vm2495_vm6, %v2493_v7, %v2497_v10 }
0x1f87   : > { %v2500_v14 = vpack.c.bf16 %v2499_v13, %v2498_v12 }
0x1f89   : > { %3617 = vmatmul.msk.bf16.vlgmr.msra.gmra.mxu1 %vm580_vm3, %v2500_v14 }
0x2006   : > { %v2532_v15 = vpop.f32.mrf.mxu1 }
0x2007   : > { %v2533_v16 = vadd.f32 %v3878_v44, %v2532_v15  ;;  %v3881_v15 = vld [vmem:[%s4993_s10 + $0x5] ss:$0 sm:$0xff] }
0x2009   : > { %v2539_v17 = vsel %vm580_vm3, %v2533_v16, 0.0 }
0x200a   : > { %2540 = vadd.xlane.f32.xlu2 %v2539_v17 }
0x200e   : > { %v2534_v18 = vpop.f32.mrf.mxu1 }
0x200f   : > { %v2535_v48 = vadd.f32 %v3878_v44, %v2534_v18 }
0x2011   : > { %v2542_v20 = vsel %vm580_vm3, %v2535_v48, 0.0 }
0x2012   : > { %2543 = vadd.xlane.f32.xlu2 %v2542_v20 }
0x207d   : > { %v2541_v22 = vpop.xlane.xlu2 %2540 }
0x207e   : > { %v2545_v23 = vmul.f32 %v2541_v22, %v4281_v32 }
0x2080   : > { %v2547_v26 = vsub.f32 %v2533_v16, %v2545_v23 }
0x2082   : > { %v2549_v28 = vmul.f32 %v2547_v26, %v2547_v26 }
0x2084   : > { %v2551_v29 = vsel %vm580_vm3, %v2549_v28, 0.0 }
0x2085   : > { %2552 = vadd.xlane.f32.xlu2 %v2551_v29  ;;  %v2544_v63 = vpop.xlane.xlu2 %2543 }
0x2086   : > { %v2546_v31 = vmul.f32 %v2544_v63, %v4281_v32 }
0x2088   : > { %v2548_v33 = vsub.f32 %v2535_v48, %v2546_v31 }
0x208a   : > { %v2550_v34 = vmul.f32 %v2548_v33, %v2548_v33 }
0x208c   : > { %v2554_v59 = vsel %vm580_vm3, %v2550_v34, 0.0 }
0x208d   : > { %2555 = vadd.xlane.f32.xlu2 %v2554_v59 }
0x20f8   : > { %v2553_v5 = vpop.xlane.xlu2 %2552 }
0x20f9   : > { %v2557_v35 = vmul.f32 %v2553_v5, %v4281_v32 }
0x20fb   : > { %v2559_v36 = vadd.f32 1e-05, %v2557_v35 }
0x20fd   : > { %4001 = vrsqrt.f32 %v2559_v36  ;;  %vm2567_vm9 = vweird.f32 %v2559_v36 }
0x2100   : > { %v2556_v37 = vpop.xlane.xlu2 %2555 }
0x2101   : > { %v2558_v38 = vmul.f32 %v2556_v37, %v4281_v32  ;;  %v3774_v37 = vld [vmem:[%s4994_s11 + $0x58] sm:$0xff] }
0x2102   : > { %2744 = vmatpush.bf16.msra.mxu3 %v3774_v37 }
0x2103   : > { %v4002_v8 = vpop.eup %4001  ;;  %v2560_v39 = vadd.f32 1e-05, %v2558_v38 }
0x2104   : > { %v2562_v40 = vmul.f32 %v4002_v8, %v2559_v36  ;;  %vm2568_vm7 = vweird.f32 %v4002_v8 }
0x2105   : > { %4003 = vrsqrt.f32 %v2560_v39  ;;  %vm2569_vm10 = vmor %vm2567_vm9, %vm2568_vm7  ;;  %vm2577_vm12 = vweird.f32 %v2560_v39 }
0x2106   : > { %v2563_v41 = vmul.f32 %v4002_v8, %v2562_v40 }
0x2108   : > { %v2564_v43 = vmul.f32 0.5, %v2563_v41 }
0x210a   : > { %v2565_v46 = vsub.f32 1.5, %v2564_v43 }
0x210b   : > { %v4004_v47 = vpop.eup %4003 }
0x210c   : > { %v2566_v49 = vmul.f32 %v4002_v8, %v2565_v46  ;;  %v2572_v50 = vmul.f32 %v4004_v47, %v2560_v39  ;;  %vm2578_vm11 = vweird.f32 %v4004_v47 }
0x210d   : > { %vm2579_vm13 = vmor %vm2577_vm12, %vm2578_vm11 }
0x210e   : > { %v2570_v19 = vsel %vm2569_vm10, %v4002_v8, %v2566_v49  ;;  %v2573_v53 = vmul.f32 %v4004_v47, %v2572_v50  ;;  %v3773_v8 = vld [vmem:[%s4994_s11 + $0x50] sm:$0xff] }
0x210f   : > { %v2581_v54 = vmul.f32 %v2570_v19, %v2547_v26  ;;  %2745 = vmatpush.bf16.msra.mxu3 %v3773_v8 }
0x2110   : > { %v2574_v56 = vmul.f32 0.5, %v2573_v53  ;;  %v3882_v53 = vld [vmem:[%s4988_s5 + $0x11] ss:$0 sm:$0xff] }
0x2111   : > { %v2584_v57 = vmul.f32 %v3879_v52, %v2581_v54 }
0x2112   : > { %v2575_v58 = vsub.f32 1.5, %v2574_v56 }
0x2113   : > { %v2587_v60 = vadd.f32 %v3880_v55, %v2584_v57 }
0x2114   : > { %v2576_v61 = vmul.f32 %v4004_v47, %v2575_v58 }
0x2115   : > { %v2591_v1 = vmul.f32 0.01, %v2587_v60  ;;  %vm2589_vm14 = vcmp.ge.f32.partialorder %v2587_v60, 0.0 }
0x2116   : > { %v2580_v62 = vsel %vm2579_vm13, %v4004_v47, %v2576_v61 }
0x2117   : > { %v2582_v0 = vmul.f32 %v2580_v62, %v2548_v33  ;;  %v2593_v24 = vsel %vm2589_vm14, %v2587_v60, %v2591_v1 }
0x2118   : > { %v2595_v6 = vpack.c.bf16 %v2593_v24, %v2593_v24 }
0x2119   : > { %v2585_v2 = vmul.f32 %v3879_v52, %v2582_v0 }
0x211a   : > { %v2599_v10 = vunpack.c.l.b16 %v2595_v6 }
0x211b   : > { %v2588_v3 = vadd.f32 %v3880_v55, %v2585_v2 }
0x211d   : > { %vm2590_vm15 = vcmp.ge.f32.partialorder %v2588_v3, 0.0  ;;  %v2592_v4 = vmul.f32 0.01, %v2588_v3 }
0x211f   : > { %v2594_v7 = vsel %vm2590_vm15, %v2588_v3, %v2592_v4 }
0x2120   : > { %v2596_v21 = vpack.c.bf16 %v2594_v7, %v2594_v7  ;;  %v3884_v7 = vld [vmem:[%s4995_s12 + $0x5] ss:$0 sm:$0xff] }
0x2122   : > { %v2600_v12 = vunpack.c.l.b16 %v2596_v21 }
0x2124   : > { %v2601_v13 = vpack.c.b16 %v2600_v12, %v2599_v10 }
0x2126   : > { %2602 = vrot.lane.b32.xlu2 %v2601_v13, %s5016_s30 }
0x2180   : > { %v2603_v14 = vpop.permute.xlu2 %2602 }
0x2181   : > { %v2605_v44 = vsel %vm580_vm3, 0, %v2603_v14 }
0x2182   : > { %3642 = vmatmul.msk.bf16.vlgmr.msra.gmra.mxu2 %vm806_vm8, %v2605_v44 }
0x2205   : > { %v2652_v16 = vpop.f32.mrf.mxu2 }
0x2206   : > { %v2653_v17 = vadd.f32 %v3881_v15, %v2652_v16 }
0x2208   : > { %v2659_v18 = vsel %vm580_vm3, %v2653_v17, 0.0 }
0x2209   : > { %2660 = vadd.xlane.f32.xlu1 %v2659_v18 }
0x220d   : > { %v2654_v48 = vpop.f32.mrf.mxu2 }
0x220e   : > { %v2655_v20 = vadd.f32 %v3881_v15, %v2654_v48 }
0x2210   : > { %v2662_v22 = vsel %vm580_vm3, %v2655_v20, 0.0 }
0x2211   : > { %2663 = vadd.xlane.f32.xlu0 %v2662_v22 }
0x227c   : > { %v2661_v23 = vpop.xlane.xlu1 %2660 }
0x227d   : > { %v2665_v26 = vmul.f32 %v2661_v23, %v4281_v32 }
0x227f   : > { %v2667_v28 = vsub.f32 %v2653_v17, %v2665_v26 }
0x2281   : > { %v2669_v29 = vmul.f32 %v2667_v28, %v2667_v28 }
0x2283   : > { %v2671_v63 = vsel %vm580_vm3, %v2669_v29, 0.0 }
0x2284   : > { %v2664_v31 = vpop.xlane.xlu0 %2663  ;;  %2672 = vadd.xlane.f32.xlu1 %v2671_v63 }
0x2285   : > { %v2666_v33 = vmul.f32 %v2664_v31, %v4281_v32 }
0x2287   : > { %v2668_v34 = vsub.f32 %v2655_v20, %v2666_v33 }
0x2289   : > { %v2670_v59 = vmul.f32 %v2668_v34, %v2668_v34 }
0x228b   : > { %v2674_v5 = vsel %vm580_vm3, %v2670_v59, 0.0 }
0x228c   : > { %2675 = vadd.xlane.f32.xlu0 %v2674_v5 }
0x22f7   : > { %v2673_v35 = vpop.xlane.xlu1 %2672 }
0x22f8   : > { %v2677_v36 = vmul.f32 %v2673_v35, %v4281_v32 }
0x22fa   : > { %v2679_v38 = vadd.f32 1e-05, %v2677_v36 }
0x22fc   : > { %4005 = vrsqrt.f32 %v2679_v38  ;;  %vm2687_vm2 = vweird.f32 %v2679_v38 }
0x22ff   : > { %v2676_v39 = vpop.xlane.xlu0 %2675 }
0x2300   : > { %v2678_v40 = vmul.f32 %v2676_v39, %v4281_v32 }
0x2302   : > { %v4006_v41 = vpop.eup %4005  ;;  %v2680_v42 = vadd.f32 1e-05, %v2678_v40 }
0x2303   : > { %v2682_v43 = vmul.f32 %v4006_v41, %v2679_v38  ;;  %vm2688_vm1 = vweird.f32 %v4006_v41 }
0x2304   : > { %4007 = vrsqrt.f32 %v2680_v42  ;;  %vm2689_vm4 = vmor %vm2687_vm2, %vm2688_vm1  ;;  %vm2697_vm6 = vweird.f32 %v2680_v42 }
0x2305   : > { %v2683_v45 = vmul.f32 %v4006_v41, %v2682_v43 }
0x2307   : > { %v2684_v46 = vmul.f32 0.5, %v2683_v45 }
0x2309   : > { %v2685_v47 = vsub.f32 1.5, %v2684_v46 }
0x230a   : > { %v4008_v49 = vpop.eup %4007 }
0x230b   : > { %v2686_v50 = vmul.f32 %v4006_v41, %v2685_v47  ;;  %v2692_v51 = vmul.f32 %v4008_v49, %v2680_v42  ;;  %vm2698_vm5 = vweird.f32 %v4008_v49 }
0x230c   : > { %vm2699_vm7 = vmor %vm2697_vm6, %vm2698_vm5 }
0x230d   : > { %v2690_v52 = vsel %vm2689_vm4, %v4006_v41, %v2686_v50  ;;  %v2693_v19 = vmul.f32 %v4008_v49, %v2692_v51 }
0x230e   : > { %v2701_v54 = vmul.f32 %v2690_v52, %v2667_v28 }
0x230f   : > { %v2694_v55 = vmul.f32 0.5, %v2693_v19 }
0x2310   : > { %v2704_v57 = vmul.f32 %v3882_v53, %v2701_v54 }
0x2311   : > { %v2695_v56 = vsub.f32 1.5, %v2694_v55 }
0x2312   : > { %v2707_v61 = vadd.f32 %v3883_v25, %v2704_v57 }
0x2313   : > { %v2696_v58 = vmul.f32 %v4008_v49, %v2695_v56 }
0x2314   : > { %v2711_v2 = vmul.f32 0.01, %v2707_v61  ;;  %vm2709_vm9 = vcmp.ge.f32.partialorder %v2707_v61, 0.0 }
0x2315   : > { %v2700_v60 = vsel %vm2699_vm7, %v4008_v49, %v2696_v58 }
0x2316   : > { %v2702_v62 = vmul.f32 %v2700_v60, %v2668_v34  ;;  %v2713_v24 = vsel %vm2709_vm9, %v2707_v61, %v2711_v2  ;;  %v3776_v60 = vld [vmem:[%s4990_s7 + $0x68] sm:$0xff] }
0x2317   : > { %2889 = vmatpush.bf16.msrb.mxu0 %v3776_v60  ;;  %v3780_v60 = vld [vmem:[%s4992_s9 + $0xd8] sm:$0xff] }
0x2318   : > { %v2705_v0 = vmul.f32 %v3882_v53, %v2702_v62  ;;  %v3775_v62 = vld [vmem:[%s4990_s7 + $0x60] sm:$0xff]  ;;  %3007 = vmatpush.bf16.msrb.mxu1 %v3780_v60 }
0x231a   : > { %v2708_v1 = vadd.f32 %v3883_v25, %v2705_v0 }
0x231b   : > { %2890 = vmatpush.bf16.msrb.mxu0 %v3775_v62  ;;  %v3779_v62 = vld [vmem:[%s4992_s9 + $0xd0] sm:$0xff] }
0x231c   : > { %vm2710_vm10 = vcmp.ge.f32.partialorder %v2708_v1, 0.0  ;;  %v2712_v3 = vmul.f32 0.01, %v2708_v1  ;;  %3008 = vmatpush.bf16.msrb.mxu1 %v3779_v62 }
0x231e   : > { %v2714_v4 = vsel %vm2710_vm10, %v2708_v1, %v2712_v3 }
0x231f   : > { %v2715_v6 = vpack.c.bf16 %v2714_v4, %v2713_v24 }
0x2321   : > { %3655 = vmatmul.msk.bf16.vlgmr.msra.gmra.mxu3 %vm580_vm3, %v2715_v6 }
0x23a4   : > { %v2747_v21 = vpop.f32.mrf.mxu3 }
0x23a5   : > { %v2748_v10 = vadd.f32 %v3884_v7, %v2747_v21 }
0x23a7   : > { %v3656_v12 = vmul.f32 -1.442695, %v2748_v10 }
0x23a9   : > { %4009 = vpow2.f32 %v3656_v12 }
0x23ac   : > { %v2749_v13 = vpop.f32.mrf.mxu3 }
0x23ad   : > { %v2750_v14 = vadd.f32 %v3884_v7, %v2749_v13 }
0x23af   : > { %v4010_v44 = vpop.eup %4009  ;;  %v3657_v15 = vmul.f32 -1.442695, %v2750_v14 }
0x23b0   : > { %v2758_v16 = vadd.f32 1.0, %v4010_v44  ;;  %v3885_v44 = vld [vmem:[%s4988_s5 + $0x12] ss:$0 sm:$0xff] }
0x23b1   : > { %4011 = vpow2.f32 %v3657_v15 }
0x23b2   : > { %4013 = vrcp.f32 %v2758_v16  ;;  %v2771_v23 = vand.u32 2147483648, %v2758_v16  ;;  %v2769_v28 = vand.u32 2147483647, %v2758_v16  ;;  %vm2765_vm12 = vweird.f32 %v2758_v16 }
0x23b4   : > { %v2772_v31 = vor.u32 1.1754944e-38, %v2771_v23  ;;  %vm2770_vm14 = vcmp.eq.f32.partialorder %v2769_v28, 8.507059e+37 }
0x23b7   : > { %v4012_v17 = vpop.eup %4011 }
0x23b8   : > { %v4014_v18 = vpop.eup %4013  ;;  %v2759_v48 = vadd.f32 1.0, %v4012_v17 }
0x23b9   : > { %v2761_v20 = vmul.f32 %v4014_v18, %v2758_v16  ;;  %vm2766_vm11 = vweird.f32 %v4014_v18 }
0x23ba   : > { %4015 = vrcp.f32 %v2759_v48  ;;  %vm2767_vm13 = vmor %vm2765_vm12, %vm2766_vm11  ;;  %v2786_v35 = vand.u32 2147483648, %v2759_v48  ;;  %v2784_v37 = vand.u32 2147483647, %v2759_v48  ;;  %vm2780_vm1 = vweird.f32 %v2759_v48 }
0x23bb   : > { %v2762_v22 = vsub.f32 1.0, %v2761_v20 }
0x23bc   : > { %v2787_v8 = vor.u32 1.1754944e-38, %v2786_v35  ;;  %vm2785_vm4 = vcmp.eq.f32.partialorder %v2784_v37, 8.507059e+37 }
0x23bd   : > { %v2763_v26 = vmul.f32 %v4014_v18, %v2762_v22 }
0x23bf   : > { %v2764_v29 = vadd.f32 %v4014_v18, %v2763_v26 }
0x23c0   : > { %v4016_v63 = vpop.eup %4015 }
0x23c1   : > { %v2768_v33 = vsel %vm2767_vm13, %v4014_v18, %v2764_v29  ;;  %v2776_v34 = vmul.f32 %v4016_v63, %v2759_v48  ;;  %vm2781_vm15 = vweird.f32 %v4016_v63  ;;  %v3886_v18 = vld [vmem:[%s4989_s6 + $0x12] ss:$0 sm:$0xff] }
0x23c2   : > { %v2773_v59 = vsel %vm2770_vm14, %v2772_v31, %v2768_v33  ;;  %vm2782_vm2 = vmor %vm2780_vm1, %vm2781_vm15 }
0x23c3   : > { %2792 = vrot.lane.b32.xlu1 %v2773_v59, %s5015_s23  ;;  %v2777_v5 = vsub.f32 1.0, %v2776_v34 }
0x23c5   : > { %v2778_v36 = vmul.f32 %v4016_v63, %v2777_v5  ;;  %v3887_v5 = vld [vmem:[%s4991_s8 + $0x6] ss:$0 sm:$0xff] }
0x23c7   : > { %v2779_v38 = vadd.f32 %v4016_v63, %v2778_v36 }
0x23c9   : > { %v2783_v39 = vsel %vm2782_vm2, %v4016_v63, %v2779_v38 }
0x23ca   : > { %v2788_v40 = vsel %vm2785_vm4, %v2787_v8, %v2783_v39 }
0x23cb   : > { %2794 = vrot.lane.b32.xlu0 %v2788_v40, %s5015_s23 }
0x2435   : > { %v2793_v41 = vpop.permute.xlu1 %2792 }
0x2436   : > { %v2798_v42 = vmul.f32 %v2793_v41, %v2748_v10 }
0x2438   : > { %v4832_v43 = vadd.f32 %v2798_v42, %v4740_v27 }
0x243a   : > { %v2804_v45 = vsel %vm580_vm3, %v4832_v43, 0.0 }
0x243b   : > { %2805 = vadd.xlane.f32.xlu2 %v2804_v45 }
0x243d   : > { %v2795_v46 = vpop.permute.xlu0 %2794 }
0x243e   : > { %v2799_v47 = vmul.f32 %v2795_v46, %v2750_v14 }
0x2440   : > { %v4837_v49 = vadd.f32 %v2799_v47, %v4745_v30 }
0x2442   : > { %v2807_v50 = vsel %vm580_vm3, %v4837_v49, 0.0 }
0x2443   : > { %2808 = vadd.xlane.f32.xlu0 %v2807_v50 }
0x24ae   : > { %v2806_v51 = vpop.xlane.xlu2 %2805 }
0x24af   : > { %v2810_v52 = vmul.f32 %v2806_v51, %v4281_v32 }
0x24b1   : > { %v2812_v19 = vsub.f32 %v4832_v43, %v2810_v52 }
0x24b3   : > { %v2814_v27 = vmul.f32 %v2812_v19, %v2812_v19 }
0x24b5   : > { %v2816_v53 = vsel %vm580_vm3, %v2814_v27, 0.0 }
0x24b6   : > { %v2809_v54 = vpop.xlane.xlu0 %2808  ;;  %2817 = vadd.xlane.f32.xlu1 %v2816_v53 }
0x24b7   : > { %v2811_v55 = vmul.f32 %v2809_v54, %v4281_v32 }
0x24b9   : > { %v2813_v56 = vsub.f32 %v4837_v49, %v2811_v55 }
0x24bb   : > { %v2815_v30 = vmul.f32 %v2813_v56, %v2813_v56 }
0x24bd   : > { %v2819_v25 = vsel %vm580_vm3, %v2815_v30, 0.0 }
0x24be   : > { %2820 = vadd.xlane.f32.xlu2 %v2819_v25 }
0x2529   : > { %v2818_v57 = vpop.xlane.xlu1 %2817 }
0x252a   : > { %v2822_v58 = vmul.f32 %v2818_v57, %v4281_v32 }
0x252c   : > { %v2824_v61 = vadd.f32 1e-05, %v2822_v58 }
0x252e   : > { %4017 = vrsqrt.f32 %v2824_v61  ;;  %vm2832_vm6 = vweird.f32 %v2824_v61 }
0x2531   : > { %v2821_v0 = vpop.xlane.xlu2 %2820 }
0x2532   : > { %v2823_v1 = vmul.f32 %v2821_v0, %v4281_v32 }
0x2534   : > { %v4018_v2 = vpop.eup %4017  ;;  %v2825_v3 = vadd.f32 1e-05, %v2823_v1 }
0x2535   : > { %v2827_v24 = vmul.f32 %v4018_v2, %v2824_v61  ;;  %vm2833_vm5 = vweird.f32 %v4018_v2 }
0x2536   : > { %4019 = vrsqrt.f32 %v2825_v3  ;;  %vm2834_vm7 = vmor %vm2832_vm6, %vm2833_vm5  ;;  %vm2842_vm10 = vweird.f32 %v2825_v3 }
0x2537   : > { %v2828_v4 = vmul.f32 %v4018_v2, %v2827_v24  ;;  %v3778_v24 = vld [vmem:[%s4992_s9 + $0xc8] sm:$0xff] }
0x2538   : > { %3009 = vmatpush.bf16.msrb.mxu1 %v3778_v24 }
0x2539   : > { %v2829_v6 = vmul.f32 0.5, %v2828_v4  ;;  %v3888_v4 = vld [vmem:[%s4988_s5 + $0x13] ss:$0 sm:$0xff] }
0x253b   : > { %v2830_v7 = vsub.f32 1.5, %v2829_v6 }
0x253c   : > { %v4020_v21 = vpop.eup %4019 }
0x253d   : > { %v2831_v10 = vmul.f32 %v4018_v2, %v2830_v7  ;;  %v2837_v12 = vmul.f32 %v4020_v21, %v2825_v3  ;;  %vm2843_vm9 = vweird.f32 %v4020_v21 }
0x253e   : > { %vm2844_vm11 = vmor %vm2842_vm10, %vm2843_vm9 }
0x253f   : > { %v2835_v13 = vsel %vm2834_vm7, %v4018_v2, %v2831_v10  ;;  %v2838_v14 = vmul.f32 %v4020_v21, %v2837_v12  ;;  %v3889_v10 = vld [vmem:[%s4989_s6 + $0x13] ss:$0 sm:$0xff] }
0x2540   : > { %v2846_v15 = vmul.f32 %v2835_v13, %v2812_v19  ;;  %v3777_v13 = vld [vmem:[%s4992_s9 + $0xc0] sm:$0xff] }
0x2541   : > { %v2839_v16 = vmul.f32 0.5, %v2838_v14  ;;  %3010 = vmatpush.bf16.msrb.mxu1 %v3777_v13 }
0x2542   : > { %v2849_v48 = vmul.f32 %v3885_v44, %v2846_v15 }
0x2543   : > { %v2840_v17 = vsub.f32 1.5, %v2839_v16 }
0x2544   : > { %v2852_v23 = vadd.f32 %v3886_v18, %v2849_v48 }
0x2545   : > { %v2841_v20 = vmul.f32 %v4020_v21, %v2840_v17 }
0x2546   : > { %v2856_v63 = vmul.f32 0.01, %v2852_v23  ;;  %vm2854_vm12 = vcmp.ge.f32.partialorder %v2852_v23, 0.0 }
0x2547   : > { %v2845_v22 = vsel %vm2844_vm11, %v4020_v21, %v2841_v20 }
0x2548   : > { %v2847_v26 = vmul.f32 %v2845_v22, %v2813_v56  ;;  %v2858_v33 = vsel %vm2854_vm12, %v2852_v23, %v2856_v63 }
0x254a   : > { %v2850_v28 = vmul.f32 %v3885_v44, %v2847_v26 }
0x254c   : > { %v2853_v29 = vadd.f32 %v3886_v18, %v2850_v28 }
0x254e   : > { %vm2855_vm13 = vcmp.ge.f32.partialorder %v2853_v29, 0.0  ;;  %v2857_v31 = vmul.f32 0.01, %v2853_v29 }
0x2550   : > { %v2859_v34 = vsel %vm2855_vm13, %v2853_v29, %v2857_v31 }
0x2551   : > { %v2860_v59 = vpack.c.bf16 %v2859_v34, %v2858_v33 }
0x2553   : > { %3670 = vmatmul.msk.bf16.vlgmr.msrb.gmra.mxu0 %vm580_vm3, %v2860_v59 }
0x25d0   : > { %v2892_v35 = vpop.f32.mrf.mxu0 }
0x25d1   : > { %v2893_v36 = vadd.f32 %v3887_v5, %v2892_v35  ;;  %v3890_v35 = vld [vmem:[%s4993_s10 + $0x6] ss:$0 sm:$0xff] }
0x25d3   : > { %v2899_v37 = vsel %vm580_vm3, %v2893_v36, 0.0 }
0x25d4   : > { %2900 = vadd.xlane.f32.xlu2 %v2899_v37 }
0x25d8   : > { %v2894_v38 = vpop.f32.mrf.mxu0 }
0x25d9   : > { %v2895_v8 = vadd.f32 %v3887_v5, %v2894_v38 }
0x25db   : > { %v2902_v39 = vsel %vm580_vm3, %v2895_v8, 0.0 }
0x25dc   : > { %2903 = vadd.xlane.f32.xlu2 %v2902_v39 }
0x2647   : > { %v2901_v40 = vpop.xlane.xlu2 %2900 }
0x2648   : > { %v2905_v41 = vmul.f32 %v2901_v40, %v4281_v32 }
0x264a   : > { %v2907_v42 = vsub.f32 %v2893_v36, %v2905_v41 }
0x264c   : > { %v2909_v45 = vmul.f32 %v2907_v42, %v2907_v42 }
0x264e   : > { %v2911_v46 = vsel %vm580_vm3, %v2909_v45, 0.0 }
0x264f   : > { %2912 = vadd.xlane.f32.xlu0 %v2911_v46  ;;  %v2904_v47 = vpop.xlane.xlu2 %2903 }
0x2650   : > { %v2906_v50 = vmul.f32 %v2904_v47, %v4281_v32 }
0x2652   : > { %v2908_v51 = vsub.f32 %v2895_v8, %v2906_v50 }
0x2654   : > { %v2910_v52 = vmul.f32 %v2908_v51, %v2908_v51 }
0x2656   : > { %v2914_v19 = vsel %vm580_vm3, %v2910_v52, 0.0 }
0x2657   : > { %2915 = vadd.xlane.f32.xlu1 %v2914_v19 }
0x26c2   : > { %v2913_v27 = vpop.xlane.xlu0 %2912 }
0x26c3   : > { %v2917_v53 = vmul.f32 %v2913_v27, %v4281_v32 }
0x26c5   : > { %v2919_v54 = vadd.f32 1e-05, %v2917_v53 }
0x26c7   : > { %4021 = vrsqrt.f32 %v2919_v54  ;;  %vm2927_vm15 = vweird.f32 %v2919_v54 }
0x26ca   : > { %v2916_v55 = vpop.xlane.xlu1 %2915 }
0x26cb   : > { %v2918_v56 = vmul.f32 %v2916_v55, %v4281_v32  ;;  %v3782_v55 = vld [vmem:[%s4994_s11 + $0x68] sm:$0xff] }
0x26cc   : > { %3104 = vmatpush.bf16.msrb.mxu2 %v3782_v55 }
0x26cd   : > { %v4022_v30 = vpop.eup %4021  ;;  %v2920_v25 = vadd.f32 1e-05, %v2918_v56 }
0x26ce   : > { %v2922_v57 = vmul.f32 %v4022_v30, %v2919_v54  ;;  %vm2928_vm14 = vweird.f32 %v4022_v30 }
0x26cf   : > { %4023 = vrsqrt.f32 %v2920_v25  ;;  %vm2929_vm1 = vmor %vm2927_vm15, %vm2928_vm14  ;;  %vm2937_vm4 = vweird.f32 %v2920_v25 }
0x26d0   : > { %v2923_v58 = vmul.f32 %v4022_v30, %v2922_v57 }
0x26d2   : > { %v2924_v61 = vmul.f32 0.5, %v2923_v58 }
0x26d4   : > { %v2925_v0 = vsub.f32 1.5, %v2924_v61 }
0x26d5   : > { %v4024_v1 = vpop.eup %4023 }
0x26d6   : > { %v2926_v2 = vmul.f32 %v4022_v30, %v2925_v0  ;;  %v2932_v3 = vmul.f32 %v4024_v1, %v2920_v25  ;;  %vm2938_vm2 = vweird.f32 %v4024_v1 }
0x26d7   : > { %vm2939_vm5 = vmor %vm2937_vm4, %vm2938_vm2 }
0x26d8   : > { %v2930_v6 = vsel %vm2929_vm1, %v4022_v30, %v2926_v2  ;;  %v2933_v7 = vmul.f32 %v4024_v1, %v2932_v3  ;;  %v3781_v30 = vld [vmem:[%s4994_s11 + $0x60] sm:$0xff] }
0x26d9   : > { %v2941_v21 = vmul.f32 %v2930_v6, %v2907_v42  ;;  %3105 = vmatpush.bf16.msrb.mxu2 %v3781_v30 }
0x26da   : > { %v2934_v12 = vmul.f32 0.5, %v2933_v7  ;;  %v3891_v7 = vld [vmem:[%s4988_s5 + $0x14] ss:$0 sm:$0xff] }
0x26db   : > { %v2944_v14 = vmul.f32 %v3888_v4, %v2941_v21 }
0x26dc   : > { %v2935_v44 = vsub.f32 1.5, %v2934_v12  ;;  %v3892_v12 = vld [vmem:[%s4989_s6 + $0x14] ss:$0 sm:$0xff] }
0x26dd   : > { %v2947_v15 = vadd.f32 %v3889_v10, %v2944_v14 }
0x26de   : > { %v2936_v16 = vmul.f32 %v4024_v1, %v2935_v44 }
0x26df   : > { %v2951_v48 = vmul.f32 0.01, %v2947_v15  ;;  %vm2949_vm6 = vcmp.ge.f32.partialorder %v2947_v15, 0.0 }
0x26e0   : > { %v2940_v17 = vsel %vm2939_vm5, %v4024_v1, %v2936_v16 }
0x26e1   : > { %v2942_v18 = vmul.f32 %v2940_v17, %v2908_v51  ;;  %v2953_v23 = vsel %vm2949_vm6, %v2947_v15, %v2951_v48 }
0x26e2   : > { %v2955_v28 = vpack.c.bf16 %v2953_v23, %v2953_v23 }
0x26e3   : > { %v2945_v20 = vmul.f32 %v3888_v4, %v2942_v18 }
0x26e4   : > { %v2959_v31 = vunpack.c.l.b16 %v2955_v28  ;;  %v3893_v28 = vld [vmem:[%s4995_s12 + $0x6] ss:$0 sm:$0xff] }
0x26e5   : > { %v2948_v22 = vadd.f32 %v3889_v10, %v2945_v20 }
0x26e7   : > { %vm2950_vm7 = vcmp.ge.f32.partialorder %v2948_v22, 0.0  ;;  %v2952_v26 = vmul.f32 0.01, %v2948_v22 }
0x26e9   : > { %v2954_v29 = vsel %vm2950_vm7, %v2948_v22, %v2952_v26 }
0x26ea   : > { %v2956_v63 = vpack.c.bf16 %v2954_v29, %v2954_v29 }
0x26ec   : > { %v2960_v33 = vunpack.c.l.b16 %v2956_v63 }
0x26ee   : > { %v2961_v34 = vpack.c.b16 %v2960_v33, %v2959_v31  ;;  %v3784_v33 = vld [vmem:[%s4996_s13 + $0x8] sm:$0xff] }
0x26ef   : > { %3192 = vmatpush.bf16.msrb.mxu3 %v3784_v33 }
0x26f0   : > { %2962 = vrot.lane.b32.xlu2 %v2961_v34, %s5016_s30 }
0x274a   : > { %v2963_v59 = vpop.permute.xlu2 %2962 }
0x274b   : > { %v2965_v5 = vsel %vm580_vm3, 0, %v2963_v59 }
0x274c   : > { %3695 = vmatmul.msk.bf16.vlgmr.msrb.gmra.mxu1 %vm806_vm8, %v2965_v5 }
0x27c9   : > { %v3012_v36 = vpop.f32.mrf.mxu1 }
0x27ca   : > { %v3013_v37 = vadd.f32 %v3890_v35, %v3012_v36 }
0x27cc   : > { %v3019_v38 = vsel %vm580_vm3, %v3013_v37, 0.0 }
0x27cd   : > { %3020 = vadd.xlane.f32.xlu0 %v3019_v38 }
0x27d1   : > { %v3014_v8 = vpop.f32.mrf.mxu1 }
0x27d2   : > { %v3015_v39 = vadd.f32 %v3890_v35, %v3014_v8 }
0x27d4   : > { %v3022_v40 = vsel %vm580_vm3, %v3015_v39, 0.0 }
0x27d5   : > { %3023 = vadd.xlane.f32.xlu1 %v3022_v40 }
0x2840   : > { %v3021_v41 = vpop.xlane.xlu0 %3020 }
0x2841   : > { %v3025_v42 = vmul.f32 %v3021_v41, %v4281_v32 }
0x2843   : > { %v3027_v45 = vsub.f32 %v3013_v37, %v3025_v42 }
0x2845   : > { %v3029_v46 = vmul.f32 %v3027_v45, %v3027_v45 }
0x2847   : > { %v3031_v47 = vsel %vm580_vm3, %v3029_v46, 0.0 }
0x2848   : > { %v3024_v50 = vpop.xlane.xlu1 %3023  ;;  %3032 = vadd.xlane.f32.xlu0 %v3031_v47 }
0x2849   : > { %v3026_v51 = vmul.f32 %v3024_v50, %v4281_v32 }
0x284b   : > { %v3028_v52 = vsub.f32 %v3015_v39, %v3026_v51 }
0x284d   : > { %v3030_v19 = vmul.f32 %v3028_v52, %v3028_v52 }
0x284f   : > { %v3034_v27 = vsel %vm580_vm3, %v3030_v19, 0.0 }
0x2850   : > { %3035 = vadd.xlane.f32.xlu1 %v3034_v27 }
0x28bb   : > { %v3033_v53 = vpop.xlane.xlu0 %3032 }
0x28bc   : > { %v3037_v54 = vmul.f32 %v3033_v53, %v4281_v32 }
0x28be   : > { %v3039_v56 = vadd.f32 1e-05, %v3037_v54 }
0x28c0   : > { %4025 = vrsqrt.f32 %v3039_v56  ;;  %vm3047_vm9 = vweird.f32 %v3039_v56 }
0x28c3   : > { %v3036_v25 = vpop.xlane.xlu1 %3035 }
0x28c4   : > { %v3038_v57 = vmul.f32 %v3036_v25, %v4281_v32 }
0x28c6   : > { %v4026_v58 = vpop.eup %4025  ;;  %v3040_v60 = vadd.f32 1e-05, %v3038_v57 }
0x28c7   : > { %v3042_v61 = vmul.f32 %v4026_v58, %v3039_v56  ;;  %vm3048_vm8 = vweird.f32 %v4026_v58 }
0x28c8   : > { %4027 = vrsqrt.f32 %v3040_v60  ;;  %vm3049_vm10 = vmor %vm3047_vm9, %vm3048_vm8  ;;  %vm3057_vm12 = vweird.f32 %v3040_v60 }
0x28c9   : > { %v3043_v62 = vmul.f32 %v4026_v58, %v3042_v61 }
0x28cb   : > { %v3044_v0 = vmul.f32 0.5, %v3043_v62 }
0x28cd   : > { %v3045_v1 = vsub.f32 1.5, %v3044_v0 }
0x28ce   : > { %v4028_v2 = vpop.eup %4027 }
0x28cf   : > { %v3046_v3 = vmul.f32 %v4026_v58, %v3045_v1  ;;  %v3052_v24 = vmul.f32 %v4028_v2, %v3040_v60  ;;  %vm3058_vm11 = vweird.f32 %v4028_v2 }
0x28d0   : > { %vm3059_vm13 = vmor %vm3057_vm12, %vm3058_vm11  ;;  %vm3256_vm12 = vcmask 130112  }
0x28d1   : > { %v3050_v4 = vsel %vm3049_vm10, %v4026_v58, %v3046_v3  ;;  %v3053_v6 = vmul.f32 %v4028_v2, %v3052_v24  ;;  %v3783_v58 = vld [vmem:[%s4996_s13] sm:$0xff]  ;;  %vm3226_vm10 = vcmask 1046528  }
0x28d2   : > { %v3061_v32 = vmul.f32 %v3050_v4, %v3027_v45  ;;  %3193 = vmatpush.bf16.msrb.mxu3 %v3783_v58  ;;  %v3894_v24 = vld [vmem:[%s4997_s14] ss:$0 sm:$0xff] }
0x28d3   : > { %v3054_v21 = vmul.f32 0.5, %v3053_v6 }
0x28d4   : > { %v3064_v13 = vmul.f32 %v3891_v7, %v3061_v32 }
0x28d5   : > { %v3055_v10 = vsub.f32 1.5, %v3054_v21 }
0x28d6   : > { %v3067_v15 = vadd.f32 %v3892_v12, %v3064_v13 }
0x28d7   : > { %v3056_v14 = vmul.f32 %v4028_v2, %v3055_v10 }
0x28d8   : > { %v3071_v48 = vmul.f32 0.01, %v3067_v15  ;;  %vm3069_vm14 = vcmp.ge.f32.partialorder %v3067_v15, 0.0 }
0x28d9   : > { %v3060_v44 = vsel %vm3059_vm13, %v4028_v2, %v3056_v14  ;;  %vm3259_vm13 = vcmask 122880  }
0x28da   : > { %v3062_v16 = vmul.f32 %v3060_v44, %v3028_v52  ;;  %v3073_v22 = vsel %vm3069_vm14, %v3067_v15, %v3071_v48 }
0x28dc   : > { %v3065_v17 = vmul.f32 %v3891_v7, %v3062_v16 }
0x28de   : > { %v3068_v18 = vadd.f32 %v3892_v12, %v3065_v17 }
0x28e0   : > { %vm3070_vm15 = vcmp.ge.f32.partialorder %v3068_v18, 0.0  ;;  %v3072_v20 = vmul.f32 0.01, %v3068_v18 }
0x28e2   : > { %v3074_v23 = vsel %vm3070_vm15, %v3068_v18, %v3072_v20 }
0x28e3   : > { %v3075_v26 = vpack.c.bf16 %v3074_v23, %v3073_v22 }
0x28e5   : > { %3708 = vmatmul.msk.bf16.vlgmr.msrb.gmra.mxu2 %vm580_vm3, %v3075_v26 }
0x2968   : > { %v3107_v29 = vpop.f32.mrf.mxu2 }
0x2969   : > { %v3108_v63 = vadd.f32 %v3893_v28, %v3107_v29 }
0x296b   : > { %v3709_v31 = vmul.f32 -1.442695, %v3108_v63 }
0x296d   : > { %4029 = vpow2.f32 %v3709_v31 }
0x2970   : > { %v3109_v34 = vpop.f32.mrf.mxu2 }
0x2971   : > { %v3110_v59 = vadd.f32 %v3893_v28, %v3109_v34 }
0x2973   : > { %v4030_v5 = vpop.eup %4029  ;;  %v3710_v35 = vmul.f32 -1.442695, %v3110_v59 }
0x2974   : > { %v3118_v36 = vadd.f32 1.0, %v4030_v5 }
0x2975   : > { %4031 = vpow2.f32 %v3710_v35 }
0x2976   : > { %4033 = vrcp.f32 %v3118_v36  ;;  %v3131_v41 = vand.u32 2147483648, %v3118_v36  ;;  %v3129_v45 = vand.u32 2147483647, %v3118_v36  ;;  %vm3125_vm2 = vweird.f32 %v3118_v36 }
0x2978   : > { %v3132_v50 = vor.u32 1.1754944e-38, %v3131_v41  ;;  %vm3130_vm5 = vcmp.eq.f32.partialorder %v3129_v45, 8.507059e+37 }
0x297b   : > { %v4032_v37 = vpop.eup %4031 }
0x297c   : > { %v4034_v38 = vpop.eup %4033  ;;  %v3119_v8 = vadd.f32 1.0, %v4032_v37 }
0x297d   : > { %v3121_v39 = vmul.f32 %v4034_v38, %v3118_v36  ;;  %vm3126_vm1 = vweird.f32 %v4034_v38 }
0x297e   : > { %4035 = vrcp.f32 %v3119_v8  ;;  %vm3127_vm4 = vmor %vm3125_vm2, %vm3126_vm1  ;;  %v3146_v53 = vand.u32 2147483648, %v3119_v8  ;;  %v3144_v55 = vand.u32 2147483647, %v3119_v8  ;;  %vm3140_vm7 = vweird.f32 %v3119_v8 }
0x297f   : > { %v3122_v40 = vsub.f32 1.0, %v3121_v39 }
0x2980   : > { %v3147_v30 = vor.u32 1.1754944e-38, %v3146_v53  ;;  %vm3145_vm9 = vcmp.eq.f32.partialorder %v3144_v55, 8.507059e+37 }
0x2981   : > { %v3123_v42 = vmul.f32 %v4034_v38, %v3122_v40 }
0x2983   : > { %v3124_v46 = vadd.f32 %v4034_v38, %v3123_v42 }
0x2984   : > { %v4036_v47 = vpop.eup %4035 }
0x2985   : > { %v3128_v51 = vsel %vm3127_vm4, %v4034_v38, %v3124_v46  ;;  %v3136_v52 = vmul.f32 %v4036_v47, %v3119_v8  ;;  %vm3141_vm6 = vweird.f32 %v4036_v47 }
0x2986   : > { %v3133_v19 = vsel %vm3130_vm5, %v3132_v50, %v3128_v51  ;;  %vm3142_vm8 = vmor %vm3140_vm7, %vm3141_vm6  ;;  %v3254_v50 = vadd.s32 4294967288, %v4263_v9 }
0x2987   : > { %3152 = vrot.lane.b32.xlu0 %v3133_v19, %s5015_s23  ;;  %v3137_v27 = vsub.f32 1.0, %v3136_v52 }
0x2989   : > { %v3138_v54 = vmul.f32 %v4036_v47, %v3137_v27 }
0x298b   : > { %v3139_v56 = vadd.f32 %v4036_v47, %v3138_v54 }
0x298d   : > { %v3143_v25 = vsel %vm3142_vm8, %v4036_v47, %v3139_v56 }
0x298e   : > { %v3148_v57 = vsel %vm3145_vm9, %v3147_v30, %v3143_v25 }
0x298f   : > { %3154 = vrot.lane.b32.xlu1 %v3148_v57, %s5015_s23 }
0x29f9   : > { %v3153_v60 = vpop.permute.xlu0 %3152 }
0x29fa   : > { %v3158_v61 = vmul.f32 %v3153_v60, %v3108_v63 }
0x29fc   : > { %v3160_v1 = vadd.f32 %v3158_v61, %v4832_v43  ;;  %v4045_v43 = vld [vmem:[%s4252_s27] sm:$0xff] }
0x29fd   : > { %v3227_v12 = vrot.slane %v4045_v43, 1 }
0x2a01   : > { %v3155_v62 = vpop.permute.xlu1 %3154 }
0x2a02   : > { %v3159_v0 = vmul.f32 %v3155_v62, %v3110_v59 }
0x2a04   : > { %v3161_v2 = vadd.f32 %v3159_v0, %v4837_v49  ;;  %v4046_v49 = vld [vmem:[%s4252_s27 + $0x8] sm:$0xff]  ;;  %s496_s27 = sand.u32 1, %s4101_s19  }
0x2a05   : > { %v3228_v13 = vrot.slane %v4046_v49, 1  ;;  %s497_s30 = scalar_lea.vmem [#allocation2], %s496_s27  ;;  %s3262_s26 = scalar_lea.sflag [#allocation3], %s496_s27 }
0x2a06   : > { %v3162_v3 = vpack.c.bf16 %v3161_v2, %v3160_v1  ;;  %s3272_s24 = sshll.u32 %s497_s30, 4  ;;  %s3273_s24 = int_to_ptr.vmem [resolvable:$true] %s3272_s24 }
0x2a07   : > { %v3230_v14 = vsel %vm3226_vm10, %v3228_v13, %v3227_v12  ;;  %v3229_v28 = vsel %vm3226_vm10, %v3227_v12, %v3228_v13 }
0x2a08   : > { %3719 = vmatmul.msk.bf16.vlgmr.msrb.gmra.mxu3 %vm580_vm3, %v3162_v3 }
0x2a8b   : > { %v3195_v4 = vpop.f32.mrf.mxu3 }
0x2a8c   : > { %v3196_v6 = vadd.f32 %v3894_v24, %v3195_v4 }
0x2a8e   : > { %v3200_v7 = vsel %vm537_vm0, %v3196_v6, -inf }
0x2a8f   : > { %3201 = vmax.xlane.f32.xlu2 %v3200_v7 }
0x2a93   : > { %v3197_v32 = vpop.f32.mrf.mxu3 }
0x2a94   : > { %v3198_v21 = vadd.f32 %v3894_v24, %v3197_v32 }
0x2a96   : > { %v3203_v10 = vsel %vm537_vm0, %v3198_v21, -inf }
0x2a97   : > { %3204 = vmax.xlane.f32.xlu0 %v3203_v10 }
0x2aab   : > { %3235 = vperm.xlu0 %3829, %v3230_v14  }
0x2b02   : > { %v3202_v44 = vpop.xlane.xlu2 %3201 }
0x2b03   : > { %v3206_v15 = vsub.f32 %v3196_v6, %v3202_v44 }
0x2b05   : > { %v3208_v16 = vmul.f32 1.442695, %v3206_v15 }
0x2b07   : > { %4037 = vpow2.f32 %v3208_v16 }
0x2b0a   : > { %v3205_v17 = vpop.xlane.xlu0 %3204 }
0x2b0b   : > { %v3207_v18 = vsub.f32 %v3198_v21, %v3205_v17 }
0x2b0d   : > { %v4038_v48 = vpop.eup %4037  ;;  %v3210_v20 = vmul.f32 1.442695, %v3207_v18 }
0x2b0e   : > { %v3212_v22 = vsel %vm537_vm0, %v4038_v48, 0.0 }
0x2b0f   : > { %4039 = vpow2.f32 %v3210_v20  ;;  %3213 = vadd.xlane.f32.xlu1 %v3212_v22 }
0x2b15   : > { %v4040_v23 = vpop.eup %4039 }
0x2b16   : > { %v3215_v26 = vsel %vm537_vm0, %v4040_v23, 0.0 }
0x2b17   : > { %3216 = vadd.xlane.f32.xlu2 %v3215_v26 }
0x2b1d   : > { %v3236_v37 = vpop.permute.xlu0 %3235 }
0x2b1e   : > { %vm3238_vm11 = vcmp.eq.s32.totalorder %v4263_v9, %v3236_v37 }
0x2b1f   : > { %v3721_v42 = vsel %vm3238_vm11, 1.0, %v4112_v11 }
0x2b2f   : > { %3232 = vperm.xlu2 %3830, %v3229_v28  }
0x2b82   : > { %v3214_v29 = vpop.xlane.xlu1 %3213 }
0x2b83   : > { %4041 = vlog2.f32 %v3214_v29 }
0x2b89   : > { %v4042_v63 = vpop.eup %4041 }
0x2b8a   : > { %v3217_v31 = vpop.xlane.xlu2 %3216  ;;  %v3219_v33 = vmul.f32 0.6931472, %v4042_v63 }
0x2b8b   : > { %4043 = vlog2.f32 %v3217_v31 }
0x2b8c   : > { %v3222_v34 = vadd.f32 %v3219_v33, %v3202_v44 }
0x2b8e   : > { %v3224_v36 = vsub.f32 %v3196_v6, %v3222_v34 }
0x2b91   : > { %v4044_v59 = vpop.eup %4043 }
0x2b92   : > { %v3221_v5 = vmul.f32 0.6931472, %v4044_v59  ;;  %v3233_v35 = vpop.permute.xlu2 %3232 }
0x2b93   : > { %vm3237_vm3 = vcmp.eq.s32.totalorder %v4263_v9, %v3233_v35 }
0x2b94   : > { %v3223_v38 = vadd.f32 %v3221_v5, %v3205_v17  ;;  %v3720_v8 = vsel %vm3237_vm3, 1.0, %v4112_v11 }
0x2b95   : > { %v3243_v39 = vmul.f32 %v3720_v8, %v3224_v36 }
0x2b96   : > { %v3225_v41 = vsub.f32 %v3198_v21, %v3223_v38 }
0x2b97   : > { %v3245_v40 = vsel %vm537_vm0, %v3243_v39, 0.0 }
0x2b98   : > { %3246 = vadd.xlane.f32.xlu1 %v3245_v40  ;;  %v3244_v45 = vmul.f32 %v3721_v42, %v3225_v41 }
0x2b9a   : > { %v3248_v46 = vsel %vm537_vm0, %v3244_v45, 0.0 }
0x2ba0   : > { %3249 = vadd.xlane.f32.xlu1 %v3248_v46 }
0x2c0b   : > { %v3247_v47 = vpop.xlane.xlu1 %3246 }
0x2c0c   : > { %v3253_v11 = vperm.slane %v3247_v47, %v4263_v9 }
0x2c13   : > { %v3250_v51 = vpop.xlane.xlu1 %3249 }
0x2c14   : > { %v3255_v52 = vperm.slane %v3250_v51, %v3254_v50 }
0x2c16   : > { %v3257_v19 = vsel %vm3256_vm12, %v3255_v52, %v3253_v11 }
0x2c17   : > { %3260 = vst.msk [vmem:[%s497_s30] sm:$0x1] %vm3259_vm13, %v3257_v19 }
0x2c18   : > { %4074 = shalt.err (!%p4071_p3)
}
0x2c19   : > { %3785 = dma.vmem_to_hbm [thread:$0]  (%p4234_p5), %s3273_s24, 16, %s3275_s25, %s3262_s26  }
0x2c1a PF: > { %p3791_p4 = scmp.ge.s32.totalorder %s4109_s21, 2  ;;  %s3286_s27 = sand.u32 1, %s4097_s18  }
0x2c1b   : > { %s3287_s30 = scalar_lea.sflag [#allocation3], %s3286_s27 }
0x2c1c   : > { %p3788_p7 = pnand %p3791_p4, %p4238_p6 }
0x2c1e   : > { %p3789_p8 = pneg %p3788_p7 }
0x2c20   : > { %4092 = dma.done.wait (%p3789_p8), %s3287_s30, 16  }
0x2c21   : > { %4094 = vsyncadd (%p3789_p8), %s3287_s30, 4294967280  ;;  %s5017_s21 = sld [smem:[#allocation6_spill]]  ;;  %s5020_s18 = smov %s4101_s19 }
0x2c22   : > { %s5018_s16 = sld [smem:[#allocation5_spill]] }
0x2c23   : > { %s5019_s20 = sld [smem:[#allocation7_spill]] }
0x2c27   : > { %p25_p9 = scmp.ge.s32.totalorder %s5017_s21, 4  }
0x2c28   : > { %s5021_s19 = smov %s5018_s16 }
0x2c29   :  { %27 = sbr.rel (!%p25_p9) target bundleno = 6 (0x6), region = 136 }
0x2c2e   :  { %3292 = vsyncpa [#allocation3], 1 }
0x2c2f   :  { %3294 = vsyncpa [#allocation3 + $0x1], 1 }

</bundles_post_ra>
